<compile_context>
chip_gen: v7x
topology: tpu7x:2x2x1
jax: 0.10.0
libtpu: 0.0.40
codegen_flags: <defaults>
</compile_context>

<pallas_src>
import functools

import jax
import jax.numpy as jnp
from jax import lax
from jax.experimental import pallas as pl
from jax.experimental.pallas import tpu as pltpu


def _bce_with_logits(x, z):
    # numerically-stable BCE with logits:  max(x,0) - x*z + log(1 + exp(-|x|))
    return jnp.maximum(x, 0.0) - x * z + jnp.log1p(jnp.exp(jnp.minimum(x, -x)))


def _offset_weights(k):
    """Ring-deduplicated weights: w(dy,dx) = sum_{i >= max(|dy|,|dx|,1)}^{k} 0.5^(i-1)/(2i+1)^2."""
    out = []
    for dy in range(-k, k + 1):
        for dx in range(-k, k + 1):
            m = max(abs(dy), abs(dx), 1)
            w = sum(0.5 ** (i - 1) / float((2 * i + 1) ** 2) for i in range(m, k + 1))
            out.append(((dy, dx), w))
    return tuple(out)


def _sc_kernel(cls_ref, pred_hbm, tgt_hbm, out_ref, pbuf, tbuf, sem,
               *, H, W, k, alpha, eps, TH, PAD, offsets):
    # cls_ref : (NC,) int32 SMEM (scalar prefetch) -- class id per grid class index
    # pred_hbm: (B, NC, Hpad, Wp) f32 logits, halo-padded in H (pl.ANY / HBM)
    # tgt_hbm : (B, Hpad, Wp)     int32 class map, halo-padded in H (pl.ANY / HBM)
    # out_ref : (1, 1, TH, 1) f32 per-row partial sums of bce * sum_offsets(w*valid/denom)
    # pbuf    : (BUF_H, Wp) f32 VMEM scratch (halo'd pred tile)
    # tbuf    : (BUF_H, Wp) i32 VMEM scratch (halo'd target tile)
    BUF_H, Wp = pbuf.shape
    b = pl.program_id(0)
    c = pl.program_id(1)
    h = pl.program_id(2)

    cls = cls_ref[c]                                  # scalar read before any DMA wait
    row0 = pl.multiple_of(h * TH, 8)                  # fetch start row in the padded image
                                                      # (== first global centre row)

    # Manual halo'd tile fetch: the (TH + 2*PAD)-row window overlaps between grid steps,
    # which an auto-pipelined BlockSpec cannot express.
    cp_p = pltpu.make_async_copy(pred_hbm.at[b, c, pl.ds(row0, BUF_H), :], pbuf, sem.at[0])
    cp_t = pltpu.make_async_copy(tgt_hbm.at[b, pl.ds(row0, BUF_H), :], tbuf, sem.at[1])
    cp_p.start()
    cp_t.start()

    wmap = dict(offsets)
    # Small per-tile validity vectors (NOT full-plane masks): col validity depends only
    # on dx, row validity only on dy (in global row coordinates of this tile).
    colv = lax.broadcasted_iota(jnp.int32, (1, Wp), 1)
    cval = {dx: ((colv + dx >= 0) & (colv + dx < W)).astype(jnp.float32)
            for dx in range(-k, k + 1)}
    grow = row0 + lax.broadcasted_iota(jnp.int32, (TH, 1), 0)     # global centre-row index
    rval = {dy: ((grow + dy >= 0) & (grow + dy < H)).astype(jnp.float32)
            for dy in range(-k, k + 1)}

    cp_p.wait()
    cp_t.wait()

    # Hoisted per-tile quantities (EUP work done once, not per offset).
    p_full = pbuf[...]                                  # (BUF_H, Wp) f32 logits (with halo)
    sig_full = jax.nn.sigmoid(p_full)
    t_full = (tbuf[...] == cls).astype(jnp.float32)     # one-vs-rest binary target

    p0 = p_full[PAD:PAD + TH, :]                        # aligned centre slices
    t0 = t_full[PAD:PAD + TH, :]
    s0 = sig_full[PAD:PAD + TH, :]
    msig0 = -s0
    # Fold centre-column validity into bce once: padded lanes then contribute exactly 0
    # to the in-kernel row reduction.
    bce = _bce_with_logits(p0, t0) * cval[0]

    acc = jnp.zeros((TH, Wp), jnp.float32)              # sum_offsets of w*valid/denom
    for dy in range(-k, k + 1):                         # 5 dy-groups (k=2), statically unrolled
        if dy == 0:
            p_dy, t_dy, s_dy = p0, t0, s0
        else:
            lo = PAD + dy                               # one sublane shift per dy-group
            p_dy = p_full[lo:lo + TH, :]
            t_dy = t_full[lo:lo + TH, :]
            s_dy = sig_full[lo:lo + TH, :]
        gacc = jnp.zeros((TH, Wp), jnp.float32)
        for dx in range(-k, k + 1):                     # lane rolls only inside the group
            if dx == 0:
                pn, tn, sn = p_dy, t_dy, s_dy
            else:
                sh = (-dx) % Wp
                pn = pltpu.roll(p_dy, sh, 1)
                tn = pltpu.roll(t_dy, sh, 1)
                sn = pltpu.roll(s_dy, sh, 1)
            joint = p0 * pn
            label = t0 * tn
            mutual = _bce_with_logits(joint, label)
            pairwise = jnp.exp(msig0 * sn)
            if alpha != 1.0:                            # skip the multiply when alpha == 1
                pairwise = alpha * pairwise
            recip = pl.reciprocal(mutual + pairwise + eps, approx=True)
            # (1, Wp) broadcast: static weight folded into the column-validity vector
            gacc = gacc + recip * (wmap[(dy, dx)] * cval[dx])
        acc = acc + rval[dy] * gacc                     # (TH, 1) row-validity broadcast

    # In-kernel lane reduction: per-row partial sums only (padded columns already zeroed
    # through bce); out-of-range centre rows are dropped by the wrapper.
    out_ref[0, 0] = jnp.sum(bce * acc, axis=1, keepdims=True)


def multiclass_one_vs_rest_sc_loss(pred, target, *, k=2, alpha=1.0,
                                   target_classes=(1, 2), eps=1e-6):
    """pred: [B, C, H, W] float logits.  target: [B, H, W] (or [B,1,H,W]) int class map."""
    if target.ndim == pred.ndim:
        assert target.shape[1] == 1
        target = target[:, 0]
    B, C, H, W = pred.shape
    NC = len(target_classes)
    class_ids = jnp.asarray(list(target_classes), dtype=jnp.int32)
    offsets = _offset_weights(k)

    # ---- static tiling geometry --------------------------------------------------
    PAD = 8 * ((k + 7) // 8)                    # sublane-aligned halo (>= k)
    TH = min(128, 8 * ((H + 7) // 8))           # rows per tile
    NH = -(-H // TH)                            # number of H tiles
    Hc = NH * TH
    Wp = 128 * ((W + 127) // 128)               # lane-aligned width
    BUF_H = TH + 2 * PAD
    Hpad = Hc + 2 * PAD

    # Gather only the NC target channels (not all C), cast once, pad H by halo + tile
    # round-up and W to a lane multiple.
    pred_sel = jnp.take(pred, class_ids, axis=1).astype(jnp.float32)        # [B, NC, H, W]
    pred_p = jnp.pad(pred_sel, ((0, 0), (0, 0), (PAD, Hpad - PAD - H), (0, Wp - W)))
    tgt_p = jnp.pad(target.astype(jnp.int32),
                    ((0, 0), (PAD, Hpad - PAD - H), (0, Wp - W)), constant_values=-1)

    # Border (masked_fill == 1.0) correction is data independent: computed statically
    # here instead of accumulating an acc_valid plane in the hot loop.
    w_total = sum(w for _, w in offsets)
    border = sum(w * max(0, H - abs(dy)) * max(0, W - abs(dx))
                 for (dy, dx), w in offsets)
    c_const = w_total - border / float(H * W)

    kernel = functools.partial(
        _sc_kernel, H=H, W=W, k=k, alpha=float(alpha), eps=float(eps),
        TH=TH, PAD=PAD, offsets=offsets)

    # VMEM sized from the actual footprint (two halo'd slabs + ~20 live (TH,Wp) planes),
    # with headroom, clamped to the v7x physical budget.
    vmem_est = 4 * Wp * (2 * BUF_H + 20 * TH)
    vmem_bytes = int(min(64 * 2**20, max(32 * 2**20, 2 * vmem_est)))

    rowsum = pl.pallas_call(
        kernel,
        out_shape=jax.ShapeDtypeStruct((B, NC, Hc, 1), jnp.float32),
        grid_spec=pltpu.PrefetchScalarGridSpec(
            num_scalar_prefetch=1,
            grid=(B, NC, NH),
            in_specs=[
                pl.BlockSpec(memory_space=pl.ANY),    # pred: halo'd rows fetched manually
                pl.BlockSpec(memory_space=pl.ANY),    # int target: idem
            ],
            out_specs=pl.BlockSpec((1, 1, TH, 1), lambda b, c, h, cls: (b, c, h, 0)),
            scratch_shapes=[
                pltpu.VMEM((BUF_H, Wp), jnp.float32),
                pltpu.VMEM((BUF_H, Wp), jnp.int32),
                pltpu.SemaphoreType.DMA((2,)),
            ]),
        compiler_params=pltpu.CompilerParams(
            dimension_semantics=("parallel", "parallel", "parallel"),
            vmem_limit_bytes=vmem_bytes,
        ),
    )(class_ids, pred_p, tgt_p)

    # per-class loss = mean over (B, H*W); equal pixel counts per class =>
    # overall loss = (sum of valid-row partial sums) / (NC*B*H*W) + static border term.
    return jnp.sum(rowsum[:, :, :H, 0]) / float(B * NC * H * W) + c_const


# ----------------------- pure-JAX reference (for checking) -----------------------
def _reference_loss(pred, target, *, k=2, alpha=1.0, target_classes=(1, 2), eps=1e-6):
    B, C, H, W = pred.shape
    total = 0.0
    for c in target_classes:
        pc_img = pred[:, c].astype(jnp.float32)                 # [B,H,W]
        tc_img = (target == c).astype(jnp.float32)              # [B,H,W]
        p_pad = jnp.pad(pc_img, ((0, 0), (k, k), (k, k)))
        t_pad = jnp.pad(tc_img, ((0, 0), (k, k), (k, k)))
        bce = _bce_with_logits(pc_img, tc_img)
        row = jnp.arange(H)[:, None] * jnp.ones((1, W), jnp.int32)
        col = jnp.ones((H, 1), jnp.int32) * jnp.arange(W)[None, :]
        tot = jnp.zeros((B, H, W), jnp.float32)
        for i in range(1, k + 1):
            area = (2 * i + 1) ** 2
            ring = jnp.zeros((B, H, W), jnp.float32)
            for dy in range(-i, i + 1):
                for dx in range(-i, i + 1):
                    pn = p_pad[:, k + dy:k + dy + H, k + dx:k + dx + W]
                    tn = t_pad[:, k + dy:k + dy + H, k + dx:k + dx + W]
                    mutual = _bce_with_logits(pc_img * pn, tc_img * tn)
                    pairwise = jnp.exp(-jax.nn.sigmoid(pc_img) * jax.nn.sigmoid(pn))
                    loss = bce / (mutual + alpha * pairwise + eps)
                    valid = ((row + dy >= 0) & (row + dy < H) &
                             (col + dx >= 0) & (col + dx < W))[None]
                    ring = ring + jnp.where(valid, loss, 1.0)
            tot = tot + (0.5 ** (i - 1)) * (ring / float(area))
        total = total + jnp.mean(tot)
    return total / len(target_classes)


if __name__ == "__main__":
    key = jax.random.PRNGKey(0)
    k1, k2 = jax.random.split(key)
    B, C, H, W = 2, 4, 16, 16
    pred = jax.random.normal(k1, (B, C, H, W), dtype=jnp.float32)
    target = jax.random.randint(k2, (B, H, W), 0, C, dtype=jnp.int32)

    loss = multiclass_one_vs_rest_sc_loss(pred, target, k=2, alpha=1.0,
                                          target_classes=(1, 2))
    loss = jax.block_until_ready(loss)

    ref = _reference_loss(pred, target, k=2, alpha=1.0, target_classes=(1, 2))
    # Tolerance accounts for the in-kernel approximate (EUP vrcp) reciprocal.
    assert jnp.allclose(loss, ref, rtol=1e-2, atol=1e-2), (loss, ref)

    print("KERNEL_OK")
</pallas_src>

<mosaic_0001>
module attributes {stable_mosaic.version = 11 : i64} {
  func.func @_sc_kernel(%arg0: i32, %arg1: i32, %arg2: i32, %arg3: memref<2xi32, #tpu.memory_space<smem>>, %arg4: memref<2x2x32x128xf32, #tpu.memory_space<any>>, %arg5: memref<2x32x128xi32, #tpu.memory_space<any>>, %arg6: memref<1x1x16x1xf32, #tpu.memory_space<vmem>>, %arg7: memref<32x128xf32, #tpu.memory_space<vmem>>, %arg8: memref<32x128xi32, #tpu.memory_space<vmem>>, %arg9: memref<2x!tpu.dma_semaphore, #tpu.memory_space<semaphore_mem>>) attributes {dimension_semantics = [#tpu.dimension_semantics<parallel>, #tpu.dimension_semantics<parallel>, #tpu.dimension_semantics<parallel>], iteration_bounds = array<i64: 2, 2, 1>, scalar_prefetch = 1 : i64, scratch_operands = 3 : i64, tpu.core_type = #tpu.core_type<tc>, window_params = [{}, {}, {transform_indices = @transform_2, window_bounds = array<i64: 1, 1, 16, 1>}]} {
    %0 = arith.index_cast %arg1 : i32 to index
    %1 = memref.load %arg3[%0] : memref<2xi32, #tpu.memory_space<smem>>
    %c16_i32 = arith.constant 16 : i32
    %2 = arith.muli %arg2, %c16_i32 : i32
    %3 = tpu.assume_multiple %2, 8 : i32
    %c0_i32 = arith.constant 0 : i32
    %c0_i32_0 = arith.constant 0 : i32
    %4 = tpu.memref_slice %arg4[%arg0, %arg1, %3, %c0_i32_0] : memref<2x2x32x128xf32, #tpu.memory_space<any>> -> memref<1x1x32x128xf32, #tpu.memory_space<any>>
    %5 = tpu.memref_squeeze %4 : memref<1x1x32x128xf32, #tpu.memory_space<any>> -> memref<32x128xf32, #tpu.memory_space<any>>
    %6 = tpu.memref_slice %arg9[%c0_i32] : memref<2x!tpu.dma_semaphore, #tpu.memory_space<semaphore_mem>> -> memref<1x!tpu.dma_semaphore, #tpu.memory_space<semaphore_mem>>
    %7 = tpu.memref_squeeze %6 : memref<1x!tpu.dma_semaphore, #tpu.memory_space<semaphore_mem>> -> memref<!tpu.dma_semaphore, #tpu.memory_space<semaphore_mem>>
    tpu.enqueue_dma source(%5 : memref<32x128xf32, #tpu.memory_space<any>>) target(%arg7 : memref<32x128xf32, #tpu.memory_space<vmem>>) target_semaphore(%7 : memref<!tpu.dma_semaphore, #tpu.memory_space<semaphore_mem>>)
    %c1_i32 = arith.constant 1 : i32
    %c0_i32_1 = arith.constant 0 : i32
    %8 = tpu.memref_slice %arg5[%arg0, %3, %c0_i32_1] : memref<2x32x128xi32, #tpu.memory_space<any>> -> memref<1x32x128xi32, #tpu.memory_space<any>>
    %9 = tpu.memref_squeeze %8 : memref<1x32x128xi32, #tpu.memory_space<any>> -> memref<32x128xi32, #tpu.memory_space<any>>
    %10 = tpu.memref_slice %arg9[%c1_i32] : memref<2x!tpu.dma_semaphore, #tpu.memory_space<semaphore_mem>> -> memref<1x!tpu.dma_semaphore, #tpu.memory_space<semaphore_mem>>
    %11 = tpu.memref_squeeze %10 : memref<1x!tpu.dma_semaphore, #tpu.memory_space<semaphore_mem>> -> memref<!tpu.dma_semaphore, #tpu.memory_space<semaphore_mem>>
    tpu.enqueue_dma source(%9 : memref<32x128xi32, #tpu.memory_space<any>>) target(%arg8 : memref<32x128xi32, #tpu.memory_space<vmem>>) target_semaphore(%11 : memref<!tpu.dma_semaphore, #tpu.memory_space<semaphore_mem>>)
    %12 = tpu.iota {dimensions = array<i32: 1>} : vector<1x128xi32>
    %c-2_i32 = arith.constant -2 : i32
    %13 = vector.broadcast %c-2_i32 : i32 to vector<1x128xi32>
    %14 = arith.addi %12, %13 : vector<1x128xi32>
    %c0_i32_2 = arith.constant 0 : i32
    %15 = vector.broadcast %c0_i32_2 : i32 to vector<1x128xi32>
    %16 = arith.cmpi sge, %14, %15 : vector<1x128xi32>
    %c-2_i32_3 = arith.constant -2 : i32
    %17 = vector.broadcast %c-2_i32_3 : i32 to vector<1x128xi32>
    %18 = arith.addi %12, %17 : vector<1x128xi32>
    %c16_i32_4 = arith.constant 16 : i32
    %19 = vector.broadcast %c16_i32_4 : i32 to vector<1x128xi32>
    %20 = arith.cmpi slt, %18, %19 : vector<1x128xi32>
    %21 = arith.andi %16, %20 : vector<1x128xi1>
    %22 = arith.extui %21 : vector<1x128xi1> to vector<1x128xi32>
    %23 = arith.sitofp %22 : vector<1x128xi32> to vector<1x128xf32>
    %c-1_i32 = arith.constant -1 : i32
    %24 = vector.broadcast %c-1_i32 : i32 to vector<1x128xi32>
    %25 = arith.addi %12, %24 : vector<1x128xi32>
    %c0_i32_5 = arith.constant 0 : i32
    %26 = vector.broadcast %c0_i32_5 : i32 to vector<1x128xi32>
    %27 = arith.cmpi sge, %25, %26 : vector<1x128xi32>
    %c-1_i32_6 = arith.constant -1 : i32
    %28 = vector.broadcast %c-1_i32_6 : i32 to vector<1x128xi32>
    %29 = arith.addi %12, %28 : vector<1x128xi32>
    %c16_i32_7 = arith.constant 16 : i32
    %30 = vector.broadcast %c16_i32_7 : i32 to vector<1x128xi32>
    %31 = arith.cmpi slt, %29, %30 : vector<1x128xi32>
    %32 = arith.andi %27, %31 : vector<1x128xi1>
    %33 = arith.extui %32 : vector<1x128xi1> to vector<1x128xi32>
    %34 = arith.sitofp %33 : vector<1x128xi32> to vector<1x128xf32>
    %c0_i32_8 = arith.constant 0 : i32
    %35 = vector.broadcast %c0_i32_8 : i32 to vector<1x128xi32>
    %36 = arith.addi %12, %35 : vector<1x128xi32>
    %c0_i32_9 = arith.constant 0 : i32
    %37 = vector.broadcast %c0_i32_9 : i32 to vector<1x128xi32>
    %38 = arith.cmpi sge, %36, %37 : vector<1x128xi32>
    %c0_i32_10 = arith.constant 0 : i32
    %39 = vector.broadcast %c0_i32_10 : i32 to vector<1x128xi32>
    %40 = arith.addi %12, %39 : vector<1x128xi32>
    %c16_i32_11 = arith.constant 16 : i32
    %41 = vector.broadcast %c16_i32_11 : i32 to vector<1x128xi32>
    %42 = arith.cmpi slt, %40, %41 : vector<1x128xi32>
    %43 = arith.andi %38, %42 : vector<1x128xi1>
    %44 = arith.extui %43 : vector<1x128xi1> to vector<1x128xi32>
    %45 = arith.sitofp %44 : vector<1x128xi32> to vector<1x128xf32>
    %c1_i32_12 = arith.constant 1 : i32
    %46 = vector.broadcast %c1_i32_12 : i32 to vector<1x128xi32>
    %47 = arith.addi %12, %46 : vector<1x128xi32>
    %c0_i32_13 = arith.constant 0 : i32
    %48 = vector.broadcast %c0_i32_13 : i32 to vector<1x128xi32>
    %49 = arith.cmpi sge, %47, %48 : vector<1x128xi32>
    %c1_i32_14 = arith.constant 1 : i32
    %50 = vector.broadcast %c1_i32_14 : i32 to vector<1x128xi32>
    %51 = arith.addi %12, %50 : vector<1x128xi32>
    %c16_i32_15 = arith.constant 16 : i32
    %52 = vector.broadcast %c16_i32_15 : i32 to vector<1x128xi32>
    %53 = arith.cmpi slt, %51, %52 : vector<1x128xi32>
    %54 = arith.andi %49, %53 : vector<1x128xi1>
    %55 = arith.extui %54 : vector<1x128xi1> to vector<1x128xi32>
    %56 = arith.sitofp %55 : vector<1x128xi32> to vector<1x128xf32>
    %c2_i32 = arith.constant 2 : i32
    %57 = vector.broadcast %c2_i32 : i32 to vector<1x128xi32>
    %58 = arith.addi %12, %57 : vector<1x128xi32>
    %c0_i32_16 = arith.constant 0 : i32
    %59 = vector.broadcast %c0_i32_16 : i32 to vector<1x128xi32>
    %60 = arith.cmpi sge, %58, %59 : vector<1x128xi32>
    %c2_i32_17 = arith.constant 2 : i32
    %61 = vector.broadcast %c2_i32_17 : i32 to vector<1x128xi32>
    %62 = arith.addi %12, %61 : vector<1x128xi32>
    %c16_i32_18 = arith.constant 16 : i32
    %63 = vector.broadcast %c16_i32_18 : i32 to vector<1x128xi32>
    %64 = arith.cmpi slt, %62, %63 : vector<1x128xi32>
    %65 = arith.andi %60, %64 : vector<1x128xi1>
    %66 = arith.extui %65 : vector<1x128xi1> to vector<1x128xi32>
    %67 = arith.sitofp %66 : vector<1x128xi32> to vector<1x128xf32>
    %68 = tpu.iota {dimensions = array<i32: 0>} : vector<16x1xi32>
    %69 = vector.broadcast %3 : i32 to vector<16x1xi32>
    %70 = arith.addi %69, %68 : vector<16x1xi32>
    %c-2_i32_19 = arith.constant -2 : i32
    %71 = vector.broadcast %c-2_i32_19 : i32 to vector<16x1xi32>
    %72 = arith.addi %70, %71 : vector<16x1xi32>
    %c0_i32_20 = arith.constant 0 : i32
    %73 = vector.broadcast %c0_i32_20 : i32 to vector<16x1xi32>
    %74 = arith.cmpi sge, %72, %73 : vector<16x1xi32>
    %c-2_i32_21 = arith.constant -2 : i32
    %75 = vector.broadcast %c-2_i32_21 : i32 to vector<16x1xi32>
    %76 = arith.addi %70, %75 : vector<16x1xi32>
    %c16_i32_22 = arith.constant 16 : i32
    %77 = vector.broadcast %c16_i32_22 : i32 to vector<16x1xi32>
    %78 = arith.cmpi slt, %76, %77 : vector<16x1xi32>
    %79 = arith.andi %74, %78 : vector<16x1xi1>
    %80 = arith.extui %79 : vector<16x1xi1> to vector<16x1xi32>
    %81 = arith.sitofp %80 : vector<16x1xi32> to vector<16x1xf32>
    %c-1_i32_23 = arith.constant -1 : i32
    %82 = vector.broadcast %c-1_i32_23 : i32 to vector<16x1xi32>
    %83 = arith.addi %70, %82 : vector<16x1xi32>
    %c0_i32_24 = arith.constant 0 : i32
    %84 = vector.broadcast %c0_i32_24 : i32 to vector<16x1xi32>
    %85 = arith.cmpi sge, %83, %84 : vector<16x1xi32>
    %c-1_i32_25 = arith.constant -1 : i32
    %86 = vector.broadcast %c-1_i32_25 : i32 to vector<16x1xi32>
    %87 = arith.addi %70, %86 : vector<16x1xi32>
    %c16_i32_26 = arith.constant 16 : i32
    %88 = vector.broadcast %c16_i32_26 : i32 to vector<16x1xi32>
    %89 = arith.cmpi slt, %87, %88 : vector<16x1xi32>
    %90 = arith.andi %85, %89 : vector<16x1xi1>
    %91 = arith.extui %90 : vector<16x1xi1> to vector<16x1xi32>
    %92 = arith.sitofp %91 : vector<16x1xi32> to vector<16x1xf32>
    %c0_i32_27 = arith.constant 0 : i32
    %93 = vector.broadcast %c0_i32_27 : i32 to vector<16x1xi32>
    %94 = arith.addi %70, %93 : vector<16x1xi32>
    %c0_i32_28 = arith.constant 0 : i32
    %95 = vector.broadcast %c0_i32_28 : i32 to vector<16x1xi32>
    %96 = arith.cmpi sge, %94, %95 : vector<16x1xi32>
    %c0_i32_29 = arith.constant 0 : i32
    %97 = vector.broadcast %c0_i32_29 : i32 to vector<16x1xi32>
    %98 = arith.addi %70, %97 : vector<16x1xi32>
    %c16_i32_30 = arith.constant 16 : i32
    %99 = vector.broadcast %c16_i32_30 : i32 to vector<16x1xi32>
    %100 = arith.cmpi slt, %98, %99 : vector<16x1xi32>
    %101 = arith.andi %96, %100 : vector<16x1xi1>
    %102 = arith.extui %101 : vector<16x1xi1> to vector<16x1xi32>
    %103 = arith.sitofp %102 : vector<16x1xi32> to vector<16x1xf32>
    %c1_i32_31 = arith.constant 1 : i32
    %104 = vector.broadcast %c1_i32_31 : i32 to vector<16x1xi32>
    %105 = arith.addi %70, %104 : vector<16x1xi32>
    %c0_i32_32 = arith.constant 0 : i32
    %106 = vector.broadcast %c0_i32_32 : i32 to vector<16x1xi32>
    %107 = arith.cmpi sge, %105, %106 : vector<16x1xi32>
    %c1_i32_33 = arith.constant 1 : i32
    %108 = vector.broadcast %c1_i32_33 : i32 to vector<16x1xi32>
    %109 = arith.addi %70, %108 : vector<16x1xi32>
    %c16_i32_34 = arith.constant 16 : i32
    %110 = vector.broadcast %c16_i32_34 : i32 to vector<16x1xi32>
    %111 = arith.cmpi slt, %109, %110 : vector<16x1xi32>
    %112 = arith.andi %107, %111 : vector<16x1xi1>
    %113 = arith.extui %112 : vector<16x1xi1> to vector<16x1xi32>
    %114 = arith.sitofp %113 : vector<16x1xi32> to vector<16x1xf32>
    %c2_i32_35 = arith.constant 2 : i32
    %115 = vector.broadcast %c2_i32_35 : i32 to vector<16x1xi32>
    %116 = arith.addi %70, %115 : vector<16x1xi32>
    %c0_i32_36 = arith.constant 0 : i32
    %117 = vector.broadcast %c0_i32_36 : i32 to vector<16x1xi32>
    %118 = arith.cmpi sge, %116, %117 : vector<16x1xi32>
    %c2_i32_37 = arith.constant 2 : i32
    %119 = vector.broadcast %c2_i32_37 : i32 to vector<16x1xi32>
    %120 = arith.addi %70, %119 : vector<16x1xi32>
    %c16_i32_38 = arith.constant 16 : i32
    %121 = vector.broadcast %c16_i32_38 : i32 to vector<16x1xi32>
    %122 = arith.cmpi slt, %120, %121 : vector<16x1xi32>
    %123 = arith.andi %118, %122 : vector<16x1xi1>
    %124 = arith.extui %123 : vector<16x1xi1> to vector<16x1xi32>
    %125 = arith.sitofp %124 : vector<16x1xi32> to vector<16x1xf32>
    %c0_i32_39 = arith.constant 0 : i32
    %c0_i32_40 = arith.constant 0 : i32
    %126 = tpu.memref_slice %arg4[%arg0, %arg1, %3, %c0_i32_40] : memref<2x2x32x128xf32, #tpu.memory_space<any>> -> memref<1x1x32x128xf32, #tpu.memory_space<any>>
    %127 = tpu.memref_squeeze %126 : memref<1x1x32x128xf32, #tpu.memory_space<any>> -> memref<32x128xf32, #tpu.memory_space<any>>
    %128 = tpu.memref_slice %arg9[%c0_i32_39] : memref<2x!tpu.dma_semaphore, #tpu.memory_space<semaphore_mem>> -> memref<1x!tpu.dma_semaphore, #tpu.memory_space<semaphore_mem>>
    %129 = tpu.memref_squeeze %128 : memref<1x!tpu.dma_semaphore, #tpu.memory_space<semaphore_mem>> -> memref<!tpu.dma_semaphore, #tpu.memory_space<semaphore_mem>>
    tpu.wait_dma2 semaphore(%129 : memref<!tpu.dma_semaphore, #tpu.memory_space<semaphore_mem>>) src(%127 : memref<32x128xf32, #tpu.memory_space<any>>) dst(%arg7 : memref<32x128xf32, #tpu.memory_space<vmem>>)
    %c1_i32_41 = arith.constant 1 : i32
    %c0_i32_42 = arith.constant 0 : i32
    %130 = tpu.memref_slice %arg5[%arg0, %3, %c0_i32_42] : memref<2x32x128xi32, #tpu.memory_space<any>> -> memref<1x32x128xi32, #tpu.memory_space<any>>
    %131 = tpu.memref_squeeze %130 : memref<1x32x128xi32, #tpu.memory_space<any>> -> memref<32x128xi32, #tpu.memory_space<any>>
    %132 = tpu.memref_slice %arg9[%c1_i32_41] : memref<2x!tpu.dma_semaphore, #tpu.memory_space<semaphore_mem>> -> memref<1x!tpu.dma_semaphore, #tpu.memory_space<semaphore_mem>>
    %133 = tpu.memref_squeeze %132 : memref<1x!tpu.dma_semaphore, #tpu.memory_space<semaphore_mem>> -> memref<!tpu.dma_semaphore, #tpu.memory_space<semaphore_mem>>
    tpu.wait_dma2 semaphore(%133 : memref<!tpu.dma_semaphore, #tpu.memory_space<semaphore_mem>>) src(%131 : memref<32x128xi32, #tpu.memory_space<any>>) dst(%arg8 : memref<32x128xi32, #tpu.memory_space<vmem>>)
    %c0 = arith.constant 0 : index
    %c0_43 = arith.constant 0 : index
    %134 = vector.load %arg7[%c0, %c0_43] : memref<32x128xf32, #tpu.memory_space<vmem>>, vector<32x128xf32>
    %135 = arith.negf %134 : vector<32x128xf32>
    %136 = math.exp %135 : vector<32x128xf32>
    %cst = arith.constant 1.000000e+00 : f32
    %137 = vector.broadcast %cst : f32 to vector<32x128xf32>
    %138 = arith.addf %137, %136 : vector<32x128xf32>
    %139 = arith.divf %137, %138 : vector<32x128xf32>
    %c0_44 = arith.constant 0 : index
    %c0_45 = arith.constant 0 : index
    %140 = vector.load %arg8[%c0_44, %c0_45] : memref<32x128xi32, #tpu.memory_space<vmem>>, vector<32x128xi32>
    %141 = vector.broadcast %1 : i32 to vector<32x128xi32>
    %142 = arith.cmpi eq, %140, %141 : vector<32x128xi32>
    %143 = arith.extui %142 : vector<32x128xi1> to vector<32x128xi32>
    %144 = arith.sitofp %143 : vector<32x128xi32> to vector<32x128xf32>
    %145 = vector.extract_strided_slice %134 {offsets = [8, 0], sizes = [16, 128], strides = [1, 1]} : vector<32x128xf32> to vector<16x128xf32>
    %146 = vector.extract_strided_slice %144 {offsets = [8, 0], sizes = [16, 128], strides = [1, 1]} : vector<32x128xf32> to vector<16x128xf32>
    %147 = vector.extract_strided_slice %139 {offsets = [8, 0], sizes = [16, 128], strides = [1, 1]} : vector<32x128xf32> to vector<16x128xf32>
    %cst_46 = arith.constant 0.000000e+00 : f32
    %148 = vector.broadcast %cst_46 : f32 to vector<16x128xf32>
    %149 = arith.subf %148, %147 : vector<16x128xf32>
    %cst_47 = arith.constant 0.000000e+00 : f32
    %150 = vector.broadcast %cst_47 : f32 to vector<16x128xf32>
    %151 = arith.maximumf %145, %150 : vector<16x128xf32>
    %152 = arith.mulf %145, %146 : vector<16x128xf32>
    %153 = arith.subf %151, %152 : vector<16x128xf32>
    %cst_48 = arith.constant 0.000000e+00 : f32
    %154 = vector.broadcast %cst_48 : f32 to vector<16x128xf32>
    %155 = arith.subf %154, %145 : vector<16x128xf32>
    %156 = arith.minimumf %145, %155 : vector<16x128xf32>
    %157 = math.exp %156 : vector<16x128xf32>
    %158 = math.log1p %157 : vector<16x128xf32>
    %159 = arith.addf %153, %158 : vector<16x128xf32>
    %160 = vector.broadcast %45 : vector<1x128xf32> to vector<16x128xf32>
    %161 = arith.mulf %159, %160 : vector<16x128xf32>
    %cst_49 = arith.constant 0.000000e+00 : f32
    %162 = vector.broadcast %cst_49 : f32 to vector<16x128xf32>
    %163 = vector.extract_strided_slice %134 {offsets = [6, 0], sizes = [16, 128], strides = [1, 1]} : vector<32x128xf32> to vector<16x128xf32>
    %164 = vector.extract_strided_slice %144 {offsets = [6, 0], sizes = [16, 128], strides = [1, 1]} : vector<32x128xf32> to vector<16x128xf32>
    %165 = vector.extract_strided_slice %139 {offsets = [6, 0], sizes = [16, 128], strides = [1, 1]} : vector<32x128xf32> to vector<16x128xf32>
    %cst_50 = arith.constant 0.000000e+00 : f32
    %166 = vector.broadcast %cst_50 : f32 to vector<16x128xf32>
    %c2_i32_51 = arith.constant 2 : i32
    %167 = tpu.dynamic_rotate %163 by %c2_i32_51 dim 1 : vector<16x128xf32>, i32 -> vector<16x128xf32>
    %c2_i32_52 = arith.constant 2 : i32
    %168 = tpu.dynamic_rotate %164 by %c2_i32_52 dim 1 : vector<16x128xf32>, i32 -> vector<16x128xf32>
    %c2_i32_53 = arith.constant 2 : i32
    %169 = tpu.dynamic_rotate %165 by %c2_i32_53 dim 1 : vector<16x128xf32>, i32 -> vector<16x128xf32>
    %170 = arith.mulf %145, %167 : vector<16x128xf32>
    %171 = arith.mulf %146, %168 : vector<16x128xf32>
    %cst_54 = arith.constant 0.000000e+00 : f32
    %172 = vector.broadcast %cst_54 : f32 to vector<16x128xf32>
    %173 = arith.maximumf %170, %172 : vector<16x128xf32>
    %174 = arith.mulf %170, %171 : vector<16x128xf32>
    %175 = arith.subf %173, %174 : vector<16x128xf32>
    %cst_55 = arith.constant 0.000000e+00 : f32
    %176 = vector.broadcast %cst_55 : f32 to vector<16x128xf32>
    %177 = arith.subf %176, %170 : vector<16x128xf32>
    %178 = arith.minimumf %170, %177 : vector<16x128xf32>
    %179 = math.exp %178 : vector<16x128xf32>
    %180 = math.log1p %179 : vector<16x128xf32>
    %181 = arith.addf %175, %180 : vector<16x128xf32>
    %182 = arith.mulf %149, %169 : vector<16x128xf32>
    %183 = math.exp %182 : vector<16x128xf32>
    %184 = arith.addf %181, %183 : vector<16x128xf32>
    %cst_56 = arith.constant 9.99999997E-7 : f32
    %185 = vector.broadcast %cst_56 : f32 to vector<16x128xf32>
    %186 = arith.addf %184, %185 : vector<16x128xf32>
    %187 = tpu.reciprocal %186 {approx = true} : vector<16x128xf32> -> vector<16x128xf32>
    %cst_57 = arith.constant 2.000000e-02 : f32
    %188 = vector.broadcast %cst_57 : f32 to vector<1x128xf32>
    %189 = arith.mulf %188, %23 : vector<1x128xf32>
    %190 = vector.broadcast %189 : vector<1x128xf32> to vector<16x128xf32>
    %191 = arith.mulf %187, %190 : vector<16x128xf32>
    %192 = arith.addf %166, %191 : vector<16x128xf32>
    %c1_i32_58 = arith.constant 1 : i32
    %193 = tpu.dynamic_rotate %163 by %c1_i32_58 dim 1 : vector<16x128xf32>, i32 -> vector<16x128xf32>
    %c1_i32_59 = arith.constant 1 : i32
    %194 = tpu.dynamic_rotate %164 by %c1_i32_59 dim 1 : vector<16x128xf32>, i32 -> vector<16x128xf32>
    %c1_i32_60 = arith.constant 1 : i32
    %195 = tpu.dynamic_rotate %165 by %c1_i32_60 dim 1 : vector<16x128xf32>, i32 -> vector<16x128xf32>
    %196 = arith.mulf %145, %193 : vector<16x128xf32>
    %197 = arith.mulf %146, %194 : vector<16x128xf32>
    %cst_61 = arith.constant 0.000000e+00 : f32
    %198 = vector.broadcast %cst_61 : f32 to vector<16x128xf32>
    %199 = arith.maximumf %196, %198 : vector<16x128xf32>
    %200 = arith.mulf %196, %197 : vector<16x128xf32>
    %201 = arith.subf %199, %200 : vector<16x128xf32>
    %cst_62 = arith.constant 0.000000e+00 : f32
    %202 = vector.broadcast %cst_62 : f32 to vector<16x128xf32>
    %203 = arith.subf %202, %196 : vector<16x128xf32>
    %204 = arith.minimumf %196, %203 : vector<16x128xf32>
    %205 = math.exp %204 : vector<16x128xf32>
    %206 = math.log1p %205 : vector<16x128xf32>
    %207 = arith.addf %201, %206 : vector<16x128xf32>
    %208 = arith.mulf %149, %195 : vector<16x128xf32>
    %209 = math.exp %208 : vector<16x128xf32>
    %210 = arith.addf %207, %209 : vector<16x128xf32>
    %cst_63 = arith.constant 9.99999997E-7 : f32
    %211 = vector.broadcast %cst_63 : f32 to vector<16x128xf32>
    %212 = arith.addf %210, %211 : vector<16x128xf32>
    %213 = tpu.reciprocal %212 {approx = true} : vector<16x128xf32> -> vector<16x128xf32>
    %cst_64 = arith.constant 2.000000e-02 : f32
    %214 = vector.broadcast %cst_64 : f32 to vector<1x128xf32>
    %215 = arith.mulf %214, %34 : vector<1x128xf32>
    %216 = vector.broadcast %215 : vector<1x128xf32> to vector<16x128xf32>
    %217 = arith.mulf %213, %216 : vector<16x128xf32>
    %218 = arith.addf %192, %217 : vector<16x128xf32>
    %219 = arith.mulf %145, %163 : vector<16x128xf32>
    %220 = arith.mulf %146, %164 : vector<16x128xf32>
    %cst_65 = arith.constant 0.000000e+00 : f32
    %221 = vector.broadcast %cst_65 : f32 to vector<16x128xf32>
    %222 = arith.maximumf %219, %221 : vector<16x128xf32>
    %223 = arith.mulf %219, %220 : vector<16x128xf32>
    %224 = arith.subf %222, %223 : vector<16x128xf32>
    %cst_66 = arith.constant 0.000000e+00 : f32
    %225 = vector.broadcast %cst_66 : f32 to vector<16x128xf32>
    %226 = arith.subf %225, %219 : vector<16x128xf32>
    %227 = arith.minimumf %219, %226 : vector<16x128xf32>
    %228 = math.exp %227 : vector<16x128xf32>
    %229 = math.log1p %228 : vector<16x128xf32>
    %230 = arith.addf %224, %229 : vector<16x128xf32>
    %231 = arith.mulf %149, %165 : vector<16x128xf32>
    %232 = math.exp %231 : vector<16x128xf32>
    %233 = arith.addf %230, %232 : vector<16x128xf32>
    %cst_67 = arith.constant 9.99999997E-7 : f32
    %234 = vector.broadcast %cst_67 : f32 to vector<16x128xf32>
    %235 = arith.addf %233, %234 : vector<16x128xf32>
    %236 = tpu.reciprocal %235 {approx = true} : vector<16x128xf32> -> vector<16x128xf32>
    %cst_68 = arith.constant 2.000000e-02 : f32
    %237 = vector.broadcast %cst_68 : f32 to vector<1x128xf32>
    %238 = arith.mulf %237, %45 : vector<1x128xf32>
    %239 = vector.broadcast %238 : vector<1x128xf32> to vector<16x128xf32>
    %240 = arith.mulf %236, %239 : vector<16x128xf32>
    %241 = arith.addf %218, %240 : vector<16x128xf32>
    %c127_i32 = arith.constant 127 : i32
    %242 = tpu.dynamic_rotate %163 by %c127_i32 dim 1 : vector<16x128xf32>, i32 -> vector<16x128xf32>
    %c127_i32_69 = arith.constant 127 : i32
    %243 = tpu.dynamic_rotate %164 by %c127_i32_69 dim 1 : vector<16x128xf32>, i32 -> vector<16x128xf32>
    %c127_i32_70 = arith.constant 127 : i32
    %244 = tpu.dynamic_rotate %165 by %c127_i32_70 dim 1 : vector<16x128xf32>, i32 -> vector<16x128xf32>
    %245 = arith.mulf %145, %242 : vector<16x128xf32>
    %246 = arith.mulf %146, %243 : vector<16x128xf32>
    %cst_71 = arith.constant 0.000000e+00 : f32
    %247 = vector.broadcast %cst_71 : f32 to vector<16x128xf32>
    %248 = arith.maximumf %245, %247 : vector<16x128xf32>
    %249 = arith.mulf %245, %246 : vector<16x128xf32>
    %250 = arith.subf %248, %249 : vector<16x128xf32>
    %cst_72 = arith.constant 0.000000e+00 : f32
    %251 = vector.broadcast %cst_72 : f32 to vector<16x128xf32>
    %252 = arith.subf %251, %245 : vector<16x128xf32>
    %253 = arith.minimumf %245, %252 : vector<16x128xf32>
    %254 = math.exp %253 : vector<16x128xf32>
    %255 = math.log1p %254 : vector<16x128xf32>
    %256 = arith.addf %250, %255 : vector<16x128xf32>
    %257 = arith.mulf %149, %244 : vector<16x128xf32>
    %258 = math.exp %257 : vector<16x128xf32>
    %259 = arith.addf %256, %258 : vector<16x128xf32>
    %cst_73 = arith.constant 9.99999997E-7 : f32
    %260 = vector.broadcast %cst_73 : f32 to vector<16x128xf32>
    %261 = arith.addf %259, %260 : vector<16x128xf32>
    %262 = tpu.reciprocal %261 {approx = true} : vector<16x128xf32> -> vector<16x128xf32>
    %cst_74 = arith.constant 2.000000e-02 : f32
    %263 = vector.broadcast %cst_74 : f32 to vector<1x128xf32>
    %264 = arith.mulf %263, %56 : vector<1x128xf32>
    %265 = vector.broadcast %264 : vector<1x128xf32> to vector<16x128xf32>
    %266 = arith.mulf %262, %265 : vector<16x128xf32>
    %267 = arith.addf %241, %266 : vector<16x128xf32>
    %c126_i32 = arith.constant 126 : i32
    %268 = tpu.dynamic_rotate %163 by %c126_i32 dim 1 : vector<16x128xf32>, i32 -> vector<16x128xf32>
    %c126_i32_75 = arith.constant 126 : i32
    %269 = tpu.dynamic_rotate %164 by %c126_i32_75 dim 1 : vector<16x128xf32>, i32 -> vector<16x128xf32>
    %c126_i32_76 = arith.constant 126 : i32
    %270 = tpu.dynamic_rotate %165 by %c126_i32_76 dim 1 : vector<16x128xf32>, i32 -> vector<16x128xf32>
    %271 = arith.mulf %145, %268 : vector<16x128xf32>
    %272 = arith.mulf %146, %269 : vector<16x128xf32>
    %cst_77 = arith.constant 0.000000e+00 : f32
    %273 = vector.broadcast %cst_77 : f32 to vector<16x128xf32>
    %274 = arith.maximumf %271, %273 : vector<16x128xf32>
    %275 = arith.mulf %271, %272 : vector<16x128xf32>
    %276 = arith.subf %274, %275 : vector<16x128xf32>
    %cst_78 = arith.constant 0.000000e+00 : f32
    %277 = vector.broadcast %cst_78 : f32 to vector<16x128xf32>
    %278 = arith.subf %277, %271 : vector<16x128xf32>
    %279 = arith.minimumf %271, %278 : vector<16x128xf32>
    %280 = math.exp %279 : vector<16x128xf32>
    %281 = math.log1p %280 : vector<16x128xf32>
    %282 = arith.addf %276, %281 : vector<16x128xf32>
    %283 = arith.mulf %149, %270 : vector<16x128xf32>
    %284 = math.exp %283 : vector<16x128xf32>
    %285 = arith.addf %282, %284 : vector<16x128xf32>
    %cst_79 = arith.constant 9.99999997E-7 : f32
    %286 = vector.broadcast %cst_79 : f32 to vector<16x128xf32>
    %287 = arith.addf %285, %286 : vector<16x128xf32>
    %288 = tpu.reciprocal %287 {approx = true} : vector<16x128xf32> -> vector<16x128xf32>
    %cst_80 = arith.constant 2.000000e-02 : f32
    %289 = vector.broadcast %cst_80 : f32 to vector<1x128xf32>
    %290 = arith.mulf %289, %67 : vector<1x128xf32>
    %291 = vector.broadcast %290 : vector<1x128xf32> to vector<16x128xf32>
    %292 = arith.mulf %288, %291 : vector<16x128xf32>
    %293 = arith.addf %267, %292 : vector<16x128xf32>
    %294 = vector.broadcast %81 : vector<16x1xf32> to vector<16x128xf32>
    %295 = arith.mulf %294, %293 : vector<16x128xf32>
    %296 = arith.addf %162, %295 : vector<16x128xf32>
    %297 = vector.extract_strided_slice %134 {offsets = [7, 0], sizes = [16, 128], strides = [1, 1]} : vector<32x128xf32> to vector<16x128xf32>
    %298 = vector.extract_strided_slice %144 {offsets = [7, 0], sizes = [16, 128], strides = [1, 1]} : vector<32x128xf32> to vector<16x128xf32>
    %299 = vector.extract_strided_slice %139 {offsets = [7, 0], sizes = [16, 128], strides = [1, 1]} : vector<32x128xf32> to vector<16x128xf32>
    %cst_81 = arith.constant 0.000000e+00 : f32
    %300 = vector.broadcast %cst_81 : f32 to vector<16x128xf32>
    %c2_i32_82 = arith.constant 2 : i32
    %301 = tpu.dynamic_rotate %297 by %c2_i32_82 dim 1 : vector<16x128xf32>, i32 -> vector<16x128xf32>
    %c2_i32_83 = arith.constant 2 : i32
    %302 = tpu.dynamic_rotate %298 by %c2_i32_83 dim 1 : vector<16x128xf32>, i32 -> vector<16x128xf32>
    %c2_i32_84 = arith.constant 2 : i32
    %303 = tpu.dynamic_rotate %299 by %c2_i32_84 dim 1 : vector<16x128xf32>, i32 -> vector<16x128xf32>
    %304 = arith.mulf %145, %301 : vector<16x128xf32>
    %305 = arith.mulf %146, %302 : vector<16x128xf32>
    %cst_85 = arith.constant 0.000000e+00 : f32
    %306 = vector.broadcast %cst_85 : f32 to vector<16x128xf32>
    %307 = arith.maximumf %304, %306 : vector<16x128xf32>
    %308 = arith.mulf %304, %305 : vector<16x128xf32>
    %309 = arith.subf %307, %308 : vector<16x128xf32>
    %cst_86 = arith.constant 0.000000e+00 : f32
    %310 = vector.broadcast %cst_86 : f32 to vector<16x128xf32>
    %311 = arith.subf %310, %304 : vector<16x128xf32>
    %312 = arith.minimumf %304, %311 : vector<16x128xf32>
    %313 = math.exp %312 : vector<16x128xf32>
    %314 = math.log1p %313 : vector<16x128xf32>
    %315 = arith.addf %309, %314 : vector<16x128xf32>
    %316 = arith.mulf %149, %303 : vector<16x128xf32>
    %317 = math.exp %316 : vector<16x128xf32>
    %318 = arith.addf %315, %317 : vector<16x128xf32>
    %cst_87 = arith.constant 9.99999997E-7 : f32
    %319 = vector.broadcast %cst_87 : f32 to vector<16x128xf32>
    %320 = arith.addf %318, %319 : vector<16x128xf32>
    %321 = tpu.reciprocal %320 {approx = true} : vector<16x128xf32> -> vector<16x128xf32>
    %cst_88 = arith.constant 2.000000e-02 : f32
    %322 = vector.broadcast %cst_88 : f32 to vector<1x128xf32>
    %323 = arith.mulf %322, %23 : vector<1x128xf32>
    %324 = vector.broadcast %323 : vector<1x128xf32> to vector<16x128xf32>
    %325 = arith.mulf %321, %324 : vector<16x128xf32>
    %326 = arith.addf %300, %325 : vector<16x128xf32>
    %c1_i32_89 = arith.constant 1 : i32
    %327 = tpu.dynamic_rotate %297 by %c1_i32_89 dim 1 : vector<16x128xf32>, i32 -> vector<16x128xf32>
    %c1_i32_90 = arith.constant 1 : i32
    %328 = tpu.dynamic_rotate %298 by %c1_i32_90 dim 1 : vector<16x128xf32>, i32 -> vector<16x128xf32>
    %c1_i32_91 = arith.constant 1 : i32
    %329 = tpu.dynamic_rotate %299 by %c1_i32_91 dim 1 : vector<16x128xf32>, i32 -> vector<16x128xf32>
    %330 = arith.mulf %145, %327 : vector<16x128xf32>
    %331 = arith.mulf %146, %328 : vector<16x128xf32>
    %cst_92 = arith.constant 0.000000e+00 : f32
    %332 = vector.broadcast %cst_92 : f32 to vector<16x128xf32>
    %333 = arith.maximumf %330, %332 : vector<16x128xf32>
    %334 = arith.mulf %330, %331 : vector<16x128xf32>
    %335 = arith.subf %333, %334 : vector<16x128xf32>
    %cst_93 = arith.constant 0.000000e+00 : f32
    %336 = vector.broadcast %cst_93 : f32 to vector<16x128xf32>
    %337 = arith.subf %336, %330 : vector<16x128xf32>
    %338 = arith.minimumf %330, %337 : vector<16x128xf32>
    %339 = math.exp %338 : vector<16x128xf32>
    %340 = math.log1p %339 : vector<16x128xf32>
    %341 = arith.addf %335, %340 : vector<16x128xf32>
    %342 = arith.mulf %149, %329 : vector<16x128xf32>
    %343 = math.exp %342 : vector<16x128xf32>
    %344 = arith.addf %341, %343 : vector<16x128xf32>
    %cst_94 = arith.constant 9.99999997E-7 : f32
    %345 = vector.broadcast %cst_94 : f32 to vector<16x128xf32>
    %346 = arith.addf %344, %345 : vector<16x128xf32>
    %347 = tpu.reciprocal %346 {approx = true} : vector<16x128xf32> -> vector<16x128xf32>
    %cst_95 = arith.constant 0.131111115 : f32
    %348 = vector.broadcast %cst_95 : f32 to vector<1x128xf32>
    %349 = arith.mulf %348, %34 : vector<1x128xf32>
    %350 = vector.broadcast %349 : vector<1x128xf32> to vector<16x128xf32>
    %351 = arith.mulf %347, %350 : vector<16x128xf32>
    %352 = arith.addf %326, %351 : vector<16x128xf32>
    %353 = arith.mulf %145, %297 : vector<16x128xf32>
    %354 = arith.mulf %146, %298 : vector<16x128xf32>
    %cst_96 = arith.constant 0.000000e+00 : f32
    %355 = vector.broadcast %cst_96 : f32 to vector<16x128xf32>
    %356 = arith.maximumf %353, %355 : vector<16x128xf32>
    %357 = arith.mulf %353, %354 : vector<16x128xf32>
    %358 = arith.subf %356, %357 : vector<16x128xf32>
    %cst_97 = arith.constant 0.000000e+00 : f32
    %359 = vector.broadcast %cst_97 : f32 to vector<16x128xf32>
    %360 = arith.subf %359, %353 : vector<16x128xf32>
    %361 = arith.minimumf %353, %360 : vector<16x128xf32>
    %362 = math.exp %361 : vector<16x128xf32>
    %363 = math.log1p %362 : vector<16x128xf32>
    %364 = arith.addf %358, %363 : vector<16x128xf32>
    %365 = arith.mulf %149, %299 : vector<16x128xf32>
    %366 = math.exp %365 : vector<16x128xf32>
    %367 = arith.addf %364, %366 : vector<16x128xf32>
    %cst_98 = arith.constant 9.99999997E-7 : f32
    %368 = vector.broadcast %cst_98 : f32 to vector<16x128xf32>
    %369 = arith.addf %367, %368 : vector<16x128xf32>
    %370 = tpu.reciprocal %369 {approx = true} : vector<16x128xf32> -> vector<16x128xf32>
    %cst_99 = arith.constant 0.131111115 : f32
    %371 = vector.broadcast %cst_99 : f32 to vector<1x128xf32>
    %372 = arith.mulf %371, %45 : vector<1x128xf32>
    %373 = vector.broadcast %372 : vector<1x128xf32> to vector<16x128xf32>
    %374 = arith.mulf %370, %373 : vector<16x128xf32>
    %375 = arith.addf %352, %374 : vector<16x128xf32>
    %c127_i32_100 = arith.constant 127 : i32
    %376 = tpu.dynamic_rotate %297 by %c127_i32_100 dim 1 : vector<16x128xf32>, i32 -> vector<16x128xf32>
    %c127_i32_101 = arith.constant 127 : i32
    %377 = tpu.dynamic_rotate %298 by %c127_i32_101 dim 1 : vector<16x128xf32>, i32 -> vector<16x128xf32>
    %c127_i32_102 = arith.constant 127 : i32
    %378 = tpu.dynamic_rotate %299 by %c127_i32_102 dim 1 : vector<16x128xf32>, i32 -> vector<16x128xf32>
    %379 = arith.mulf %145, %376 : vector<16x128xf32>
    %380 = arith.mulf %146, %377 : vector<16x128xf32>
    %cst_103 = arith.constant 0.000000e+00 : f32
    %381 = vector.broadcast %cst_103 : f32 to vector<16x128xf32>
    %382 = arith.maximumf %379, %381 : vector<16x128xf32>
    %383 = arith.mulf %379, %380 : vector<16x128xf32>
    %384 = arith.subf %382, %383 : vector<16x128xf32>
    %cst_104 = arith.constant 0.000000e+00 : f32
    %385 = vector.broadcast %cst_104 : f32 to vector<16x128xf32>
    %386 = arith.subf %385, %379 : vector<16x128xf32>
    %387 = arith.minimumf %379, %386 : vector<16x128xf32>
    %388 = math.exp %387 : vector<16x128xf32>
    %389 = math.log1p %388 : vector<16x128xf32>
    %390 = arith.addf %384, %389 : vector<16x128xf32>
    %391 = arith.mulf %149, %378 : vector<16x128xf32>
    %392 = math.exp %391 : vector<16x128xf32>
    %393 = arith.addf %390, %392 : vector<16x128xf32>
    %cst_105 = arith.constant 9.99999997E-7 : f32
    %394 = vector.broadcast %cst_105 : f32 to vector<16x128xf32>
    %395 = arith.addf %393, %394 : vector<16x128xf32>
    %396 = tpu.reciprocal %395 {approx = true} : vector<16x128xf32> -> vector<16x128xf32>
    %cst_106 = arith.constant 0.131111115 : f32
    %397 = vector.broadcast %cst_106 : f32 to vector<1x128xf32>
    %398 = arith.mulf %397, %56 : vector<1x128xf32>
    %399 = vector.broadcast %398 : vector<1x128xf32> to vector<16x128xf32>
    %400 = arith.mulf %396, %399 : vector<16x128xf32>
    %401 = arith.addf %375, %400 : vector<16x128xf32>
    %c126_i32_107 = arith.constant 126 : i32
    %402 = tpu.dynamic_rotate %297 by %c126_i32_107 dim 1 : vector<16x128xf32>, i32 -> vector<16x128xf32>
    %c126_i32_108 = arith.constant 126 : i32
    %403 = tpu.dynamic_rotate %298 by %c126_i32_108 dim 1 : vector<16x128xf32>, i32 -> vector<16x128xf32>
    %c126_i32_109 = arith.constant 126 : i32
    %404 = tpu.dynamic_rotate %299 by %c126_i32_109 dim 1 : vector<16x128xf32>, i32 -> vector<16x128xf32>
    %405 = arith.mulf %145, %402 : vector<16x128xf32>
    %406 = arith.mulf %146, %403 : vector<16x128xf32>
    %cst_110 = arith.constant 0.000000e+00 : f32
    %407 = vector.broadcast %cst_110 : f32 to vector<16x128xf32>
    %408 = arith.maximumf %405, %407 : vector<16x128xf32>
    %409 = arith.mulf %405, %406 : vector<16x128xf32>
    %410 = arith.subf %408, %409 : vector<16x128xf32>
    %cst_111 = arith.constant 0.000000e+00 : f32
    %411 = vector.broadcast %cst_111 : f32 to vector<16x128xf32>
    %412 = arith.subf %411, %405 : vector<16x128xf32>
    %413 = arith.minimumf %405, %412 : vector<16x128xf32>
    %414 = math.exp %413 : vector<16x128xf32>
    %415 = math.log1p %414 : vector<16x128xf32>
    %416 = arith.addf %410, %415 : vector<16x128xf32>
    %417 = arith.mulf %149, %404 : vector<16x128xf32>
    %418 = math.exp %417 : vector<16x128xf32>
    %419 = arith.addf %416, %418 : vector<16x128xf32>
    %cst_112 = arith.constant 9.99999997E-7 : f32
    %420 = vector.broadcast %cst_112 : f32 to vector<16x128xf32>
    %421 = arith.addf %419, %420 : vector<16x128xf32>
    %422 = tpu.reciprocal %421 {approx = true} : vector<16x128xf32> -> vector<16x128xf32>
    %cst_113 = arith.constant 2.000000e-02 : f32
    %423 = vector.broadcast %cst_113 : f32 to vector<1x128xf32>
    %424 = arith.mulf %423, %67 : vector<1x128xf32>
    %425 = vector.broadcast %424 : vector<1x128xf32> to vector<16x128xf32>
    %426 = arith.mulf %422, %425 : vector<16x128xf32>
    %427 = arith.addf %401, %426 : vector<16x128xf32>
    %428 = vector.broadcast %92 : vector<16x1xf32> to vector<16x128xf32>
    %429 = arith.mulf %428, %427 : vector<16x128xf32>
    %430 = arith.addf %296, %429 : vector<16x128xf32>
    %cst_114 = arith.constant 0.000000e+00 : f32
    %431 = vector.broadcast %cst_114 : f32 to vector<16x128xf32>
    %c2_i32_115 = arith.constant 2 : i32
    %432 = tpu.dynamic_rotate %145 by %c2_i32_115 dim 1 : vector<16x128xf32>, i32 -> vector<16x128xf32>
    %c2_i32_116 = arith.constant 2 : i32
    %433 = tpu.dynamic_rotate %146 by %c2_i32_116 dim 1 : vector<16x128xf32>, i32 -> vector<16x128xf32>
    %c2_i32_117 = arith.constant 2 : i32
    %434 = tpu.dynamic_rotate %147 by %c2_i32_117 dim 1 : vector<16x128xf32>, i32 -> vector<16x128xf32>
    %435 = arith.mulf %145, %432 : vector<16x128xf32>
    %436 = arith.mulf %146, %433 : vector<16x128xf32>
    %cst_118 = arith.constant 0.000000e+00 : f32
    %437 = vector.broadcast %cst_118 : f32 to vector<16x128xf32>
    %438 = arith.maximumf %435, %437 : vector<16x128xf32>
    %439 = arith.mulf %435, %436 : vector<16x128xf32>
    %440 = arith.subf %438, %439 : vector<16x128xf32>
    %cst_119 = arith.constant 0.000000e+00 : f32
    %441 = vector.broadcast %cst_119 : f32 to vector<16x128xf32>
    %442 = arith.subf %441, %435 : vector<16x128xf32>
    %443 = arith.minimumf %435, %442 : vector<16x128xf32>
    %444 = math.exp %443 : vector<16x128xf32>
    %445 = math.log1p %444 : vector<16x128xf32>
    %446 = arith.addf %440, %445 : vector<16x128xf32>
    %447 = arith.mulf %149, %434 : vector<16x128xf32>
    %448 = math.exp %447 : vector<16x128xf32>
    %449 = arith.addf %446, %448 : vector<16x128xf32>
    %cst_120 = arith.constant 9.99999997E-7 : f32
    %450 = vector.broadcast %cst_120 : f32 to vector<16x128xf32>
    %451 = arith.addf %449, %450 : vector<16x128xf32>
    %452 = tpu.reciprocal %451 {approx = true} : vector<16x128xf32> -> vector<16x128xf32>
    %cst_121 = arith.constant 2.000000e-02 : f32
    %453 = vector.broadcast %cst_121 : f32 to vector<1x128xf32>
    %454 = arith.mulf %453, %23 : vector<1x128xf32>
    %455 = vector.broadcast %454 : vector<1x128xf32> to vector<16x128xf32>
    %456 = arith.mulf %452, %455 : vector<16x128xf32>
    %457 = arith.addf %431, %456 : vector<16x128xf32>
    %c1_i32_122 = arith.constant 1 : i32
    %458 = tpu.dynamic_rotate %145 by %c1_i32_122 dim 1 : vector<16x128xf32>, i32 -> vector<16x128xf32>
    %c1_i32_123 = arith.constant 1 : i32
    %459 = tpu.dynamic_rotate %146 by %c1_i32_123 dim 1 : vector<16x128xf32>, i32 -> vector<16x128xf32>
    %c1_i32_124 = arith.constant 1 : i32
    %460 = tpu.dynamic_rotate %147 by %c1_i32_124 dim 1 : vector<16x128xf32>, i32 -> vector<16x128xf32>
    %461 = arith.mulf %145, %458 : vector<16x128xf32>
    %462 = arith.mulf %146, %459 : vector<16x128xf32>
    %cst_125 = arith.constant 0.000000e+00 : f32
    %463 = vector.broadcast %cst_125 : f32 to vector<16x128xf32>
    %464 = arith.maximumf %461, %463 : vector<16x128xf32>
    %465 = arith.mulf %461, %462 : vector<16x128xf32>
    %466 = arith.subf %464, %465 : vector<16x128xf32>
    %cst_126 = arith.constant 0.000000e+00 : f32
    %467 = vector.broadcast %cst_126 : f32 to vector<16x128xf32>
    %468 = arith.subf %467, %461 : vector<16x128xf32>
    %469 = arith.minimumf %461, %468 : vector<16x128xf32>
    %470 = math.exp %469 : vector<16x128xf32>
    %471 = math.log1p %470 : vector<16x128xf32>
    %472 = arith.addf %466, %471 : vector<16x128xf32>
    %473 = arith.mulf %149, %460 : vector<16x128xf32>
    %474 = math.exp %473 : vector<16x128xf32>
    %475 = arith.addf %472, %474 : vector<16x128xf32>
    %cst_127 = arith.constant 9.99999997E-7 : f32
    %476 = vector.broadcast %cst_127 : f32 to vector<16x128xf32>
    %477 = arith.addf %475, %476 : vector<16x128xf32>
    %478 = tpu.reciprocal %477 {approx = true} : vector<16x128xf32> -> vector<16x128xf32>
    %cst_128 = arith.constant 0.131111115 : f32
    %479 = vector.broadcast %cst_128 : f32 to vector<1x128xf32>
    %480 = arith.mulf %479, %34 : vector<1x128xf32>
    %481 = vector.broadcast %480 : vector<1x128xf32> to vector<16x128xf32>
    %482 = arith.mulf %478, %481 : vector<16x128xf32>
    %483 = arith.addf %457, %482 : vector<16x128xf32>
    %484 = arith.mulf %145, %145 : vector<16x128xf32>
    %485 = arith.mulf %146, %146 : vector<16x128xf32>
    %cst_129 = arith.constant 0.000000e+00 : f32
    %486 = vector.broadcast %cst_129 : f32 to vector<16x128xf32>
    %487 = arith.maximumf %484, %486 : vector<16x128xf32>
    %488 = arith.mulf %484, %485 : vector<16x128xf32>
    %489 = arith.subf %487, %488 : vector<16x128xf32>
    %cst_130 = arith.constant 0.000000e+00 : f32
    %490 = vector.broadcast %cst_130 : f32 to vector<16x128xf32>
    %491 = arith.subf %490, %484 : vector<16x128xf32>
    %492 = arith.minimumf %484, %491 : vector<16x128xf32>
    %493 = math.exp %492 : vector<16x128xf32>
    %494 = math.log1p %493 : vector<16x128xf32>
    %495 = arith.addf %489, %494 : vector<16x128xf32>
    %496 = arith.mulf %149, %147 : vector<16x128xf32>
    %497 = math.exp %496 : vector<16x128xf32>
    %498 = arith.addf %495, %497 : vector<16x128xf32>
    %cst_131 = arith.constant 9.99999997E-7 : f32
    %499 = vector.broadcast %cst_131 : f32 to vector<16x128xf32>
    %500 = arith.addf %498, %499 : vector<16x128xf32>
    %501 = tpu.reciprocal %500 {approx = true} : vector<16x128xf32> -> vector<16x128xf32>
    %cst_132 = arith.constant 0.131111115 : f32
    %502 = vector.broadcast %cst_132 : f32 to vector<1x128xf32>
    %503 = arith.mulf %502, %45 : vector<1x128xf32>
    %504 = vector.broadcast %503 : vector<1x128xf32> to vector<16x128xf32>
    %505 = arith.mulf %501, %504 : vector<16x128xf32>
    %506 = arith.addf %483, %505 : vector<16x128xf32>
    %c127_i32_133 = arith.constant 127 : i32
    %507 = tpu.dynamic_rotate %145 by %c127_i32_133 dim 1 : vector<16x128xf32>, i32 -> vector<16x128xf32>
    %c127_i32_134 = arith.constant 127 : i32
    %508 = tpu.dynamic_rotate %146 by %c127_i32_134 dim 1 : vector<16x128xf32>, i32 -> vector<16x128xf32>
    %c127_i32_135 = arith.constant 127 : i32
    %509 = tpu.dynamic_rotate %147 by %c127_i32_135 dim 1 : vector<16x128xf32>, i32 -> vector<16x128xf32>
    %510 = arith.mulf %145, %507 : vector<16x128xf32>
    %511 = arith.mulf %146, %508 : vector<16x128xf32>
    %cst_136 = arith.constant 0.000000e+00 : f32
    %512 = vector.broadcast %cst_136 : f32 to vector<16x128xf32>
    %513 = arith.maximumf %510, %512 : vector<16x128xf32>
    %514 = arith.mulf %510, %511 : vector<16x128xf32>
    %515 = arith.subf %513, %514 : vector<16x128xf32>
    %cst_137 = arith.constant 0.000000e+00 : f32
    %516 = vector.broadcast %cst_137 : f32 to vector<16x128xf32>
    %517 = arith.subf %516, %510 : vector<16x128xf32>
    %518 = arith.minimumf %510, %517 : vector<16x128xf32>
    %519 = math.exp %518 : vector<16x128xf32>
    %520 = math.log1p %519 : vector<16x128xf32>
    %521 = arith.addf %515, %520 : vector<16x128xf32>
    %522 = arith.mulf %149, %509 : vector<16x128xf32>
    %523 = math.exp %522 : vector<16x128xf32>
    %524 = arith.addf %521, %523 : vector<16x128xf32>
    %cst_138 = arith.constant 9.99999997E-7 : f32
    %525 = vector.broadcast %cst_138 : f32 to vector<16x128xf32>
    %526 = arith.addf %524, %525 : vector<16x128xf32>
    %527 = tpu.reciprocal %526 {approx = true} : vector<16x128xf32> -> vector<16x128xf32>
    %cst_139 = arith.constant 0.131111115 : f32
    %528 = vector.broadcast %cst_139 : f32 to vector<1x128xf32>
    %529 = arith.mulf %528, %56 : vector<1x128xf32>
    %530 = vector.broadcast %529 : vector<1x128xf32> to vector<16x128xf32>
    %531 = arith.mulf %527, %530 : vector<16x128xf32>
    %532 = arith.addf %506, %531 : vector<16x128xf32>
    %c126_i32_140 = arith.constant 126 : i32
    %533 = tpu.dynamic_rotate %145 by %c126_i32_140 dim 1 : vector<16x128xf32>, i32 -> vector<16x128xf32>
    %c126_i32_141 = arith.constant 126 : i32
    %534 = tpu.dynamic_rotate %146 by %c126_i32_141 dim 1 : vector<16x128xf32>, i32 -> vector<16x128xf32>
    %c126_i32_142 = arith.constant 126 : i32
    %535 = tpu.dynamic_rotate %147 by %c126_i32_142 dim 1 : vector<16x128xf32>, i32 -> vector<16x128xf32>
    %536 = arith.mulf %145, %533 : vector<16x128xf32>
    %537 = arith.mulf %146, %534 : vector<16x128xf32>
    %cst_143 = arith.constant 0.000000e+00 : f32
    %538 = vector.broadcast %cst_143 : f32 to vector<16x128xf32>
    %539 = arith.maximumf %536, %538 : vector<16x128xf32>
    %540 = arith.mulf %536, %537 : vector<16x128xf32>
    %541 = arith.subf %539, %540 : vector<16x128xf32>
    %cst_144 = arith.constant 0.000000e+00 : f32
    %542 = vector.broadcast %cst_144 : f32 to vector<16x128xf32>
    %543 = arith.subf %542, %536 : vector<16x128xf32>
    %544 = arith.minimumf %536, %543 : vector<16x128xf32>
    %545 = math.exp %544 : vector<16x128xf32>
    %546 = math.log1p %545 : vector<16x128xf32>
    %547 = arith.addf %541, %546 : vector<16x128xf32>
    %548 = arith.mulf %149, %535 : vector<16x128xf32>
    %549 = math.exp %548 : vector<16x128xf32>
    %550 = arith.addf %547, %549 : vector<16x128xf32>
    %cst_145 = arith.constant 9.99999997E-7 : f32
    %551 = vector.broadcast %cst_145 : f32 to vector<16x128xf32>
    %552 = arith.addf %550, %551 : vector<16x128xf32>
    %553 = tpu.reciprocal %552 {approx = true} : vector<16x128xf32> -> vector<16x128xf32>
    %cst_146 = arith.constant 2.000000e-02 : f32
    %554 = vector.broadcast %cst_146 : f32 to vector<1x128xf32>
    %555 = arith.mulf %554, %67 : vector<1x128xf32>
    %556 = vector.broadcast %555 : vector<1x128xf32> to vector<16x128xf32>
    %557 = arith.mulf %553, %556 : vector<16x128xf32>
    %558 = arith.addf %532, %557 : vector<16x128xf32>
    %559 = vector.broadcast %103 : vector<16x1xf32> to vector<16x128xf32>
    %560 = arith.mulf %559, %558 : vector<16x128xf32>
    %561 = arith.addf %430, %560 : vector<16x128xf32>
    %562 = vector.extract_strided_slice %134 {offsets = [9, 0], sizes = [16, 128], strides = [1, 1]} : vector<32x128xf32> to vector<16x128xf32>
    %563 = vector.extract_strided_slice %144 {offsets = [9, 0], sizes = [16, 128], strides = [1, 1]} : vector<32x128xf32> to vector<16x128xf32>
    %564 = vector.extract_strided_slice %139 {offsets = [9, 0], sizes = [16, 128], strides = [1, 1]} : vector<32x128xf32> to vector<16x128xf32>
    %cst_147 = arith.constant 0.000000e+00 : f32
    %565 = vector.broadcast %cst_147 : f32 to vector<16x128xf32>
    %c2_i32_148 = arith.constant 2 : i32
    %566 = tpu.dynamic_rotate %562 by %c2_i32_148 dim 1 : vector<16x128xf32>, i32 -> vector<16x128xf32>
    %c2_i32_149 = arith.constant 2 : i32
    %567 = tpu.dynamic_rotate %563 by %c2_i32_149 dim 1 : vector<16x128xf32>, i32 -> vector<16x128xf32>
    %c2_i32_150 = arith.constant 2 : i32
    %568 = tpu.dynamic_rotate %564 by %c2_i32_150 dim 1 : vector<16x128xf32>, i32 -> vector<16x128xf32>
    %569 = arith.mulf %145, %566 : vector<16x128xf32>
    %570 = arith.mulf %146, %567 : vector<16x128xf32>
    %cst_151 = arith.constant 0.000000e+00 : f32
    %571 = vector.broadcast %cst_151 : f32 to vector<16x128xf32>
    %572 = arith.maximumf %569, %571 : vector<16x128xf32>
    %573 = arith.mulf %569, %570 : vector<16x128xf32>
    %574 = arith.subf %572, %573 : vector<16x128xf32>
    %cst_152 = arith.constant 0.000000e+00 : f32
    %575 = vector.broadcast %cst_152 : f32 to vector<16x128xf32>
    %576 = arith.subf %575, %569 : vector<16x128xf32>
    %577 = arith.minimumf %569, %576 : vector<16x128xf32>
    %578 = math.exp %577 : vector<16x128xf32>
    %579 = math.log1p %578 : vector<16x128xf32>
    %580 = arith.addf %574, %579 : vector<16x128xf32>
    %581 = arith.mulf %149, %568 : vector<16x128xf32>
    %582 = math.exp %581 : vector<16x128xf32>
    %583 = arith.addf %580, %582 : vector<16x128xf32>
    %cst_153 = arith.constant 9.99999997E-7 : f32
    %584 = vector.broadcast %cst_153 : f32 to vector<16x128xf32>
    %585 = arith.addf %583, %584 : vector<16x128xf32>
    %586 = tpu.reciprocal %585 {approx = true} : vector<16x128xf32> -> vector<16x128xf32>
    %cst_154 = arith.constant 2.000000e-02 : f32
    %587 = vector.broadcast %cst_154 : f32 to vector<1x128xf32>
    %588 = arith.mulf %587, %23 : vector<1x128xf32>
    %589 = vector.broadcast %588 : vector<1x128xf32> to vector<16x128xf32>
    %590 = arith.mulf %586, %589 : vector<16x128xf32>
    %591 = arith.addf %565, %590 : vector<16x128xf32>
    %c1_i32_155 = arith.constant 1 : i32
    %592 = tpu.dynamic_rotate %562 by %c1_i32_155 dim 1 : vector<16x128xf32>, i32 -> vector<16x128xf32>
    %c1_i32_156 = arith.constant 1 : i32
    %593 = tpu.dynamic_rotate %563 by %c1_i32_156 dim 1 : vector<16x128xf32>, i32 -> vector<16x128xf32>
    %c1_i32_157 = arith.constant 1 : i32
    %594 = tpu.dynamic_rotate %564 by %c1_i32_157 dim 1 : vector<16x128xf32>, i32 -> vector<16x128xf32>
    %595 = arith.mulf %145, %592 : vector<16x128xf32>
    %596 = arith.mulf %146, %593 : vector<16x128xf32>
    %cst_158 = arith.constant 0.000000e+00 : f32
    %597 = vector.broadcast %cst_158 : f32 to vector<16x128xf32>
    %598 = arith.maximumf %595, %597 : vector<16x128xf32>
    %599 = arith.mulf %595, %596 : vector<16x128xf32>
    %600 = arith.subf %598, %599 : vector<16x128xf32>
    %cst_159 = arith.constant 0.000000e+00 : f32
    %601 = vector.broadcast %cst_159 : f32 to vector<16x128xf32>
    %602 = arith.subf %601, %595 : vector<16x128xf32>
    %603 = arith.minimumf %595, %602 : vector<16x128xf32>
    %604 = math.exp %603 : vector<16x128xf32>
    %605 = math.log1p %604 : vector<16x128xf32>
    %606 = arith.addf %600, %605 : vector<16x128xf32>
    %607 = arith.mulf %149, %594 : vector<16x128xf32>
    %608 = math.exp %607 : vector<16x128xf32>
    %609 = arith.addf %606, %608 : vector<16x128xf32>
    %cst_160 = arith.constant 9.99999997E-7 : f32
    %610 = vector.broadcast %cst_160 : f32 to vector<16x128xf32>
    %611 = arith.addf %609, %610 : vector<16x128xf32>
    %612 = tpu.reciprocal %611 {approx = true} : vector<16x128xf32> -> vector<16x128xf32>
    %cst_161 = arith.constant 0.131111115 : f32
    %613 = vector.broadcast %cst_161 : f32 to vector<1x128xf32>
    %614 = arith.mulf %613, %34 : vector<1x128xf32>
    %615 = vector.broadcast %614 : vector<1x128xf32> to vector<16x128xf32>
    %616 = arith.mulf %612, %615 : vector<16x128xf32>
    %617 = arith.addf %591, %616 : vector<16x128xf32>
    %618 = arith.mulf %145, %562 : vector<16x128xf32>
    %619 = arith.mulf %146, %563 : vector<16x128xf32>
    %cst_162 = arith.constant 0.000000e+00 : f32
    %620 = vector.broadcast %cst_162 : f32 to vector<16x128xf32>
    %621 = arith.maximumf %618, %620 : vector<16x128xf32>
    %622 = arith.mulf %618, %619 : vector<16x128xf32>
    %623 = arith.subf %621, %622 : vector<16x128xf32>
    %cst_163 = arith.constant 0.000000e+00 : f32
    %624 = vector.broadcast %cst_163 : f32 to vector<16x128xf32>
    %625 = arith.subf %624, %618 : vector<16x128xf32>
    %626 = arith.minimumf %618, %625 : vector<16x128xf32>
    %627 = math.exp %626 : vector<16x128xf32>
    %628 = math.log1p %627 : vector<16x128xf32>
    %629 = arith.addf %623, %628 : vector<16x128xf32>
    %630 = arith.mulf %149, %564 : vector<16x128xf32>
    %631 = math.exp %630 : vector<16x128xf32>
    %632 = arith.addf %629, %631 : vector<16x128xf32>
    %cst_164 = arith.constant 9.99999997E-7 : f32
    %633 = vector.broadcast %cst_164 : f32 to vector<16x128xf32>
    %634 = arith.addf %632, %633 : vector<16x128xf32>
    %635 = tpu.reciprocal %634 {approx = true} : vector<16x128xf32> -> vector<16x128xf32>
    %cst_165 = arith.constant 0.131111115 : f32
    %636 = vector.broadcast %cst_165 : f32 to vector<1x128xf32>
    %637 = arith.mulf %636, %45 : vector<1x128xf32>
    %638 = vector.broadcast %637 : vector<1x128xf32> to vector<16x128xf32>
    %639 = arith.mulf %635, %638 : vector<16x128xf32>
    %640 = arith.addf %617, %639 : vector<16x128xf32>
    %c127_i32_166 = arith.constant 127 : i32
    %641 = tpu.dynamic_rotate %562 by %c127_i32_166 dim 1 : vector<16x128xf32>, i32 -> vector<16x128xf32>
    %c127_i32_167 = arith.constant 127 : i32
    %642 = tpu.dynamic_rotate %563 by %c127_i32_167 dim 1 : vector<16x128xf32>, i32 -> vector<16x128xf32>
    %c127_i32_168 = arith.constant 127 : i32
    %643 = tpu.dynamic_rotate %564 by %c127_i32_168 dim 1 : vector<16x128xf32>, i32 -> vector<16x128xf32>
    %644 = arith.mulf %145, %641 : vector<16x128xf32>
    %645 = arith.mulf %146, %642 : vector<16x128xf32>
    %cst_169 = arith.constant 0.000000e+00 : f32
    %646 = vector.broadcast %cst_169 : f32 to vector<16x128xf32>
    %647 = arith.maximumf %644, %646 : vector<16x128xf32>
    %648 = arith.mulf %644, %645 : vector<16x128xf32>
    %649 = arith.subf %647, %648 : vector<16x128xf32>
    %cst_170 = arith.constant 0.000000e+00 : f32
    %650 = vector.broadcast %cst_170 : f32 to vector<16x128xf32>
    %651 = arith.subf %650, %644 : vector<16x128xf32>
    %652 = arith.minimumf %644, %651 : vector<16x128xf32>
    %653 = math.exp %652 : vector<16x128xf32>
    %654 = math.log1p %653 : vector<16x128xf32>
    %655 = arith.addf %649, %654 : vector<16x128xf32>
    %656 = arith.mulf %149, %643 : vector<16x128xf32>
    %657 = math.exp %656 : vector<16x128xf32>
    %658 = arith.addf %655, %657 : vector<16x128xf32>
    %cst_171 = arith.constant 9.99999997E-7 : f32
    %659 = vector.broadcast %cst_171 : f32 to vector<16x128xf32>
    %660 = arith.addf %658, %659 : vector<16x128xf32>
    %661 = tpu.reciprocal %660 {approx = true} : vector<16x128xf32> -> vector<16x128xf32>
    %cst_172 = arith.constant 0.131111115 : f32
    %662 = vector.broadcast %cst_172 : f32 to vector<1x128xf32>
    %663 = arith.mulf %662, %56 : vector<1x128xf32>
    %664 = vector.broadcast %663 : vector<1x128xf32> to vector<16x128xf32>
    %665 = arith.mulf %661, %664 : vector<16x128xf32>
    %666 = arith.addf %640, %665 : vector<16x128xf32>
    %c126_i32_173 = arith.constant 126 : i32
    %667 = tpu.dynamic_rotate %562 by %c126_i32_173 dim 1 : vector<16x128xf32>, i32 -> vector<16x128xf32>
    %c126_i32_174 = arith.constant 126 : i32
    %668 = tpu.dynamic_rotate %563 by %c126_i32_174 dim 1 : vector<16x128xf32>, i32 -> vector<16x128xf32>
    %c126_i32_175 = arith.constant 126 : i32
    %669 = tpu.dynamic_rotate %564 by %c126_i32_175 dim 1 : vector<16x128xf32>, i32 -> vector<16x128xf32>
    %670 = arith.mulf %145, %667 : vector<16x128xf32>
    %671 = arith.mulf %146, %668 : vector<16x128xf32>
    %cst_176 = arith.constant 0.000000e+00 : f32
    %672 = vector.broadcast %cst_176 : f32 to vector<16x128xf32>
    %673 = arith.maximumf %670, %672 : vector<16x128xf32>
    %674 = arith.mulf %670, %671 : vector<16x128xf32>
    %675 = arith.subf %673, %674 : vector<16x128xf32>
    %cst_177 = arith.constant 0.000000e+00 : f32
    %676 = vector.broadcast %cst_177 : f32 to vector<16x128xf32>
    %677 = arith.subf %676, %670 : vector<16x128xf32>
    %678 = arith.minimumf %670, %677 : vector<16x128xf32>
    %679 = math.exp %678 : vector<16x128xf32>
    %680 = math.log1p %679 : vector<16x128xf32>
    %681 = arith.addf %675, %680 : vector<16x128xf32>
    %682 = arith.mulf %149, %669 : vector<16x128xf32>
    %683 = math.exp %682 : vector<16x128xf32>
    %684 = arith.addf %681, %683 : vector<16x128xf32>
    %cst_178 = arith.constant 9.99999997E-7 : f32
    %685 = vector.broadcast %cst_178 : f32 to vector<16x128xf32>
    %686 = arith.addf %684, %685 : vector<16x128xf32>
    %687 = tpu.reciprocal %686 {approx = true} : vector<16x128xf32> -> vector<16x128xf32>
    %cst_179 = arith.constant 2.000000e-02 : f32
    %688 = vector.broadcast %cst_179 : f32 to vector<1x128xf32>
    %689 = arith.mulf %688, %67 : vector<1x128xf32>
    %690 = vector.broadcast %689 : vector<1x128xf32> to vector<16x128xf32>
    %691 = arith.mulf %687, %690 : vector<16x128xf32>
    %692 = arith.addf %666, %691 : vector<16x128xf32>
    %693 = vector.broadcast %114 : vector<16x1xf32> to vector<16x128xf32>
    %694 = arith.mulf %693, %692 : vector<16x128xf32>
    %695 = arith.addf %561, %694 : vector<16x128xf32>
    %696 = vector.extract_strided_slice %134 {offsets = [10, 0], sizes = [16, 128], strides = [1, 1]} : vector<32x128xf32> to vector<16x128xf32>
    %697 = vector.extract_strided_slice %144 {offsets = [10, 0], sizes = [16, 128], strides = [1, 1]} : vector<32x128xf32> to vector<16x128xf32>
    %698 = vector.extract_strided_slice %139 {offsets = [10, 0], sizes = [16, 128], strides = [1, 1]} : vector<32x128xf32> to vector<16x128xf32>
    %cst_180 = arith.constant 0.000000e+00 : f32
    %699 = vector.broadcast %cst_180 : f32 to vector<16x128xf32>
    %c2_i32_181 = arith.constant 2 : i32
    %700 = tpu.dynamic_rotate %696 by %c2_i32_181 dim 1 : vector<16x128xf32>, i32 -> vector<16x128xf32>
    %c2_i32_182 = arith.constant 2 : i32
    %701 = tpu.dynamic_rotate %697 by %c2_i32_182 dim 1 : vector<16x128xf32>, i32 -> vector<16x128xf32>
    %c2_i32_183 = arith.constant 2 : i32
    %702 = tpu.dynamic_rotate %698 by %c2_i32_183 dim 1 : vector<16x128xf32>, i32 -> vector<16x128xf32>
    %703 = arith.mulf %145, %700 : vector<16x128xf32>
    %704 = arith.mulf %146, %701 : vector<16x128xf32>
    %cst_184 = arith.constant 0.000000e+00 : f32
    %705 = vector.broadcast %cst_184 : f32 to vector<16x128xf32>
    %706 = arith.maximumf %703, %705 : vector<16x128xf32>
    %707 = arith.mulf %703, %704 : vector<16x128xf32>
    %708 = arith.subf %706, %707 : vector<16x128xf32>
    %cst_185 = arith.constant 0.000000e+00 : f32
    %709 = vector.broadcast %cst_185 : f32 to vector<16x128xf32>
    %710 = arith.subf %709, %703 : vector<16x128xf32>
    %711 = arith.minimumf %703, %710 : vector<16x128xf32>
    %712 = math.exp %711 : vector<16x128xf32>
    %713 = math.log1p %712 : vector<16x128xf32>
    %714 = arith.addf %708, %713 : vector<16x128xf32>
    %715 = arith.mulf %149, %702 : vector<16x128xf32>
    %716 = math.exp %715 : vector<16x128xf32>
    %717 = arith.addf %714, %716 : vector<16x128xf32>
    %cst_186 = arith.constant 9.99999997E-7 : f32
    %718 = vector.broadcast %cst_186 : f32 to vector<16x128xf32>
    %719 = arith.addf %717, %718 : vector<16x128xf32>
    %720 = tpu.reciprocal %719 {approx = true} : vector<16x128xf32> -> vector<16x128xf32>
    %cst_187 = arith.constant 2.000000e-02 : f32
    %721 = vector.broadcast %cst_187 : f32 to vector<1x128xf32>
    %722 = arith.mulf %721, %23 : vector<1x128xf32>
    %723 = vector.broadcast %722 : vector<1x128xf32> to vector<16x128xf32>
    %724 = arith.mulf %720, %723 : vector<16x128xf32>
    %725 = arith.addf %699, %724 : vector<16x128xf32>
    %c1_i32_188 = arith.constant 1 : i32
    %726 = tpu.dynamic_rotate %696 by %c1_i32_188 dim 1 : vector<16x128xf32>, i32 -> vector<16x128xf32>
    %c1_i32_189 = arith.constant 1 : i32
    %727 = tpu.dynamic_rotate %697 by %c1_i32_189 dim 1 : vector<16x128xf32>, i32 -> vector<16x128xf32>
    %c1_i32_190 = arith.constant 1 : i32
    %728 = tpu.dynamic_rotate %698 by %c1_i32_190 dim 1 : vector<16x128xf32>, i32 -> vector<16x128xf32>
    %729 = arith.mulf %145, %726 : vector<16x128xf32>
    %730 = arith.mulf %146, %727 : vector<16x128xf32>
    %cst_191 = arith.constant 0.000000e+00 : f32
    %731 = vector.broadcast %cst_191 : f32 to vector<16x128xf32>
    %732 = arith.maximumf %729, %731 : vector<16x128xf32>
    %733 = arith.mulf %729, %730 : vector<16x128xf32>
    %734 = arith.subf %732, %733 : vector<16x128xf32>
    %cst_192 = arith.constant 0.000000e+00 : f32
    %735 = vector.broadcast %cst_192 : f32 to vector<16x128xf32>
    %736 = arith.subf %735, %729 : vector<16x128xf32>
    %737 = arith.minimumf %729, %736 : vector<16x128xf32>
    %738 = math.exp %737 : vector<16x128xf32>
    %739 = math.log1p %738 : vector<16x128xf32>
    %740 = arith.addf %734, %739 : vector<16x128xf32>
    %741 = arith.mulf %149, %728 : vector<16x128xf32>
    %742 = math.exp %741 : vector<16x128xf32>
    %743 = arith.addf %740, %742 : vector<16x128xf32>
    %cst_193 = arith.constant 9.99999997E-7 : f32
    %744 = vector.broadcast %cst_193 : f32 to vector<16x128xf32>
    %745 = arith.addf %743, %744 : vector<16x128xf32>
    %746 = tpu.reciprocal %745 {approx = true} : vector<16x128xf32> -> vector<16x128xf32>
    %cst_194 = arith.constant 2.000000e-02 : f32
    %747 = vector.broadcast %cst_194 : f32 to vector<1x128xf32>
    %748 = arith.mulf %747, %34 : vector<1x128xf32>
    %749 = vector.broadcast %748 : vector<1x128xf32> to vector<16x128xf32>
    %750 = arith.mulf %746, %749 : vector<16x128xf32>
    %751 = arith.addf %725, %750 : vector<16x128xf32>
    %752 = arith.mulf %145, %696 : vector<16x128xf32>
    %753 = arith.mulf %146, %697 : vector<16x128xf32>
    %cst_195 = arith.constant 0.000000e+00 : f32
    %754 = vector.broadcast %cst_195 : f32 to vector<16x128xf32>
    %755 = arith.maximumf %752, %754 : vector<16x128xf32>
    %756 = arith.mulf %752, %753 : vector<16x128xf32>
    %757 = arith.subf %755, %756 : vector<16x128xf32>
    %cst_196 = arith.constant 0.000000e+00 : f32
    %758 = vector.broadcast %cst_196 : f32 to vector<16x128xf32>
    %759 = arith.subf %758, %752 : vector<16x128xf32>
    %760 = arith.minimumf %752, %759 : vector<16x128xf32>
    %761 = math.exp %760 : vector<16x128xf32>
    %762 = math.log1p %761 : vector<16x128xf32>
    %763 = arith.addf %757, %762 : vector<16x128xf32>
    %764 = arith.mulf %149, %698 : vector<16x128xf32>
    %765 = math.exp %764 : vector<16x128xf32>
    %766 = arith.addf %763, %765 : vector<16x128xf32>
    %cst_197 = arith.constant 9.99999997E-7 : f32
    %767 = vector.broadcast %cst_197 : f32 to vector<16x128xf32>
    %768 = arith.addf %766, %767 : vector<16x128xf32>
    %769 = tpu.reciprocal %768 {approx = true} : vector<16x128xf32> -> vector<16x128xf32>
    %cst_198 = arith.constant 2.000000e-02 : f32
    %770 = vector.broadcast %cst_198 : f32 to vector<1x128xf32>
    %771 = arith.mulf %770, %45 : vector<1x128xf32>
    %772 = vector.broadcast %771 : vector<1x128xf32> to vector<16x128xf32>
    %773 = arith.mulf %769, %772 : vector<16x128xf32>
    %774 = arith.addf %751, %773 : vector<16x128xf32>
    %c127_i32_199 = arith.constant 127 : i32
    %775 = tpu.dynamic_rotate %696 by %c127_i32_199 dim 1 : vector<16x128xf32>, i32 -> vector<16x128xf32>
    %c127_i32_200 = arith.constant 127 : i32
    %776 = tpu.dynamic_rotate %697 by %c127_i32_200 dim 1 : vector<16x128xf32>, i32 -> vector<16x128xf32>
    %c127_i32_201 = arith.constant 127 : i32
    %777 = tpu.dynamic_rotate %698 by %c127_i32_201 dim 1 : vector<16x128xf32>, i32 -> vector<16x128xf32>
    %778 = arith.mulf %145, %775 : vector<16x128xf32>
    %779 = arith.mulf %146, %776 : vector<16x128xf32>
    %cst_202 = arith.constant 0.000000e+00 : f32
    %780 = vector.broadcast %cst_202 : f32 to vector<16x128xf32>
    %781 = arith.maximumf %778, %780 : vector<16x128xf32>
    %782 = arith.mulf %778, %779 : vector<16x128xf32>
    %783 = arith.subf %781, %782 : vector<16x128xf32>
    %cst_203 = arith.constant 0.000000e+00 : f32
    %784 = vector.broadcast %cst_203 : f32 to vector<16x128xf32>
    %785 = arith.subf %784, %778 : vector<16x128xf32>
    %786 = arith.minimumf %778, %785 : vector<16x128xf32>
    %787 = math.exp %786 : vector<16x128xf32>
    %788 = math.log1p %787 : vector<16x128xf32>
    %789 = arith.addf %783, %788 : vector<16x128xf32>
    %790 = arith.mulf %149, %777 : vector<16x128xf32>
    %791 = math.exp %790 : vector<16x128xf32>
    %792 = arith.addf %789, %791 : vector<16x128xf32>
    %cst_204 = arith.constant 9.99999997E-7 : f32
    %793 = vector.broadcast %cst_204 : f32 to vector<16x128xf32>
    %794 = arith.addf %792, %793 : vector<16x128xf32>
    %795 = tpu.reciprocal %794 {approx = true} : vector<16x128xf32> -> vector<16x128xf32>
    %cst_205 = arith.constant 2.000000e-02 : f32
    %796 = vector.broadcast %cst_205 : f32 to vector<1x128xf32>
    %797 = arith.mulf %796, %56 : vector<1x128xf32>
    %798 = vector.broadcast %797 : vector<1x128xf32> to vector<16x128xf32>
    %799 = arith.mulf %795, %798 : vector<16x128xf32>
    %800 = arith.addf %774, %799 : vector<16x128xf32>
    %c126_i32_206 = arith.constant 126 : i32
    %801 = tpu.dynamic_rotate %696 by %c126_i32_206 dim 1 : vector<16x128xf32>, i32 -> vector<16x128xf32>
    %c126_i32_207 = arith.constant 126 : i32
    %802 = tpu.dynamic_rotate %697 by %c126_i32_207 dim 1 : vector<16x128xf32>, i32 -> vector<16x128xf32>
    %c126_i32_208 = arith.constant 126 : i32
    %803 = tpu.dynamic_rotate %698 by %c126_i32_208 dim 1 : vector<16x128xf32>, i32 -> vector<16x128xf32>
    %804 = arith.mulf %145, %801 : vector<16x128xf32>
    %805 = arith.mulf %146, %802 : vector<16x128xf32>
    %cst_209 = arith.constant 0.000000e+00 : f32
    %806 = vector.broadcast %cst_209 : f32 to vector<16x128xf32>
    %807 = arith.maximumf %804, %806 : vector<16x128xf32>
    %808 = arith.mulf %804, %805 : vector<16x128xf32>
    %809 = arith.subf %807, %808 : vector<16x128xf32>
    %cst_210 = arith.constant 0.000000e+00 : f32
    %810 = vector.broadcast %cst_210 : f32 to vector<16x128xf32>
    %811 = arith.subf %810, %804 : vector<16x128xf32>
    %812 = arith.minimumf %804, %811 : vector<16x128xf32>
    %813 = math.exp %812 : vector<16x128xf32>
    %814 = math.log1p %813 : vector<16x128xf32>
    %815 = arith.addf %809, %814 : vector<16x128xf32>
    %816 = arith.mulf %149, %803 : vector<16x128xf32>
    %817 = math.exp %816 : vector<16x128xf32>
    %818 = arith.addf %815, %817 : vector<16x128xf32>
    %cst_211 = arith.constant 9.99999997E-7 : f32
    %819 = vector.broadcast %cst_211 : f32 to vector<16x128xf32>
    %820 = arith.addf %818, %819 : vector<16x128xf32>
    %821 = tpu.reciprocal %820 {approx = true} : vector<16x128xf32> -> vector<16x128xf32>
    %cst_212 = arith.constant 2.000000e-02 : f32
    %822 = vector.broadcast %cst_212 : f32 to vector<1x128xf32>
    %823 = arith.mulf %822, %67 : vector<1x128xf32>
    %824 = vector.broadcast %823 : vector<1x128xf32> to vector<16x128xf32>
    %825 = arith.mulf %821, %824 : vector<16x128xf32>
    %826 = arith.addf %800, %825 : vector<16x128xf32>
    %827 = vector.broadcast %125 : vector<16x1xf32> to vector<16x128xf32>
    %828 = arith.mulf %827, %826 : vector<16x128xf32>
    %829 = arith.addf %695, %828 : vector<16x128xf32>
    %830 = arith.mulf %161, %829 : vector<16x128xf32>
    %cst_213 = arith.constant dense<0.000000e+00> : vector<16xf32>
    %831 = vector.multi_reduction <add>, %830, %cst_213 [1] : vector<16x128xf32> to vector<16xf32>
    %832 = vector.shape_cast %831 : vector<16xf32> to vector<16x1xf32>
    %c0_214 = arith.constant 0 : index
    %c0_215 = arith.constant 0 : index
    %c0_216 = arith.constant 0 : index
    %c0_217 = arith.constant 0 : index
    %833 = vector.load %arg6[%c0_214, %c0_215, %c0_216, %c0_217] : memref<1x1x16x1xf32, #tpu.memory_space<vmem>>, vector<1x1x16x1xf32>
    %834 = vector.shape_cast %833 : vector<1x1x16x1xf32> to vector<16x1xf32>
    %835 = vector.shape_cast %832 : vector<16x1xf32> to vector<1x1x16x1xf32>
    tpu.vector_store %arg6[%c0_214, %c0_215, %c0_216, %c0_217], %835 {strides = array<i32>} : memref<1x1x16x1xf32, #tpu.memory_space<vmem>>, vector<1x1x16x1xf32>,
    return
  }
  func.func @transform_2(%arg0: i32, %arg1: i32, %arg2: i32, %arg3: memref<2xi32, #tpu.memory_space<smem>>) -> (i32, i32, i32, i32) {
    %c0_i32 = arith.constant 0 : i32
    %c0_i32_0 = arith.constant 0 : i32
    return %arg0, %arg1, %arg2, %c0_i32 : i32, i32, i32, i32
  }
}

</mosaic_0001>

<bundles_post_ra>
// kernel: tpu_custom_call.1
= control target key start
LH: loop header
LB: loop body
LE: loop exit
PB: predicated region body
PF: predicated region fallthrough
CT: control target
= control target key end

     0   :  { %s5109_s0 = inlined_call_operand.hbm [shape: s32[2], index: 0, kind: input, shape index: {}]   ;;  %s5110_s1 = inlined_call_operand.hbm [shape: f32[2,2,32,128], index: 1, kind: input, shape index: {}]   ;;  %s5111_s2 = inlined_call_operand.hbm [shape: s32[2,32,128], index: 2, kind: input, shape index: {}]   ;;  %s5112_s3 = inlined_call_operand.vmem [shape: f32[2,2,16,1], index: 3, kind: output, shape index: {}]  }
   0x1   :  { %s2729_s14 = scalar_lea.hbm %s5109_s0, 16 }
   0x2   :  { %p2730_p0 = scmp.ne.s32.totalorder %s5109_s0, %s2729_s14  ;;  %p2733_p1 = scmp.lt.u32.totalorder %s2729_s14, %s5109_s0 }
   0x4   :  { %p2735_p2 = pnand %p2733_p1, %p2730_p0 }
   0x6   :  { %2738 = shalt.err (!%p2735_p2)  }
   0x7   :  { %s2817_s19 = smov [#allocation6]  }
   0x8   :  { %9 = dma.hbm_to_smem %s5109_s0, 16, %s2817_s19, [#allocation5] }
   0x9   :  { %2799 = dma.done.wait [#allocation5], 16 }
   0xa   :  { %2800 = vsyncadd [#allocation5], 4294967280 }
   0xb   :  { %11 = sfence }
   0xc   :  { %s2857_s22 = smov 0   ;;  %s2859_s23 = smov 0  }
   0xd   :  { %s2861_s24 = smov 0  }
   0xe LB: > { %s28_s0 = sadd.s32 1, %s2807_s22  ;;  %s32_s25 = sadd.s32 1, %s2811_s23  ;;  %s2815_s24 = sphi %s2861_s24, %s17_s24   ;;  %s2811_s23 = sphi %s2859_s23, %s5592_s23   ;;  %s2807_s22 = sphi %s2857_s22, %s5591_s22  }
   0xf   : > { %p30_p3 = scmp.ge.s32.totalorder %s28_s0, 2  ;;  %p2143_p5 = scmp.ge.s32.totalorder %s2815_s24, 4 }
  0x11   : > { %s5594_s0 = smov (%p30_p3, %s28_s0), 0  ;;  %s5596_s25 = smov (!%p30_p3, %s32_s25), %s2811_s23 }
  0x12   : > { %p34_p4 = scmp.ge.s32.totalorder %s5596_s25, 2  ;;  %62 = sbr.rel (%p2143_p5) target bundleno = 708 (0x2c4), region = 12 }
  0x14   : > { %s5598_s25 = smov (%p34_p4, %s5596_s25), 0 }
  0x19   : > { %p79_p6 = scmp.lt.s32.totalorder %s2811_s23, 1  ;;  %p81_p7 = scmp.lt.s32.totalorder %s2807_s22, 1  ;;  %v127_v0 = vlaneseq  ;;  %v2818_v6 = vmov 0.0  }
  0x1a   : > { %s2883_s26 = sld [smem:[#allocation6 + %s2807_s22]]  ;;  %s2147_s27 = sshll.u32 %s2807_s22, 5 }
  0x1b   : > { %s80_s28 = scalar_select %p79_p6, %s2811_s23, 1  ;;  %v128_v1 = vand.u32 127, %v127_v0  ;;  %v159_v2 = vshrl.u32 %v127_v0, 7 }
  0x1c   : > { %s5600_s22 = smov (!%p81_p7, %s2807_s22), 1  ;;  %s2148_s30 = sshll.u32 %s2811_s23, 6 }
  0x1d   : > { %s2145_s29 = sshll.u32 %s80_s28, 2  ;;  %v129_v3 = vadd.s32 4294967294, %v128_v1  ;;  %v135_v4 = vadd.s32 4294967295, %v128_v1  ;;  %vm142_vm0 = vcmp.lt.s32.totalorder %v128_v1, 16  ;;  %v146_v5 = vadd.s32 1, %v128_v1  ;;  %s2144_s4 = sshll.u32 %s5600_s22, 1 }
  0x1e   : > { %s97_s5 = sadd.s32 %s2148_s30, %s2147_s27  ;;  %v2890_v7 = vsel %vm142_vm0, 1.0, %v2818_v6  ;;  %v152_v8 = vadd.s32 2, %v128_v1  ;;  %v160_v9 = vadd.s32 8, %v159_v2  ;;  %v164_v10 = vadd.s32 4294967294, %v159_v2  ;;  %s88_s6 = sadd.s32 %s2145_s29, %s2144_s4 }
  0x1f   : > { %5215 = vst [vmem:[#allocation16_spill] sm:$0xff] %v2890_v7  ;;  %s2149_s7 = sshll.u32 %s97_s5, 4  ;;  %vm130_vm1 = vcmp.ge.s32.totalorder %v129_v3, 0  ;;  %vm131_vm2 = vcmp.lt.s32.totalorder %v129_v3, 16  ;;  %vm136_vm3 = vcmp.ge.s32.totalorder %v135_v4, 0  ;;  %vm137_vm4 = vcmp.lt.s32.totalorder %v135_v4, 16 }
  0x20   : > { %s2146_s8 = sshll.u32 %s88_s6, 3  ;;  %s2895_s11 = scalar_lea.hbm %s5110_s1, %s2149_s7  ;;  %vm132_vm5 = vmand %vm130_vm1, %vm131_vm2  ;;  %vm148_vm6 = vcmp.lt.s32.totalorder %v146_v5, 16  ;;  %vm154_vm7 = vcmp.lt.s32.totalorder %v152_v8, 16  ;;  %vm166_vm8 = vcmp.ge.s32.totalorder %v164_v10, 0  ;;  %v176_v11 = vadd.s32 4294967295, %v159_v2 }
  0x21   : > { %s2900_s14 = scalar_lea.vmem %s5112_s3, %s2146_s8  ;;  %v2903_v12 = vsel %vm132_vm5, 1.0, %v2818_v6  ;;  %vm138_vm9 = vmand %vm136_vm3, %vm137_vm4  ;;  %v2906_v13 = vsel %vm148_vm6, 1.0, %v2818_v6  ;;  %v2909_v14 = vsel %vm154_vm7, 1.0, %v2818_v6  ;;  %v2912_v15 = vsel %vm166_vm8, 1.0, %v2818_v6  ;;  %s2819_s15 = smov [#allocation2]  }
  0x22   : > { %5216 = vst [vmem:[#allocation17_spill] sm:$0xff] %v2903_v12  ;;  %5217 = vst [vmem:[#allocation18_spill] sm:$0xff] %v2906_v13  ;;  %s107_s16 = sshll.u32 %s2819_s15, 4  ;;  %s2173_s17 = sshll.u32 %s2811_s23, 9  ;;  %v2916_v16 = vsel %vm138_vm9, 1.0, %v2818_v6  ;;  %vm178_vm10 = vcmp.ge.s32.totalorder %v176_v11, 0  ;;  %s108_s16 = int_to_ptr.vmem [resolvable:$true] %s107_s16 }
  0x23   : > { %5218 = vst [vmem:[#allocation19_spill] sm:$0xff] %v2909_v14  ;;  %5219 = vst [vmem:[#allocation20_spill] sm:$0xff] %v2912_v15  ;;  %v199_v17 = vadd.s32 1, %v160_v9  ;;  %v211_v18 = vadd.s32 2, %v160_v9  ;;  %v2919_v19 = vsel %vm178_vm10, 1.0, %v2818_v6  ;;  %s2739_s18 = scalar_lea.hbm %s2895_s11, 512  ;;  %p2742_p9 = scmp.lt.u32.totalorder %s2895_s11, %s5110_s1 }
  0x24   : > { %5220 = vst [vmem:[#allocation21_spill] sm:$0xff] %v2916_v16  ;;  %5221 = vst [vmem:[#allocation22_spill] sm:$0xff] %v2919_v19  ;;  %p2740_p8 = scmp.ne.s32.totalorder %s2895_s11, %s2739_s18  ;;  %s2741_s21 = scalar_lea.hbm %s5110_s1, 2048 }
  0x25   : > { %p2743_p10 = scmp.lt.u32.totalorder %s2741_s21, %s2739_s18  ;;  %p2745_p12 = scmp.lt.u32.totalorder %s2739_s18, %s2895_s11 }
  0x27   : > { %p2744_p11 = por %p2743_p10, %p2742_p9 }
  0x29   : > { %p2746_p13 = por %p2745_p12, %p2744_p11 }
  0x2b   : > { %p2747_p0 = pnand %p2746_p13, %p2740_p8 }
  0x2d   : > { %2750 = shalt.err (!%p2747_p0)  }
  0x2e   : > { %s2751_s23 = scalar_lea.vmem %s108_s16, 512  ;;  %p2756_p2 = scmp.lt.s32.totalorder %s108_s16, %s108_s16 }
  0x2f   : > { %p2752_p1 = scmp.ne.s32.totalorder %s108_s16, %s2751_s23  ;;  %p2757_p3 = scmp.lt.s32.totalorder %s2751_s23, %s2751_s23 }
  0x31   : > { %p2758_p4 = por %p2757_p3, %p2756_p2 }
  0x33   : > { %p2759_p5 = pnand %p2758_p4, %p2752_p1 }
  0x35   : > { %2762 = shalt.err (!%p2759_p5)  }
  0x36   : > { %110 = dma.hbm_to_vmem [thread:$0]  %s2895_s11, 512, %s108_s16, [#allocation4]  ;;  %vm203_vm11 = vcmp.lt.s32.totalorder %v199_v17, 16  ;;  %vm215_vm12 = vcmp.lt.s32.totalorder %v211_v18, 16 }
  0x37   : > { %s114_s30 = scalar_lea.hbm %s5111_s2, %s2173_s17  ;;  %v2936_v20 = vsel %vm203_vm11, 1.0, %v2818_v6  ;;  %v2939_v21 = vsel %vm215_vm12, 1.0, %v2818_v6  ;;  %s2820_s4 = smov [#allocation3]  }
  0x38   : > { %5222 = vst [vmem:[#allocation23_spill] sm:$0xff] %v2936_v20  ;;  %5223 = vst [vmem:[#allocation24_spill] sm:$0xff] %v2939_v21  ;;  %s123_s5 = sshll.u32 %s2820_s4, 4  ;;  %s2763_s6 = scalar_lea.hbm %s114_s30, 512  ;;  %s124_s5 = int_to_ptr.vmem [resolvable:$true] %s123_s5 }
  0x39   : > { %p2764_p6 = scmp.ne.s32.totalorder %s114_s30, %s2763_s6  ;;  %s2765_s9 = scalar_lea.hbm %s5111_s2, 1024 }
  0x3a   : > { %p2766_p7 = scmp.lt.u32.totalorder %s114_s30, %s5111_s2  ;;  %p2767_p8 = scmp.lt.u32.totalorder %s2765_s9, %s2763_s6 }
  0x3b   : > { %p2769_p10 = scmp.lt.u32.totalorder %s2763_s6, %s114_s30 }
  0x3c   : > { %p2768_p9 = por %p2767_p8, %p2766_p7 }
  0x3e   : > { %p2770_p11 = por %p2769_p10, %p2768_p9 }
  0x40   : > { %p2771_p12 = pnand %p2770_p11, %p2764_p6 }
  0x42   : > { %2774 = shalt.err (!%p2771_p12)  }
  0x43   : > { %s2775_s12 = scalar_lea.vmem %s124_s5, 512  ;;  %p2780_p0 = scmp.lt.s32.totalorder %s124_s5, %s124_s5 }
  0x44   : > { %p2776_p13 = scmp.ne.s32.totalorder %s124_s5, %s2775_s12  ;;  %p2781_p1 = scmp.lt.s32.totalorder %s2775_s12, %s2775_s12 }
  0x46   : > { %p2782_p2 = por %p2781_p1, %p2780_p0 }
  0x48   : > { %p2783_p3 = pnand %p2782_p2, %p2776_p13 }
  0x4a   : > { %2786 = shalt.err (!%p2783_p3)  }
  0x4b   : > { %126 = dma.hbm_to_vmem [thread:$0]  %s114_s30, 512, %s124_s5, [#allocation4 + $0x1] }
  0x4c   : > { %2801 = dma.done.wait [#allocation4], 512 }
  0x4d   : > { %2802 = vsyncadd [#allocation4], 4294966784 }
  0x4e   : > { %2803 = dma.done.wait [#allocation4 + $0x1], 512 }
  0x4f   : > { %2804 = vsyncadd [#allocation4 + $0x1], 4294966784  ;;  %v2948_v22 = vstv %s2883_s26  ;;  %v2950_v23 = vld [vmem:[#allocation2 + $0x8] sm:$0xff]  ;;  %v2952_v24 = vld [vmem:[#allocation2 + $0x10] sm:$0xff]  ;;  %vm313_vm13 = vcmask 1041408   ;;  %s2821_s26 = smov 1  }
  0x50   : > { %v227_v25 = vld [vmem:[#allocation2] sm:$0xff]  ;;  %v315_v27 = vrot.slane %v2950_v23, 6  ;;  %v317_v29 = vrot.slane %v2952_v24, 6  ;;  %v256_v31 = vld [vmem:[#allocation3 + $0x8] sm:$0xff]  ;;  %v257_v32 = vld [vmem:[#allocation3 + $0x10] sm:$0xff]  ;;  %s2822_s13 = smov 2  }
  0x51   : > { %v314_v26 = vrot.slane %v227_v25, 6  ;;  %v2161_v28 = vmul.f32 -1.442695, %v227_v25  ;;  %v255_v30 = vld [vmem:[#allocation3] sm:$0xff]  ;;  %v2162_v33 = vmul.f32 -1.442695, %v2950_v23  ;;  %vm261_vm15 = vcmp.eq.s32.totalorder %v256_v31, %v2948_v22 }
  0x52   : > { %vm260_vm14 = vcmp.eq.s32.totalorder %v255_v30, %v2948_v22  ;;  %v2163_v34 = vmul.f32 -1.442695, %v2952_v24  ;;  %v2963_v36 = vsel %vm313_vm13, %v315_v27, %v317_v29  ;;  %vm262_vm0 = vcmp.eq.s32.totalorder %v257_v32, %v2948_v22  ;;  %s2823_s15 = smov 127   ;;  %s2824_s16 = smov 126  }
  0x53   : > { %v2960_v35 = vsel %vm313_vm13, %v314_v26, %v315_v27  ;;  %2301 = vpow2.f32 %v2161_v28  ;;  %v476_v38 = vmul.f32 %v2963_v36, %v2952_v24  ;;  %v2165_v39 = vsel %vm260_vm14, 1.0, %v2818_v6 }
  0x54   : > { %408 = vrot.lane.b32.xlu1 %v2960_v35, %s2821_s26  ;;  %v475_v37 = vmul.f32 %v2960_v35, %v2950_v23  ;;  %321 = vrot.lane.b32.xlu0 %v2960_v35, %s2822_s13  ;;  %v2977_v40 = vsel %vm261_vm15, 1.0, %v2818_v6  ;;  %v2980_v41 = vsel %vm262_vm0, 1.0, %v2818_v6  ;;  %v328_v42 = vrot.slane %v2165_v39, 6 }
  0x55   : > { %5224 = vst [vmem:[#allocation25_spill] sm:$0xff] %v2977_v40  ;;  %5225 = vst [vmem:[#allocation26_spill] sm:$0xff] %v2980_v41  ;;  %2303 = vpow2.f32 %v2162_v33  ;;  %v486_v44 = vsub.f32 0.0, %v476_v38  ;;  %v329_v45 = vrot.slane %v2977_v40, 6  ;;  %v331_v46 = vrot.slane %v2980_v41, 6 }
  0x56   : > { %v485_v43 = vsub.f32 0.0, %v475_v37  ;;  %2305 = vpow2.f32 %v2163_v34  ;;  %v669_v49 = vrot.slane %v227_v25, 7  ;;  %v670_v50 = vrot.slane %v2950_v23, 7 }
  0x57   : > { %v488_v48 = vmin.f32 %v476_v38, %v486_v44  ;;  %v480_v51 = vmax.f32 %v476_v38, 0.0  ;;  %v330_v52 = vsel %vm313_vm13, %v328_v42, %v329_v45  ;;  %v332_v53 = vsel %vm313_vm13, %v329_v45, %v331_v46 }
  0x58   : > { %v487_v47 = vmin.f32 %v475_v37, %v485_v43  ;;  %532 = vrot.lane.b32.xlu1 %v2963_v36, %s2823_s15  ;;  %323 = vrot.lane.b32.xlu0 %v2963_v36, %s2822_s13  ;;  %vm668_vm1 = vcmask 1040384   ;;  %v478_v56 = vmul.f32 %v2980_v41, %v332_v53  ;;  %v2206_v57 = vpack.i.bf16 %v332_v53, %v330_v52 }
  0x59   : > { %v491_v55 = vmul.f32 1.442695, %v488_v48  ;;  %v479_v58 = vmax.f32 %v475_v37, 0.0  ;;  %v477_v59 = vmul.f32 %v2977_v40, %v330_v52  ;;  %v680_v60 = vrot.slane %v2165_v39, 7 }
  0x5a   : > { %v489_v54 = vmul.f32 1.442695, %v487_v47  ;;  %v681_v61 = vrot.slane %v2977_v40, 7  ;;  %v482_v62 = vmul.f32 %v478_v56, %v476_v38  ;;  %v3000_v63 = vsel %vm668_vm1, %v669_v49, %v670_v50 }
  0x5b   : > { %v481_v1 = vmul.f32 %v477_v59, %v475_v37  ;;  %v823_v2 = vmul.f32 %v3000_v63, %v2950_v23  ;;  %vm1338_vm6 = vcmask 1046528   ;;  %vm1684_vm7 = vcmask 1045504  }
  0x5c   : > { %2307 = vpow2.f32 %v489_v54  ;;  %2207 = vrot.lane.b32.xlu1 %v2206_v57, %s2822_s13  ;;  %410 = vrot.lane.b32.xlu0 %v2963_v36, %s2821_s26  ;;  %v3004_v4 = vsub.f32 %v480_v51, %v482_v62  ;;  %v3014_v11 = vsel %vm668_vm1, %v680_v60, %v681_v61 }
  0x5d   : > { %v2302_v0 = vpop.eup %2301  ;;  %2309 = vpow2.f32 %v491_v55  ;;  %v3006_v8 = vsub.f32 %v479_v58, %v481_v1  ;;  %v833_v9 = vsub.f32 0.0, %v823_v2  ;;  %v827_v18 = vmax.f32 %v823_v2, 0.0 }
  0x5e   : > { %v243_v3 = vadd.f32 1.0, %v2302_v0  ;;  %v825_v26 = vmul.f32 %v2977_v40, %v3014_v11  ;;  %v1686_v1 = vrot.slane %v2952_v24, 2 }
  0x5f   : > { %v2304_v5 = vpop.eup %2303  ;;  %v835_v25 = vmin.f32 %v823_v2, %v833_v9 }
  0x60   : > { %2311 = vrcp.f32 %v243_v3  ;;  %2212 = vrot.lane.b32.xlu1 %v2206_v57, %s2821_s26  ;;  %530 = vrot.lane.b32.xlu0 %v2960_v35, %s2823_s15  ;;  %v244_v10 = vadd.f32 1.0, %v2304_v5  ;;  %v2306_v17 = vpop.eup %2305  ;;  %v829_v29 = vmul.f32 %v825_v26, %v823_v2  ;;  %v683_v26 = vrot.slane %v2980_v41, 7 }
  0x61   : > { %v245_v27 = vadd.f32 1.0, %v2306_v17  ;;  %v837_v28 = vmul.f32 1.442695, %v835_v25 }
  0x62   : > { %2313 = vrcp.f32 %v244_v10  ;;  %v3021_v30 = vsub.f32 %v827_v18, %v829_v29 }
  0x63   : > { %2315 = vrcp.f32 %v245_v27 }
  0x64   : > { %597 = vrot.lane.b32.xlu1 %v2960_v35, %s2824_s16  ;;  %2217 = vrot.lane.b32.xlu0 %v2206_v57, %s2823_s15  ;;  %2317 = vpow2.f32 %v837_v28 }
  0x66   : > { %v2308_v31 = vpop.eup %2307 }
  0x67   : > { %v2310_v32 = vpop.eup %2309  ;;  %v493_v33 = vadd.f32 1.0, %v2308_v31  ;;  %v496_v38 = vmul.f32 -0.5, %v2308_v31  ;;  %v499_v43 = vand.u32 2147483647, %v2308_v31 }
  0x68   : > { %v502_v34 = vadd.f32 1.0, %v2310_v32  ;;  %2222 = vrot.lane.b32.xlu1 %v2206_v57, %s2824_s16  ;;  %599 = vrot.lane.b32.xlu0 %v2963_v36, %s2824_s16  ;;  %v505_v35 = vmul.f32 -0.5, %v2310_v32  ;;  %v508_v36 = vand.u32 2147483647, %v2310_v32 }
  0x69   : > { %2319 = vlog2.f32 %v493_v33  ;;  %v497_v46 = vadd.f32 1.0, %v496_v38  ;;  %vm3041_vm2 = vcmp.lt.f32.partialorder %v499_v43, 0.0004427343 }
  0x6a   : > { %v2312_v37 = vpop.eup %2311  ;;  %2321 = vlog2.f32 %v502_v34  ;;  %v506_v49 = vadd.f32 1.0, %v505_v35  ;;  %vm3048_vm3 = vcmp.lt.f32.partialorder %v508_v36, 0.0004427343  ;;  %v672_v34 = vrot.slane %v2952_v24, 7 }
  0x6b   : > { %v342_v39 = vrot.slane %v2312_v37, 6  ;;  %v498_v58 = vmul.f32 %v2308_v31, %v497_v46  ;;  %v691_v3 = vrot.slane %v2312_v37, 7  ;;  %v3073_v37 = vsel %vm668_vm1, %v681_v61, %v683_v26 }
  0x6c   : > { %v3026_v42 = vpop.eup %2313  ;;  %v507_v0 = vmul.f32 %v2310_v32, %v506_v49  ;;  %v673_v35 = vsel %vm668_vm1, %v670_v50, %v672_v34  ;;  %v258_v50 = vld [vmem:[#allocation3 + $0x18] sm:$0xff]  ;;  %v1351_v36 = vrot.slane %v2977_v40, 1 }
  0x6d   : > { %5226 = vst [vmem:[#allocation27_spill] sm:$0xff] %v3026_v42  ;;  %v343_v44 = vrot.slane %v3026_v42, 6  ;;  %v3029_v45 = vpop.eup %2315  ;;  %v3032_v47 = vsub.f32 0.0, %v3026_v42  ;;  %v692_v17 = vrot.slane %v3026_v42, 7  ;;  %vm263_vm5 = vcmp.eq.s32.totalorder %v258_v50, %v2948_v22  ;;  %v230_v22 = vld [vmem:[#allocation2 + $0x18] sm:$0xff] }
  0x6e   : > { %5227 = vst [vmem:[#allocation28_spill] sm:$0xff] %v3029_v45  ;;  %v2318_v48 = vpop.eup %2317  ;;  %v345_v51 = vrot.slane %v3029_v45, 6  ;;  %v3037_v53 = vsub.f32 0.0, %v3029_v45  ;;  %v2168_v49 = vsel %vm263_vm5, 1.0, %v2818_v6  ;;  %v1342_v56 = vrot.slane %v230_v22, 1 }
  0x6f   : > { %5228 = vst [vmem:[#allocation29_spill] sm:$0xff] %v3032_v47  ;;  %v344_v52 = vsel %vm313_vm13, %v342_v39, %v343_v44  ;;  %v841_v55 = vadd.f32 1.0, %v2318_v48  ;;  %v844_v2 = vmul.f32 -0.5, %v2318_v48  ;;  %v847_v32 = vand.u32 2147483647, %v2318_v48 }
  0x70   : > { %5229 = vst [vmem:[#allocation30_spill] sm:$0xff] %v3037_v53  ;;  %349 = vrot.lane.b32.xlu1 %v344_v52, %s2822_s13  ;;  %v513_v54 = vmul.f32 %v344_v52, %v3032_v47  ;;  %v346_v57 = vsel %vm313_vm13, %v343_v44, %v345_v51  ;;  %v3066_v33 = vsel %vm668_vm1, %v691_v3, %v692_v17  ;;  %v1354_v51 = vrot.slane %v2168_v49, 1 }
  0x71   : > { %v514_v59 = vmul.f32 %v346_v57, %v3037_v53  ;;  %351 = vrot.lane.b32.xlu0 %v346_v57, %s2822_s13  ;;  %2323 = vlog2.f32 %v841_v55  ;;  %v845_v29 = vadd.f32 1.0, %v844_v2  ;;  %vm848_vm4 = vcmp.lt.f32.partialorder %v847_v32, 0.0004427343 }
  0x72   : > { %v515_v60 = vmul.f32 1.442695, %v513_v54  ;;  %v1340_v55 = vrot.slane %v2952_v24, 1  ;;  %v1688_v2 = vrot.slane %v230_v22, 2 }
  0x73   : > { %v2320_v62 = vpop.eup %2319  ;;  %v517_v10 = vmul.f32 1.442695, %v514_v59  ;;  %v1699_v59 = vrot.slane %v2168_v49, 2 }
  0x74   : > { %v2322_v5 = vpop.eup %2321  ;;  %v495_v9 = vmul.f32 0.6931472, %v2320_v62  ;;  %2325 = vpow2.f32 %v515_v60  ;;  %418 = vrot.lane.b32.xlu1 %v346_v57, %s2821_s26  ;;  %v1339_v60 = vrot.slane %v2950_v23, 1  ;;  %v1689_v3 = vsel %vm1684_vm7, %v1686_v1, %v1688_v2 }
  0x75   : > { %v504_v18 = vmul.f32 0.6931472, %v2322_v5  ;;  %2327 = vpow2.f32 %v517_v10  ;;  %416 = vrot.lane.b32.xlu0 %v344_v52, %s2821_s26  ;;  %v824_v5 = vmul.f32 %v673_v35, %v2952_v24  ;;  %v1685_v10 = vrot.slane %v2950_v23, 2 }
  0x76   : > { %v501_v25 = vsel %vm3041_vm2, %v498_v58, %v495_v9  ;;  %v5113_v58 = vrot.slane %v2980_v41, 2  ;;  %v3169_v34 = vmul.f32 %v1689_v3, %v2952_v24 }
  0x77   : > { %v510_v27 = vsel %vm3048_vm3, %v507_v0, %v504_v18  ;;  %v511_v28 = vadd.f32 %v501_v25, %v3006_v8  ;;  %v846_v8 = vmul.f32 %v2318_v48, %v845_v29  ;;  %v1341_v0 = vsel %vm1338_vm6, %v1339_v60, %v1340_v55 }
  0x78   : > { %v512_v31 = vadd.f32 %v510_v27, %v3004_v4  ;;  %538 = vrot.lane.b32.xlu1 %v344_v52, %s2823_s15  ;;  %v3077_v4 = vpack.i.bf16 %v3073_v37, %v3014_v11  ;;  %v3132_v62 = vsel %vm1684_vm7, %v5113_v58, %v1699_v59  ;;  %v834_v9 = vsub.f32 0.0, %v824_v5  ;;  %5240 = vst [vmem:[#allocation37_spill] sm:$0xff] %v3169_v34 }
  0x79   : > { %540 = vrot.lane.b32.xlu0 %v346_v57, %s2823_s15  ;;  %5237 = vst [vmem:[#allocation34_spill] sm:$0xff] %v3132_v62  ;;  %v1687_v25 = vsel %vm1684_vm7, %v1685_v10, %v1686_v1  ;;  %v3161_v29 = vmul.f32 %v1341_v0, %v2950_v23  ;;  %v861_v59 = vmul.f32 %v3066_v33, %v3032_v47 }
  0x7a   : > { %v836_v18 = vmin.f32 %v824_v5, %v834_v9  ;;  %v1364_v9 = vrot.slane %v3029_v45, 1 }
  0x7b   : > { %v2324_v38 = vpop.eup %2323  ;;  %5238 = vst [vmem:[#allocation35_spill] sm:$0xff] %v3161_v29 }
  0x7c   : > { %607 = vrot.lane.b32.xlu1 %v346_v57, %s2824_s16  ;;  %v843_v39 = vmul.f32 0.6931472, %v2324_v38  ;;  %v1343_v57 = vsel %vm1338_vm6, %v1340_v55, %v1342_v56  ;;  %v839_v26 = vmul.f32 1.442695, %v836_v18  ;;  %v863_v18 = vmul.f32 1.442695, %v861_v59 }
  0x7d   : > { %605 = vrot.lane.b32.xlu0 %v344_v52, %s2824_s16  ;;  %v3165_v32 = vmul.f32 %v1343_v57, %v2952_v24 }
  0x7e   : > { %v2326_v43 = vpop.eup %2325  ;;  %v849_v61 = vsel %vm848_vm4, %v846_v8, %v843_v39  ;;  %v1504_v8 = vsub.f32 0.0, %v3161_v29 }
  0x7f   : > { %v3084_v44 = vadd.f32 %v2326_v43, %v511_v28  ;;  %v2328_v46 = vpop.eup %2327  ;;  %v3088_v11 = vadd.f32 %v849_v61, %v3021_v30  ;;  %v1352_v30 = vrot.slane %v2980_v41, 1  ;;  %5239 = vst [vmem:[#allocation36_spill] sm:$0xff] %v3165_v32  ;;  %v1505_v39 = vsub.f32 0.0, %v3165_v32 }
  0x80   : > { %678 = vrot.lane.b32.xlu1 %v673_v35, %s2822_s13  ;;  %v3090_v48 = vadd.f32 %v2328_v46, %v512_v31  ;;  %v3177_v43 = vmul.f32 %v1687_v25, %v2950_v23  ;;  %v1849_v61 = vsub.f32 0.0, %v3169_v34  ;;  %v694_v46 = vrot.slane %v3029_v45, 7 }
  0x81   : > { %5234 = vst [vmem:[#allocation31_spill] sm:$0xff] %v3084_v44  ;;  %5235 = vst [vmem:[#allocation32_spill] sm:$0xff] %v3088_v11  ;;  %676 = vrot.lane.b32.xlu0 %v3000_v63, %s2822_s13  ;;  %v3105_v52 = vsel %vm1338_vm6, %v1351_v36, %v1352_v30  ;;  %v3108_v54 = vsel %vm1338_vm6, %v1352_v30, %v1354_v51  ;;  %v1506_v50 = vmin.f32 %v3161_v29, %v1504_v8  ;;  %v5244_v8 = vmov 0 }
  0x82   : > { %5236 = vst [vmem:[#allocation33_spill] sm:$0xff] %v3090_v48  ;;  %v3113_v6 = vpack.i.bf16 %v3105_v52, %v3108_v54  ;;  %5241 = vst [vmem:[#allocation38_spill] sm:$0xff] %v3177_v43  ;;  %v828_v36 = vmax.f32 %v824_v5, 0.0  ;;  %v1848_v51 = vsub.f32 0.0, %v3177_v43  ;;  %v3192_v55 = vsel %vm668_vm1, %v692_v17, %v694_v46 }
  0x84   : > { %756 = vrot.lane.b32.xlu1 %v3000_v63, %s2821_s26 }
  0x85   : > { %2227 = vrot.lane.b32.xlu0 %v3077_v4, %s2822_s13 }
  0x88   : > { %878 = vrot.lane.b32.xlu1 %v3000_v63, %s2823_s15 }
  0x89   : > { %758 = vrot.lane.b32.xlu0 %v673_v35, %s2821_s26 }
  0x8c   : > { %1017 = vrot.lane.b32.xlu1 %v2952_v24, %s2822_s13 }
  0x8d   : > { %1015 = vrot.lane.b32.xlu0 %v2950_v23, %s2822_s13 }
  0x90   : > { %1083 = vrot.lane.b32.xlu1 %v2952_v24, %s2821_s26 }
  0x91   : > { %1081 = vrot.lane.b32.xlu0 %v2950_v23, %s2821_s26 }
  0x94   : > { %1430 = vrot.lane.b32.xlu1 %v1343_v57, %s2821_s26 }
  0x95   : > { %1348 = vrot.lane.b32.xlu0 %v1343_v57, %s2822_s13 }
  0x98   : > { %945 = vrot.lane.b32.xlu1 %v3000_v63, %s2824_s16  ;;  %v2164_v63 = vmul.f32 -1.442695, %v230_v22  ;;  %v1851_v22 = vmin.f32 %v3169_v34, %v1849_v61 }
  0x99   : > { %880 = vrot.lane.b32.xlu0 %v673_v35, %s2823_s15 }
  0x9a   : > { %2329 = vpow2.f32 %v2164_v63 }
  0x9b   : > { %2331 = vpow2.f32 %v839_v26 }
  0x9c   : > { %1428 = vrot.lane.b32.xlu1 %v1341_v0, %s2821_s26 }
  0x9d   : > { %1346 = vrot.lane.b32.xlu0 %v1341_v0, %s2822_s13 }
  0xa0   : > { %1774 = vrot.lane.b32.xlu1 %v1689_v3, %s2821_s26 }
  0xa1   : > { %1694 = vrot.lane.b32.xlu0 %v1689_v3, %s2822_s13 }
  0xa4   : > { %1201 = vrot.lane.b32.xlu1 %v2950_v23, %s2823_s15  ;;  %v2330_v27 = vpop.eup %2329 }
  0xa5   : > { %947 = vrot.lane.b32.xlu0 %v673_v35, %s2824_s16  ;;  %v246_v28 = vadd.f32 1.0, %v2330_v27  ;;  %v2332_v31 = vpop.eup %2331  ;;  %v826_v35 = vmul.f32 %v2980_v41, %v3073_v37  ;;  %v1507_v37 = vmin.f32 %v3165_v32, %v1505_v39 }
  0xa6   : > { %v850_v38 = vadd.f32 1.0, %v2332_v31  ;;  %v853_v49 = vmul.f32 -0.5, %v2332_v31 }
  0xa7   : > { %2333 = vrcp.f32 %v246_v28  ;;  %v830_v30 = vmul.f32 %v826_v35, %v824_v5  ;;  %v1510_v2 = vmul.f32 1.442695, %v1507_v37  ;;  %v1854_v5 = vmul.f32 1.442695, %v1851_v22 }
  0xa8   : > { %1550 = vrot.lane.b32.xlu1 %v1343_v57, %s2823_s15  ;;  %2335 = vlog2.f32 %v850_v38  ;;  %v854_v60 = vadd.f32 1.0, %v853_v49 }
  0xa9   : > { %1203 = vrot.lane.b32.xlu0 %v2952_v24, %s2823_s15  ;;  %v3199_v1 = vsub.f32 %v828_v36, %v830_v30 }
  0xaa   : > { %v3212_v28 = vmul.f32 %v2332_v31, %v854_v60 }
  0xab   : > { %5242 = vst [vmem:[#allocation39_spill] sm:$0xff] %v3199_v1 }
  0xac   : > { %1772 = vrot.lane.b32.xlu1 %v1687_v25, %s2821_s26  ;;  %5243 = vst [vmem:[#allocation40_spill] sm:$0xff] %v3212_v28 }
  0xad   : > { %1692 = vrot.lane.b32.xlu0 %v1687_v25, %s2822_s13 }
  0xb0   : > { %1269 = vrot.lane.b32.xlu1 %v2952_v24, %s2824_s16 }
  0xb1   : > { %1267 = vrot.lane.b32.xlu0 %v2950_v23, %s2824_s16  ;;  %v3194_v56 = vpop.eup %2333 }
  0xb2   : > { %v1366_v63 = vrot.slane %v3194_v56, 1  ;;  %v2336_v46 = vpop.eup %2335 }
  0xb4   : > { %1616 = vrot.lane.b32.xlu1 %v1343_v57, %s2824_s16  ;;  %v1508_v57 = vmul.f32 1.442695, %v1506_v50  ;;  %v3231_v36 = vsel %vm1338_vm6, %v1364_v9, %v1366_v63  ;;  %v1710_v63 = vrot.slane %v3194_v56, 2 }
  0xb5   : > { %1548 = vrot.lane.b32.xlu0 %v1341_v0, %s2823_s15  ;;  %v1533_v22 = vmul.f32 %v3231_v36, %v3037_v53 }
  0xb6   : > { %2337 = vpow2.f32 %v1508_v57  ;;  %v1707_v57 = vrot.slane %v3026_v42, 2 }
  0xb7   : > { %2339 = vpow2.f32 %v1510_v2 }
  0xb8   : > { %1614 = vrot.lane.b32.xlu1 %v1341_v0, %s2824_s16  ;;  %v856_v0 = vand.u32 2147483647, %v2332_v31  ;;  %v1363_v31 = vrot.slane %v3026_v42, 1  ;;  %2341 = vpow2.f32 %v1854_v5  ;;  %v1708_v5 = vrot.slane %v3029_v45, 2 }
  0xb9   : > { %1894 = vrot.lane.b32.xlu0 %v1689_v3, %s2823_s15  ;;  %2343 = vpow2.f32 %v863_v18 }
  0xba   : > { %vm3214_vm8 = vcmp.lt.f32.partialorder %v856_v0, 0.0004427343 }
  0xbb   : > { %v5245_v8 = vsel %vm3214_vm8, 4294967295, %v5244_v8 }
  0xbc   : > { %1960 = vrot.lane.b32.xlu1 %v1689_v3, %s2824_s16  ;;  %v1850_v3 = vmin.f32 %v3177_v43, %v1848_v51  ;;  %5246 = vst [vmem:[#allocation41_spill] sm:$0xff] %v5245_v8 }
  0xbd   : > { %1892 = vrot.lane.b32.xlu0 %v1687_v25, %s2823_s15 }
  0xbe   : > { %v1852_v61 = vmul.f32 1.442695, %v1850_v3  ;;  %v3246_v3 = vmul.f32 0.6931472, %v2336_v46 }
  0xc0   : > { %698 = vrot.lane.b32.xlu1 %v3066_v33, %s2822_s13  ;;  %5247 = vst [vmem:[#allocation42_spill] sm:$0xff] %v3246_v3  ;;  %2345 = vpow2.f32 %v1852_v61 }
  0xc1   : > { %1958 = vrot.lane.b32.xlu0 %v1687_v25, %s2824_s16  ;;  %v862_v25 = vmul.f32 %v3192_v55, %v3037_v53 }
  0xc3   : > { %v865_v30 = vmul.f32 1.442695, %v862_v25 }
  0xc4   : > { %700 = vrot.lane.b32.xlu1 %v3192_v55, %s2822_s13 }
  0xc5   : > { %764 = vrot.lane.b32.xlu0 %v3066_v33, %s2821_s26  ;;  %2347 = vpow2.f32 %v865_v30 }
  0xc6   : > { %v409_v26 = vpop.permute.xlu1 %408  ;;  %v322_v27 = vpop.permute.xlu0 %321 }
  0xc7   : > { %v3219_v38 = vmul.f32 %v409_v26, %v2950_v23  ;;  %v3222_v35 = vmul.f32 %v322_v27, %v2950_v23 }
  0xc8   : > { %886 = vrot.lane.b32.xlu1 %v3066_v33, %s2823_s15 }
  0xc9   : > { %v430_v50 = vsub.f32 0.0, %v3219_v38  ;;  %v363_v49 = vsub.f32 0.0, %v3222_v35  ;;  %766 = vrot.lane.b32.xlu0 %v3192_v55, %s2821_s26 }
  0xca   : > { %v533_v37 = vpop.permute.xlu1 %532  ;;  %v324_v51 = vpop.permute.xlu0 %323 }
  0xcb   : > { %v432_v59 = vmin.f32 %v3219_v38, %v430_v50  ;;  %v365_v60 = vmin.f32 %v3222_v35, %v363_v49  ;;  %v3241_v0 = vmul.f32 %v533_v37, %v2952_v24  ;;  %v3244_v2 = vmul.f32 %v324_v51, %v2952_v24 }
  0xcc   : > { %1025 = vrot.lane.b32.xlu1 %v3029_v45, %s2822_s13  ;;  %v1536_v49 = vmul.f32 1.442695, %v1533_v22  ;;  %v3258_v37 = vsel %vm1338_vm6, %v1363_v31, %v1364_v9  ;;  %v3277_v9 = vsel %vm1684_vm7, %v1708_v5, %v1710_v63 }
  0xcd   : > { %v434_v18 = vmul.f32 1.442695, %v432_v59  ;;  %v367_v25 = vmul.f32 1.442695, %v365_v60  ;;  %v553_v26 = vsub.f32 0.0, %v3241_v0  ;;  %v364_v27 = vsub.f32 0.0, %v3244_v2  ;;  %1023 = vrot.lane.b32.xlu0 %v3026_v42, %s2822_s13  ;;  %v3265_v60 = vpop.eup %2337 }
  0xce   : > { %v2208_v61 = vpop.permute.xlu1 %2207  ;;  %v411_v46 = vpop.permute.xlu0 %410  ;;  %v3263_v59 = vsel %vm1684_vm7, %v1707_v57, %v1708_v5  ;;  %v1532_v57 = vmul.f32 %v3258_v37, %v3032_v47  ;;  %v1512_v10 = vadd.f32 1.0, %v3265_v60 }
  0xcf   : > { %2349 = vpow2.f32 %v434_v18  ;;  %v555_v56 = vmin.f32 %v3241_v0, %v553_v26  ;;  %v366_v51 = vmin.f32 %v3244_v2, %v364_v27  ;;  %v3272_v22 = vmul.f32 %v411_v46, %v2952_v24 }
  0xd0   : > { %2351 = vpow2.f32 %v367_v25  ;;  %1091 = vrot.lane.b32.xlu1 %v3029_v45, %s2821_s26  ;;  %v1877_v18 = vmul.f32 %v3277_v9, %v3037_v53  ;;  %v3285_v26 = vpack.i.bf16 %v2980_v41, %v2977_v40  ;;  %v3287_v25 = vpop.eup %2339  ;;  %v2210_v39 = vunpack.i.h.bf16 %v2208_v61 }
  0xd1   : > { %v369_v31 = vmul.f32 1.442695, %v366_v51  ;;  %v558_v27 = vmul.f32 1.442695, %v555_v56  ;;  %v431_v46 = vsub.f32 0.0, %v3272_v22  ;;  %1089 = vrot.lane.b32.xlu0 %v3026_v42, %s2821_s26  ;;  %2353 = vpow2.f32 %v1536_v49  ;;  %v3292_v51 = vpop.eup %2341 }
  0xd2   : > { %v2213_v5 = vpop.permute.xlu1 %2212  ;;  %v531_v63 = vpop.permute.xlu0 %530  ;;  %v2209_v50 = vunpack.i.l.bf16 %v2208_v61  ;;  %v3296_v17 = vmul.f32 %v3263_v59, %v3032_v47  ;;  %v3307_v61 = vmul.f32 1.442695, %v1532_v57  ;;  %v3309_v20 = vmul.f32 1.442695, %v1877_v18 }
  0xd3   : > { %v3299_v30 = vpop.eup %2343  ;;  %2355 = vpow2.f32 %v369_v31  ;;  %v433_v56 = vmin.f32 %v3272_v22, %v431_v46  ;;  %v2214_v58 = vunpack.i.l.bf16 %v2213_v5  ;;  %v3303_v21 = vmul.f32 %v531_v63, %v2950_v23 }
  0xd4   : > { %5248 = vst [vmem:[#allocation43_spill] sm:$0xff] %v3299_v30  ;;  %1438 = vrot.lane.b32.xlu1 %v3231_v36, %s2821_s26  ;;  %v2215_v49 = vunpack.i.h.bf16 %v2213_v5  ;;  %5249 = vst [vmem:[#allocation44_spill] sm:$0xff] %v3307_v61  ;;  %v1521_v19 = vadd.f32 1.0, %v3287_v25  ;;  %v3312_v15 = vpop.eup %2345  ;;  %2357 = vpow2.f32 %v558_v27  ;;  %v356_v5 = vmul.f32 %v2210_v39, %v2980_v41 }
  0xd5   : > { %5250 = vst [vmem:[#allocation45_spill] sm:$0xff] %v3309_v20  ;;  %5251 = vst [vmem:[#allocation46_spill] sm:$0xff] %v3312_v15  ;;  %v436_v31 = vmul.f32 1.442695, %v433_v56  ;;  %v552_v46 = vsub.f32 0.0, %v3303_v21  ;;  %1372 = vrot.lane.b32.xlu0 %v3231_v36, %s2822_s13  ;;  %2359 = vlog2.f32 %v1512_v10  ;;  %v3323_v18 = vmul.f32 -0.5, %v3265_v60  ;;  %v3325_v13 = vpop.eup %2347 }
  0xd6   : > { %v598_v63 = vpop.permute.xlu1 %597  ;;  %5253 = vst [vmem:[#allocation48_spill] sm:$0xff] %v3325_v13  ;;  %v355_v27 = vmul.f32 %v2209_v50, %v2977_v40  ;;  %v422_v56 = vmul.f32 %v2214_v58, %v2977_v40  ;;  %v357_v50 = vmax.f32 %v3222_v35, 0.0  ;;  %v424_v58 = vmax.f32 %v3219_v38, 0.0 }
  0xd7   : > { %v3320_v57 = vmul.f32 %v598_v63, %v2950_v23  ;;  %5252 = vst [vmem:[#allocation47_spill] sm:$0xff] %v3323_v18  ;;  %2361 = vpow2.f32 %v436_v31  ;;  %v554_v7 = vmin.f32 %v3303_v21, %v552_v46  ;;  %v423_v23 = vmul.f32 %v2215_v49, %v2980_v41 }
  0xd8   : > { %953 = vrot.lane.b32.xlu1 %v3066_v33, %s2824_s16  ;;  %2363 = vlog2.f32 %v1521_v19  ;;  %v3337_v63 = vadd.f32 1.0, %v3312_v15  ;;  %v2218_v33 = vpop.permute.xlu0 %2217  ;;  %v360_v49 = vmul.f32 %v356_v5, %v3244_v2  ;;  %v358_v30 = vmax.f32 %v3244_v2, 0.0 }
  0xd9   : > { %v3332_v39 = vpop.eup %2349  ;;  %v619_v10 = vsub.f32 0.0, %v3320_v57  ;;  %v556_v46 = vmul.f32 1.442695, %v554_v7  ;;  %888 = vrot.lane.b32.xlu0 %v3192_v55, %s2823_s15  ;;  %v359_v11 = vmul.f32 %v355_v27, %v3222_v35  ;;  %v426_v7 = vmul.f32 %v422_v56, %v3219_v38 }
  0xda   : > { %v3339_v14 = vpop.eup %2351  ;;  %v438_v31 = vadd.f32 1.0, %v3332_v39  ;;  %v441_v16 = vmul.f32 -0.5, %v3332_v39  ;;  %v427_v5 = vmul.f32 %v423_v23, %v3272_v22  ;;  %v2219_v15 = vunpack.i.l.bf16 %v2218_v33  ;;  %v2223_v27 = vpop.permute.xlu1 %2222 }
  0xdb   : > { %v371_v19 = vadd.f32 1.0, %v3339_v14  ;;  %v621_v12 = vmin.f32 %v3320_v57, %v619_v10  ;;  %v3350_v13 = vpop.eup %2353  ;;  %v374_v10 = vmul.f32 -0.5, %v3339_v14  ;;  %v425_v2 = vmax.f32 %v3272_v22, 0.0 }
  0xdc   : > { %5254 = vst [vmem:[#allocation49_spill] sm:$0xff] %v3350_v13  ;;  %1436 = vrot.lane.b32.xlu1 %v3258_v37, %s2821_s26  ;;  %2365 = vlog2.f32 %v438_v31  ;;  %v2220_v35 = vunpack.i.h.bf16 %v2218_v33  ;;  %v3365_v38 = vsub.f32 %v358_v30, %v360_v49  ;;  %v442_v23 = vadd.f32 1.0, %v441_v16 }
  0xdd   : > { %v623_v43 = vmul.f32 1.442695, %v621_v12  ;;  %v3359_v32 = vpop.eup %2355  ;;  %2367 = vpow2.f32 %v556_v46  ;;  %1370 = vrot.lane.b32.xlu0 %v3258_v37, %s2822_s13  ;;  %v3370_v31 = vsub.f32 %v357_v50, %v359_v11  ;;  %v3372_v34 = vsub.f32 %v424_v58, %v426_v7  ;;  %v600_v46 = vpop.permute.xlu0 %599 }
  0xde   : > { %2369 = vlog2.f32 %v371_v19  ;;  %v380_v56 = vadd.f32 1.0, %v3359_v32  ;;  %v3368_v12 = vpop.eup %2357  ;;  %v546_v22 = vmax.f32 %v3303_v21, 0.0  ;;  %v3379_v30 = vsub.f32 %v425_v2, %v427_v5 }
  0xdf   : > { %2371 = vpow2.f32 %v623_v43  ;;  %v3377_v33 = vpop.eup %2359  ;;  %v613_v16 = vmax.f32 %v3320_v57, 0.0  ;;  %v544_v49 = vmul.f32 %v2219_v15, %v2977_v40  ;;  %v375_v50 = vadd.f32 1.0, %v374_v10 }
  0xe0   : > { %1782 = vrot.lane.b32.xlu1 %v3277_v9, %s2821_s26  ;;  %5255 = vst [vmem:[#allocation50_spill] sm:$0xff] %v3377_v33  ;;  %2373 = vlog2.f32 %v380_v56  ;;  %v377_v58 = vand.u32 2147483647, %v3339_v14  ;;  %v444_v43 = vand.u32 2147483647, %v3332_v39  ;;  %v545_v19 = vmul.f32 %v2220_v35, %v2980_v41 }
  0xe1   : > { %v3383_v11 = vpop.eup %2361  ;;  %1716 = vrot.lane.b32.xlu0 %v3277_v9, %s2822_s13  ;;  %v383_v5 = vmul.f32 -0.5, %v3359_v32  ;;  %v3394_v2 = vmul.f32 %v3332_v39, %v442_v23  ;;  %v572_v10 = vmul.f32 -0.5, %v3368_v12  ;;  %v548_v13 = vmul.f32 %v544_v49, %v3303_v21 }
  0xe2   : > { %v350_v7 = vpop.permute.xlu1 %349  ;;  %v3390_v56 = vpop.eup %2363  ;;  %v447_v15 = vadd.f32 1.0, %v3383_v11  ;;  %v2225_v33 = vunpack.i.h.bf16 %v2223_v27  ;;  %v2224_v62 = vunpack.i.l.bf16 %v2223_v27  ;;  %v610_v35 = vmul.f32 %v600_v46, %v2952_v24 }
  0xe3   : > { %5256 = vst [vmem:[#allocation51_spill] sm:$0xff] %v3390_v56  ;;  %v352_v29 = vpop.permute.xlu0 %351  ;;  %v386_v56 = vand.u32 2147483647, %v3359_v32  ;;  %v450_v48 = vmul.f32 -0.5, %v3383_v11  ;;  %v569_v39 = vadd.f32 1.0, %v3368_v12  ;;  %v3410_v21 = vsub.f32 %v546_v22, %v548_v13 }
  0xe4   : > { %955 = vrot.lane.b32.xlu1 %v3192_v55, %s2824_s16  ;;  %v392_v23 = vmul.f32 %v352_v29, %v3037_v53  ;;  %vm3406_vm9 = vcmp.lt.f32.partialorder %v444_v43, 0.0004427343  ;;  %v612_v24 = vmul.f32 %v2225_v33, %v2980_v41  ;;  %v611_v27 = vmul.f32 %v2224_v62, %v2977_v40 }
  0xe5   : > { %v614_v46 = vmax.f32 %v610_v35, 0.0  ;;  %2232 = vrot.lane.b32.xlu0 %v3077_v4, %s2821_s26  ;;  %v3417_v3 = vmul.f32 %v3339_v14, %v375_v50  ;;  %vm3419_vm10 = vcmp.lt.f32.partialorder %v377_v58, 0.0004427343  ;;  %2375 = vlog2.f32 %v447_v15 }
  0xe6   : > { %v419_v55 = vpop.permute.xlu1 %418  ;;  %v2366_v49 = vpop.eup %2365  ;;  %v573_v13 = vadd.f32 1.0, %v572_v10  ;;  %v575_v22 = vand.u32 2147483647, %v3368_v12  ;;  %v384_v62 = vadd.f32 1.0, %v383_v5  ;;  %v549_v43 = vmul.f32 %v545_v19, %v3241_v0 }
  0xe7   : > { %v3424_v33 = vpop.eup %2367  ;;  %v615_v28 = vmul.f32 %v611_v27, %v3320_v57  ;;  %v616_v8 = vmul.f32 %v612_v24, %v610_v35  ;;  %v417_v1 = vpop.permute.xlu0 %416  ;;  %2377 = vlog2.f32 %v569_v39  ;;  %v620_v58 = vsub.f32 0.0, %v610_v35 }
  0xe8   : > { %1211 = vrot.lane.b32.xlu1 %v3029_v45, %s2823_s15  ;;  %v2370_v14 = vpop.eup %2369  ;;  %v560_v50 = vadd.f32 1.0, %v3424_v33  ;;  %v395_v15 = vmul.f32 1.442695, %v392_v23  ;;  %vm3433_vm11 = vcmp.lt.f32.partialorder %v386_v56, 0.0004427343  ;;  %v451_v19 = vadd.f32 1.0, %v450_v48 }
  0xe9   : > { %v3431_v10 = vpop.eup %2371  ;;  %v3437_v5 = vsub.f32 %v613_v16, %v615_v28  ;;  %v3439_v57 = vsub.f32 %v614_v46, %v616_v8  ;;  %1209 = vrot.lane.b32.xlu0 %v3026_v42, %s2823_s15  ;;  %v3443_v61 = vmul.f32 0.6931472, %v2366_v49  ;;  %v453_v39 = vand.u32 2147483647, %v3383_v11 }
  0xea   : > { %v539_v24 = vpop.permute.xlu1 %538  ;;  %v2374_v27 = vpop.eup %2373  ;;  %2379 = vlog2.f32 %v560_v50  ;;  %v391_v56 = vmul.f32 %v350_v7, %v3032_v47  ;;  %v3447_v23 = vmul.f32 0.6931472, %v2370_v14  ;;  %v563_v48 = vmul.f32 -0.5, %v3424_v33 }
  0xeb   : > { %5263 = vst [vmem:[#allocation52_spill] sm:$0xff] %v3439_v57  ;;  %v382_v44 = vmul.f32 0.6931472, %v2374_v27  ;;  %v627_v28 = vadd.f32 1.0, %v3431_v10  ;;  %v541_v8 = vpop.permute.xlu0 %540  ;;  %v3454_v16 = vmul.f32 %v3368_v12, %v573_v13  ;;  %v5264_v46 = vmax.f32 %v3241_v0, 0.0  ;;  %v3496_v13 = vld [vmem:[#allocation2 + $0x10] sm:$0xff] }
  0xec   : > { %1714 = vrot.lane.b32.xlu1 %v3263_v59, %s2822_s13  ;;  %v622_v50 = vmin.f32 %v610_v35, %v620_v58  ;;  %2381 = vpow2.f32 %v395_v15  ;;  %v385_v7 = vmul.f32 %v3359_v32, %v384_v62  ;;  %v3462_v14 = vmul.f32 %v3383_v11, %v451_v19 }
  0xed   : > { %v3458_v49 = vsub.f32 %v5264_v46, %v549_v43  ;;  %2383 = vlog2.f32 %v627_v28  ;;  %v630_v27 = vmul.f32 -0.5, %v3431_v10  ;;  %1558 = vrot.lane.b32.xlu0 %v3231_v36, %s2823_s15  ;;  %vm3471_vm12 = vcmp.lt.f32.partialorder %v453_v39, 0.0004427343 }
  0xee   : > { %v608_v57 = vpop.permute.xlu1 %607  ;;  %v566_v32 = vand.u32 2147483647, %v3424_v33  ;;  %v625_v11 = vmul.f32 1.442695, %v622_v50  ;;  %v393_v35 = vmul.f32 1.442695, %v391_v56  ;;  %v388_v62 = vsel %vm3433_vm11, %v385_v7, %v382_v44 }
  0xef   : > { %v564_v43 = vadd.f32 1.0, %v563_v48  ;;  %v458_v58 = vmul.f32 %v417_v1, %v3032_v47  ;;  %v606_v15 = vpop.permute.xlu0 %605  ;;  %v2376_v19 = vpop.eup %2375  ;;  %v459_v39 = vmul.f32 %v419_v55, %v3037_v53  ;;  %v581_v56 = vmul.f32 %v541_v8, %v3037_v53 }
  0xf0   : > { %1275 = vrot.lane.b32.xlu1 %v3026_v42, %s2824_s16  ;;  %2385 = vpow2.f32 %v625_v11  ;;  %v580_v28 = vmul.f32 %v539_v24, %v3032_v47  ;;  %vm3488_vm13 = vcmp.lt.f32.partialorder %v575_v22, 0.0004427343  ;;  %v631_v44 = vadd.f32 1.0, %v630_v27 }
  0xf1   : > { %2387 = vpow2.f32 %v393_v35  ;;  %v460_v18 = vmul.f32 1.442695, %v458_v58  ;;  %v647_v1 = vmul.f32 %v606_v15, %v3032_v47  ;;  %1780 = vrot.lane.b32.xlu0 %v3263_v59, %s2821_s26  ;;  %v2378_v50 = vpop.eup %2377  ;;  %v390_v55 = vadd.f32 %v388_v62, %v3365_v38  ;;  %v3508_v62 = vld [vmem:[#allocation2 + $0x8] sm:$0xff] }
  0xf2   : > { %v679_v48 = vpop.permute.xlu1 %678  ;;  %v462_v7 = vmul.f32 1.442695, %v459_v39  ;;  %v584_v8 = vmul.f32 1.442695, %v581_v56  ;;  %v582_v11 = vmul.f32 1.442695, %v580_v28  ;;  %v565_v39 = vmul.f32 %v3424_v33, %v564_v43 }
  0xf3   : > { %v449_v24 = vmul.f32 0.6931472, %v2376_v19  ;;  %2389 = vpow2.f32 %v460_v18  ;;  %v649_v22 = vmul.f32 1.442695, %v647_v1  ;;  %v677_v0 = vpop.permute.xlu0 %676  ;;  %v3499_v27 = vmul.f32 %v3496_v13, %v679_v48 }
  0xf4   : > { %1556 = vrot.lane.b32.xlu1 %v3258_v37, %s2823_s15  ;;  %v2380_v35 = vpop.eup %2379  ;;  %vm3503_vm14 = vcmp.lt.f32.partialorder %v566_v32, 0.0004427343  ;;  %v633_v38 = vand.u32 2147483647, %v3431_v10  ;;  %2391 = vpow2.f32 %v462_v7  ;;  %v3511_v15 = vmul.f32 %v3508_v62, %v677_v0 }
  0xf5   : > { %v562_v19 = vmul.f32 0.6931472, %v2380_v35  ;;  %v571_v56 = vmul.f32 0.6931472, %v2378_v50  ;;  %2393 = vpow2.f32 %v584_v8  ;;  %1277 = vrot.lane.b32.xlu0 %v3029_v45, %s2824_s16  ;;  %v632_v18 = vmul.f32 %v3431_v10, %v631_v44 }
  0xf6   : > { %v3516_v32 = vpop.permute.xlu1 %756  ;;  %v2382_v28 = vpop.eup %2381  ;;  %2395 = vpow2.f32 %v582_v11  ;;  %v712_v1 = vsub.f32 0.0, %v3511_v15  ;;  %v713_v48 = vsub.f32 0.0, %v3499_v27  ;;  %v455_v33 = vsel %vm3471_vm12, %v3462_v14, %v449_v24 }
  0xf7   : > { %v2384_v0 = vpop.eup %2383  ;;  %v568_v43 = vsel %vm3503_vm14, %v565_v39, %v562_v19  ;;  %v3526_v50 = vadd.f32 %v2382_v28, %v390_v55  ;;  %2397 = vpow2.f32 %v649_v22  ;;  %v2228_v7 = vpop.permute.xlu0 %2227  ;;  %v648_v8 = vmul.f32 %v608_v57, %v3037_v53 }
  0xf8   : > { %1902 = vrot.lane.b32.xlu1 %v3277_v9, %s2823_s15  ;;  %v578_v10 = vadd.f32 %v568_v43, %v3410_v21  ;;  %v629_v44 = vmul.f32 0.6931472, %v2384_v0  ;;  %v714_v11 = vmin.f32 %v3511_v15, %v712_v1  ;;  %vm634_vm15 = vcmp.lt.f32.partialorder %v633_v38, 0.0004427343 }
  0xf9   : > { %v715_v14 = vmin.f32 %v3499_v27, %v713_v48  ;;  %v2230_v12 = vunpack.i.h.bf16 %v2228_v7  ;;  %v2229_v24 = vunpack.i.l.bf16 %v2228_v7  ;;  %1624 = vrot.lane.b32.xlu0 %v3231_v36, %s2824_s16  ;;  %v5271_v21 = vsel %vm3419_vm10, %v3417_v3, %v3447_v23 }
  0xfa   : > { %v3536_v55 = vpop.permute.xlu1 %878  ;;  %v3538_v22 = vpop.eup %2385  ;;  %v389_v57 = vadd.f32 %v5271_v21, %v3370_v31  ;;  %v577_v35 = vsel %vm3488_vm13, %v3454_v16, %v571_v56  ;;  %v635_v58 = vsel %vm634_vm15, %v632_v18, %v629_v44  ;;  %v716_v38 = vmul.f32 1.442695, %v714_v11 }
  0xfb   : > { %v2388_v19 = vpop.eup %2387  ;;  %v5272_v36 = vsel %vm3406_vm9, %v3394_v2, %v3443_v61  ;;  %v457_v29 = vadd.f32 %v455_v33, %v3379_v30  ;;  %v645_v28 = vadd.f32 %v635_v58, %v3437_v5  ;;  %v636_v3 = vadd.f32 1.0, %v3538_v22  ;;  %v3558_v31 = vpop.permute.xlu0 %758 }
  0xfc   : > { %v456_v39 = vadd.f32 %v5272_v36, %v3372_v34  ;;  %2242 = vrot.lane.b32.xlu1 %v3285_v26, %s2822_s13  ;;  %v3562_v23 = vadd.f32 %v2388_v19, %v389_v57  ;;  %v651_v16 = vmul.f32 1.442695, %v648_v8  ;;  %v718_v46 = vmul.f32 1.442695, %v715_v14 }
  0xfd   : > { %v705_v20 = vmul.f32 %v2230_v12, %v2980_v41  ;;  %v2390_v56 = vpop.eup %2389  ;;  %v579_v34 = vadd.f32 %v577_v35, %v3458_v49  ;;  %2399 = vlog2.f32 %v636_v3  ;;  %v704_v61 = vmul.f32 %v2229_v24, %v2977_v40  ;;  %2237 = vrot.lane.b32.xlu0 %v3077_v4, %s2823_s15 }
  0xfe   : > { %v3569_v30 = vpop.permute.xlu1 %1017  ;;  %v1865_v2 = vadd.f32 1.0, %v3292_v51  ;;  %v2392_v5 = vpop.eup %2391  ;;  %v3572_v18 = vadd.f32 %v2390_v56, %v456_v39  ;;  %2401 = vpow2.f32 %v716_v38  ;;  %v707_v1 = vmax.f32 %v3499_v27, 0.0  ;;  %v5280_v56 = vld [vmem:[#allocation40_spill] sm:$0xff] }
  0xff   : > { %v709_v48 = vmul.f32 %v705_v20, %v3499_v27  ;;  %v2394_v0 = vpop.eup %2393  ;;  %v3576_v49 = vadd.f32 %v2392_v5, %v457_v29  ;;  %v706_v33 = vmax.f32 %v3511_v15, 0.0  ;;  %2403 = vpow2.f32 %v718_v46  ;;  %v3580_v7 = vpop.permute.xlu0 %1015  ;;  %v5278_v20 = vld [vmem:[#allocation39_spill] sm:$0xff] }
 0x100   : > { %v708_v43 = vmul.f32 %v704_v61, %v3511_v15  ;;  %2252 = vrot.lane.b32.xlu1 %v3113_v6, %s2822_s13  ;;  %v2396_v44 = vpop.eup %2395  ;;  %v639_v8 = vmul.f32 -0.5, %v3538_v22  ;;  %v3585_v11 = vadd.f32 %v2394_v0, %v579_v34  ;;  %2405 = vpow2.f32 %v651_v16  ;;  %v5276_v16 = vld [vmem:[#allocation44_spill] sm:$0xff]  ;;  %v5281_v34 = vld [vmem:[#allocation42_spill] sm:$0xff]  ;;  %v5284_v0 = vld [vmem:[#allocation33_spill] sm:$0xff] }
 0x101   : > { %v3587_v27 = vsub.f32 %v707_v1, %v709_v48  ;;  %v2398_v14 = vpop.eup %2397  ;;  %v3589_v12 = vadd.f32 %v2396_v44, %v578_v10  ;;  %v1878_v24 = vmul.f32 1.442695, %v3296_v17  ;;  %2247 = vrot.lane.b32.xlu0 %v3285_v26, %s2821_s26  ;;  %v1524_v15 = vmul.f32 -0.5, %v3287_v25 }
 0x102   : > { %v3592_v21 = vsub.f32 %v706_v33, %v708_v43  ;;  %v3597_v57 = vpop.permute.xlu1 %1083  ;;  %v3599_v35 = vadd.f32 %v2398_v14, %v645_v28  ;;  %v1496_v58 = vmul.f32 %v2977_v40, %v3105_v52  ;;  %v5273_v38 = vrot.slane %v2980_v41, 2  ;;  %v5275_v52 = vld [vmem:[#allocation31_spill] sm:$0xff] }
 0x103   : > { %v5274_v10 = vrot.slane %v2977_v40, 2  ;;  %2407 = vlog2.f32 %v3337_v63  ;;  %v1497_v19 = vmul.f32 %v2980_v41, %v3108_v54  ;;  %v1518_v36 = vand.u32 2147483647, %v3265_v60  ;;  %v3615_v29 = vpop.permute.xlu0 %1081  ;;  %v5277_v63 = vld [vmem:[#allocation47_spill] sm:$0xff] }
 0x104   : > { %v1527_v39 = vand.u32 2147483647, %v3287_v25  ;;  %1622 = vrot.lane.b32.xlu1 %v3258_v37, %s2824_s16  ;;  %2409 = vlog2.f32 %v1865_v2  ;;  %v3620_v28 = vadd.f32 1e-06, %v5275_v52  ;;  %v640_v3 = vadd.f32 1.0, %v639_v8  ;;  %v5283_v37 = vld [vmem:[#allocation45_spill] sm:$0xff] }
 0x105   : > { %v3608_v17 = vsel %vm1684_vm7, %v5274_v10, %v5273_v38  ;;  %2411 = vpow2.f32 %v5276_v16  ;;  %v1516_v46 = vadd.f32 1.0, %v5277_v63  ;;  %v5282_v61 = vsel %vm3214_vm8, %v5280_v56, %v5281_v34  ;;  %2257 = vrot.lane.b32.xlu0 %v3113_v6, %s2821_s26  ;;  %v5285_v43 = vld [vmem:[#allocation35_spill] sm:$0xff]  ;;  %v5286_v8 = vld [vmem:[#allocation34_spill] sm:$0xff]  ;;  %v5287_v10 = vld [vmem:[#allocation36_spill] sm:$0xff] }
 0x106   : > { %v3630_v5 = vadd.f32 %v5282_v61, %v5278_v20  ;;  %v642_v1 = vand.u32 2147483647, %v3538_v22  ;;  %2413 = vpow2.f32 %v5283_v37  ;;  %v1525_v2 = vadd.f32 1.0, %v1524_v15  ;;  %v3636_v48 = vpop.permute.xlu1 %1430 }
 0x107   : > { %v3639_v33 = vadd.f32 1e-06, %v5284_v0  ;;  %2415 = vpow2.f32 %v1878_v24  ;;  %v1500_v44 = vmul.f32 %v1496_v58, %v5285_v43  ;;  %v3644_v14 = vpack.i.bf16 %v3608_v17, %v5286_v8  ;;  %v2400_v38 = vpop.eup %2399  ;;  %v3655_v63 = vpop.permute.xlu0 %1348  ;;  %v5292_v24 = vld [vmem:[#allocation46_spill] sm:$0xff] }
 0x108   : > { %v1501_v52 = vmul.f32 %v1497_v19, %v5287_v10  ;;  %vm3647_vm0 = vcmp.lt.f32.partialorder %v1518_v36, 0.0004427343  ;;  %vm3651_vm1 = vcmp.lt.f32.partialorder %v1527_v39, 0.0004427343  ;;  %1968 = vrot.lane.b32.xlu1 %v3277_v9, %s2824_s16  ;;  %v1859_v58 = vmul.f32 -0.5, %v5292_v24  ;;  %v3660_v20 = vpop.eup %2401 }
 0x109   : > { %v638_v54 = vmul.f32 0.6931472, %v2400_v38  ;;  %v641_v19 = vmul.f32 %v3538_v22, %v640_v3  ;;  %v1517_v36 = vmul.f32 %v3265_v60, %v1516_v46  ;;  %v1868_v56 = vmul.f32 -0.5, %v3292_v51  ;;  %v3665_v39 = vpop.eup %2403  ;;  %1900 = vrot.lane.b32.xlu0 %v3263_v59, %s2823_s15  ;;  %v5294_v46 = vld [vmem:[#allocation50_spill] sm:$0xff]  ;;  %v5295_v38 = vld [vmem:[#allocation52_spill] sm:$0xff] }
 0x10a   : > { %vm643_vm2 = vcmp.lt.f32.partialorder %v642_v1, 0.0004427343  ;;  %v720_v34 = vadd.f32 1.0, %v3660_v20  ;;  %v1526_v61 = vmul.f32 %v3287_v25, %v1525_v2  ;;  %v3671_v9 = vpop.permute.xlu1 %945  ;;  %v1841_v37 = vmul.f32 %v2980_v41, %v5286_v8  ;;  %v2406_v22 = vpop.eup %2405  ;;  %v5296_v25 = vld [vmem:[#allocation51_spill] sm:$0xff] }
 0x10b   : > { %5293 = vst [vmem:[#allocation31_spill] sm:$0xff] %v3671_v9  ;;  %v644_v3 = vsel %vm643_vm2, %v641_v19, %v638_v54  ;;  %v729_v60 = vadd.f32 1.0, %v3665_v39  ;;  %v1514_v0 = vmul.f32 0.6931472, %v5294_v46  ;;  %v1840_v1 = vmul.f32 %v2977_v40, %v3608_v17  ;;  %v3681_v42 = vpop.permute.xlu0 %880 }
 0x10c   : > { %v646_v45 = vadd.f32 %v644_v3, %v5295_v38  ;;  %2417 = vlog2.f32 %v720_v34  ;;  %v1523_v2 = vmul.f32 0.6931472, %v5296_v25  ;;  %v1860_v53 = vadd.f32 1.0, %v1859_v58  ;;  %2267 = vrot.lane.b32.xlu1 %v3644_v14, %s2822_s13 }
 0x10d   : > { %v2408_v41 = vpop.eup %2407  ;;  %2419 = vlog2.f32 %v729_v60  ;;  %v5297_v54 = vmax.f32 %v5285_v43, 0.0  ;;  %v1862_v46 = vand.u32 2147483647, %v5292_v24  ;;  %v1869_v47 = vadd.f32 1.0, %v1868_v56  ;;  %2262 = vrot.lane.b32.xlu0 %v3077_v4, %s2824_s16  ;;  %v5301_v56 = vld [vmem:[#allocation38_spill] sm:$0xff] }
 0x10e   : > { %v2410_v40 = vpop.eup %2409  ;;  %v3688_v9 = vadd.f32 %v2406_v22, %v646_v45  ;;  %v5299_v34 = vmax.f32 %v5287_v10, 0.0  ;;  %v1871_v58 = vand.u32 2147483647, %v3292_v51  ;;  %v3695_v38 = vpop.permute.xlu1 %1428  ;;  %v723_v43 = vmul.f32 -0.5, %v3660_v20  ;;  %v5302_v45 = vld [vmem:[#allocation37_spill] sm:$0xff] }
 0x10f   : > { %v1502_v19 = vsub.f32 %v5297_v54, %v1500_v44  ;;  %5300 = vst [vmem:[#allocation47_spill] sm:$0xff] %v3695_v38  ;;  %v2412_v60 = vpop.eup %2411  ;;  %v1520_v44 = vsel %vm3647_vm0, %v1517_v36, %v1514_v0  ;;  %v1844_v25 = vmul.f32 %v1840_v1, %v5301_v56  ;;  %v1845_v22 = vmul.f32 %v1841_v37, %v5302_v45  ;;  %v3706_v38 = vpop.permute.xlu0 %1346  ;;  %v5303_v36 = vld [vmem:[#allocation32_spill] sm:$0xff]  ;;  %v5304_v0 = vld [vmem:[#allocation43_spill] sm:$0xff] }
 0x110   : > { %5298 = vst [vmem:[#allocation44_spill] sm:$0xff] %v3688_v9  ;;  %v1503_v3 = vsub.f32 %v5299_v34, %v1501_v52  ;;  %v2414_v54 = vpop.eup %2413  ;;  %v732_v10 = vmul.f32 -0.5, %v3665_v39  ;;  %v1529_v4 = vsel %vm3651_vm1, %v1526_v61, %v1523_v2  ;;  %v1858_v52 = vmul.f32 0.6931472, %v2408_v41  ;;  %1966 = vrot.lane.b32.xlu1 %v3263_v59, %s2824_s16  ;;  %v5307_v41 = vld [vmem:[#allocation48_spill] sm:$0xff] }
 0x111   : > { %v1861_v34 = vmul.f32 %v5292_v24, %v1860_v53  ;;  %v2416_v15 = vpop.eup %2415  ;;  %v867_v1 = vadd.f32 %v5304_v0, %v5303_v36  ;;  %vm3712_vm3 = vcmp.lt.f32.partialorder %v1862_v46, 0.0004427343  ;;  %v1867_v9 = vmul.f32 0.6931472, %v2410_v40  ;;  %2272 = vrot.lane.b32.xlu0 %v3644_v14, %s2821_s26 }
 0x112   : > { %v1870_v16 = vmul.f32 %v3292_v51, %v1869_v47  ;;  %v868_v61 = vadd.f32 %v5307_v41, %v3630_v5  ;;  %v1530_v53 = vadd.f32 %v1520_v44, %v1502_v19  ;;  %vm3719_vm4 = vcmp.lt.f32.partialorder %v1871_v58, 0.0004427343  ;;  %v3725_v59 = vpop.permute.xlu1 %1774 }
 0x113   : > { %2421 = vrcp.f32 %v3620_v28  ;;  %v724_v2 = vadd.f32 1.0, %v723_v43  ;;  %v1531_v46 = vadd.f32 %v1529_v4, %v1503_v3  ;;  %v5310_v40 = vmax.f32 %v5301_v56, 0.0  ;;  %v3735_v36 = vpop.permute.xlu0 %1694 }
 0x114   : > { %v726_v51 = vand.u32 2147483647, %v3660_v20  ;;  %v733_v5 = vadd.f32 1.0, %v732_v10  ;;  %v5311_v19 = vmax.f32 %v5302_v45, 0.0  ;;  %v1864_v44 = vsel %vm3712_vm3, %v1861_v34, %v1858_v52  ;;  %2282 = vrot.lane.b32.xlu1 %v3113_v6, %s2823_s15  ;;  %v5312_v34 = vld [vmem:[#allocation49_spill] sm:$0xff] }
 0x115   : > { %v1846_v47 = vsub.f32 %v5310_v40, %v1844_v25  ;;  %2423 = vrcp.f32 %v3639_v33  ;;  %v735_v28 = vand.u32 2147483647, %v3665_v39  ;;  %v1873_v3 = vsel %vm3719_vm4, %v1870_v16, %v1867_v9  ;;  %2277 = vrot.lane.b32.xlu0 %v3285_v26, %s2823_s15 }
 0x116   : > { %v1847_v58 = vsub.f32 %v5311_v19, %v1845_v22  ;;  %v2418_v43 = vpop.eup %2417  ;;  %v869_v56 = vadd.f32 1e-06, %v867_v1  ;;  %v870_v25 = vadd.f32 1e-06, %v868_v61  ;;  %v1538_v45 = vadd.f32 %v2412_v60, %v1530_v53  ;;  %v3745_v22 = vpop.permute.xlu1 %1201 }
 0x117   : > { %v2420_v10 = vpop.eup %2419  ;;  %v722_v4 = vmul.f32 0.6931472, %v2418_v43  ;;  %v725_v52 = vmul.f32 %v3660_v20, %v724_v2  ;;  %v1539_v33 = vadd.f32 %v5312_v34, %v1531_v46  ;;  %v1874_v0 = vadd.f32 %v1864_v44, %v1846_v47  ;;  %v3750_v1 = vpop.permute.xlu0 %947 }
 0x118   : > { %vm727_vm5 = vcmp.lt.f32.partialorder %v726_v51, 0.0004427343  ;;  %v731_v37 = vmul.f32 0.6931472, %v2420_v10  ;;  %v734_v9 = vmul.f32 %v3665_v39, %v733_v5  ;;  %v1875_v16 = vadd.f32 %v1873_v3, %v1847_v58  ;;  %2292 = vrot.lane.b32.xlu1 %v3113_v6, %s2824_s16 }
 0x119   : > { %v728_v60 = vsel %vm727_vm5, %v725_v52, %v722_v4  ;;  %vm736_vm6 = vcmp.lt.f32.partialorder %v735_v28, 0.0004427343  ;;  %v3756_v41 = vmul.f32 %v3508_v62, %v3516_v32  ;;  %v3763_v53 = vmul.f32 %v3496_v13, %v3558_v31  ;;  %2287 = vrot.lane.b32.xlu0 %v3285_v26, %s2824_s16 }
 0x11a   : > { %v737_v20 = vsel %vm736_vm6, %v734_v9, %v731_v37  ;;  %v3759_v61 = vadd.f32 %v728_v60, %v3592_v21  ;;  %v1540_v39 = vadd.f32 1e-06, %v1538_v45  ;;  %v3767_v24 = vpop.permute.xlu1 %1550  ;;  %v3774_v32 = vmul.f32 %v3508_v62, %v3536_v55  ;;  %v5323_v60 = vld [vmem:[#allocation31_spill] sm:$0xff] }
 0x11b   : > { %v3770_v6 = vadd.f32 %v737_v20, %v3587_v27  ;;  %v1541_v2 = vadd.f32 1e-06, %v1539_v33  ;;  %v1882_v21 = vadd.f32 %v2416_v15, %v1874_v0  ;;  %2425 = vrcp.f32 %v869_v56  ;;  %v3780_v40 = vpop.permute.xlu0 %1203 }
 0x11c   : > { %v3778_v31 = vmul.f32 %v3508_v62, %v3580_v7  ;;  %v1883_v46 = vadd.f32 %v2414_v54, %v1875_v16  ;;  %1964 = vrot.lane.b32.xlu1 %v5286_v8, %s2824_s16  ;;  %2427 = vrcp.f32 %v870_v25  ;;  %v400_v27 = vadd.f32 1e-06, %v3526_v50 }
 0x11d   : > { %v3784_v26 = vpop.eup %2421  ;;  %v778_v55 = vsub.f32 0.0, %v3756_v41  ;;  %v399_v15 = vadd.f32 1e-06, %v3562_v23  ;;  %v779_v47 = vsub.f32 0.0, %v3763_v53  ;;  %v3792_v7 = vmul.f32 %v3496_v13, %v3569_v30  ;;  %2297 = vrot.lane.b32.xlu0 %v3644_v14, %s2823_s15 }
 0x11e   : > { %5313 = vst [vmem:[#allocation39_spill] sm:$0xff] %v3784_v26  ;;  %2429 = vrcp.f32 %v1540_v39  ;;  %v3796_v8 = vpop.permute.xlu1 %1772  ;;  %v466_v50 = vadd.f32 1e-06, %v3572_v18  ;;  %v900_v51 = vsub.f32 0.0, %v3774_v32  ;;  %v3802_v23 = vadd.f32 1e-06, %v1882_v21 }
 0x11f   : > { %v3798_v54 = vpop.eup %2423  ;;  %2431 = vrcp.f32 %v1541_v2  ;;  %v467_v5 = vadd.f32 1e-06, %v3576_v49  ;;  %v1037_v19 = vsub.f32 0.0, %v3778_v31  ;;  %v3807_v58 = vadd.f32 1e-06, %v1883_v46  ;;  %v3809_v14 = vpop.permute.xlu0 %1692 }
 0x120   : > { %5314 = vst [vmem:[#allocation41_spill] sm:$0xff] %v3798_v54  ;;  %5315 = vst [vmem:[#allocation40_spill] sm:$0xff] %v3802_v23  ;;  %2433 = vrcp.f32 %v400_v27  ;;  %v589_v44 = vadd.f32 1e-06, %v3585_v11  ;;  %v780_v18 = vmin.f32 %v3756_v41, %v778_v55  ;;  %v3815_v28 = vmul.f32 %v3508_v62, %v3615_v29  ;;  %v5327_v55 = vld [vmem:[#allocation44_spill] sm:$0xff] }
 0x121   : > { %5316 = vst [vmem:[#allocation42_spill] sm:$0xff] %v3807_v58  ;;  %2435 = vrcp.f32 %v399_v15  ;;  %v781_v49 = vmin.f32 %v3763_v53, %v779_v47  ;;  %v1038_v3 = vsub.f32 0.0, %v3792_v7  ;;  %v3821_v43 = vmul.f32 %v3496_v13, %v3597_v57  ;;  %1962 = vrot.lane.b32.xlu0 %v3608_v17, %s2824_s16  ;;  %v5343_v58 = vld [vmem:[#allocation29_spill] sm:$0xff] }
 0x122   : > { %5317 = vst [vmem:[#allocation45_spill] sm:$0xff] %v3815_v28  ;;  %v3825_v56 = vpop.permute.xlu1 %1269  ;;  %2437 = vrcp.f32 %v466_v50  ;;  %v588_v11 = vadd.f32 1e-06, %v3589_v12  ;;  %v902_v29 = vmin.f32 %v3774_v32, %v900_v51  ;;  %v3831_v25 = vmul.f32 %v3496_v13, %v3655_v63 }
 0x123   : > { %5318 = vst [vmem:[#allocation33_spill] sm:$0xff] %v3821_v43  ;;  %2439 = vrcp.f32 %v467_v5  ;;  %v655_v45 = vadd.f32 1e-06, %v3599_v35  ;;  %v1039_v57 = vmin.f32 %v3778_v31, %v1037_v19  ;;  %v3837_v10 = vmul.f32 %v3496_v13, %v3636_v48  ;;  %v3839_v17 = vpop.permute.xlu0 %1267 }
 0x124   : > { %5319 = vst [vmem:[#allocation35_spill] sm:$0xff] %v3831_v25  ;;  %2441 = vrcp.f32 %v589_v44  ;;  %v782_v4 = vmul.f32 1.442695, %v780_v18  ;;  %v1103_v12 = vsub.f32 0.0, %v3815_v28  ;;  %v3844_v52 = vmul.f32 %v3496_v13, %v3681_v42 }
 0x125   : > { %5320 = vst [vmem:[#allocation34_spill] sm:$0xff] %v3837_v10  ;;  %v3846_v63 = vpop.eup %2425  ;;  %v784_v34 = vmul.f32 1.442695, %v781_v49  ;;  %v1040_v33 = vmin.f32 %v3792_v7, %v1038_v3  ;;  %v1104_v48 = vsub.f32 0.0, %v3821_v43  ;;  %2443 = vrcp.f32 %v588_v11 }
 0x126   : > { %5321 = vst [vmem:[#allocation36_spill] sm:$0xff] %v3846_v63  ;;  %v3851_v0 = vpop.permute.xlu1 %1616  ;;  %v3853_v37 = vpop.eup %2427  ;;  %v904_v9 = vmul.f32 1.442695, %v902_v29  ;;  %v1385_v16 = vsub.f32 0.0, %v3831_v25  ;;  %v3858_v42 = vmul.f32 %v3508_v62, %v5323_v60  ;;  %2445 = vrcp.f32 %v655_v45 }
 0x127   : > { %5322 = vst [vmem:[#allocation46_spill] sm:$0xff] %v3853_v37  ;;  %v1041_v2 = vmul.f32 1.442695, %v1039_v57  ;;  %v1451_v21 = vsub.f32 0.0, %v3837_v10  ;;  %v3864_v46 = vpop.permute.xlu0 %1548  ;;  %v656_v15 = vadd.f32 1e-06, %v5327_v55  ;;  %2447 = vpow2.f32 %v782_v4 }
 0x128   : > { %5324 = vst [vmem:[#allocation50_spill] sm:$0xff] %v3858_v42  ;;  %v3860_v20 = vpop.eup %2429  ;;  %v1105_v47 = vmin.f32 %v3815_v28, %v1103_v12  ;;  %v901_v50 = vsub.f32 0.0, %v3844_v52  ;;  %2449 = vpow2.f32 %v784_v34  ;;  %v1043_v5 = vmul.f32 1.442695, %v1040_v33 }
 0x129   : > { %5325 = vst [vmem:[#allocation52_spill] sm:$0xff] %v3860_v20  ;;  %v3866_v27 = vpop.eup %2431  ;;  %v1106_v19 = vmin.f32 %v3821_v43, %v1104_v48  ;;  %2451 = vpow2.f32 %v904_v9  ;;  %v1387_v3 = vmin.f32 %v3831_v25, %v1385_v16  ;;  %v967_v11 = vsub.f32 0.0, %v3858_v42  ;;  %v5332_v9 = vld [vmem:[#allocation47_spill] sm:$0xff] }
 0x12a   : > { %5326 = vst [vmem:[#allocation51_spill] sm:$0xff] %v3866_v27  ;;  %v3873_v44 = vpop.permute.xlu1 %1614  ;;  %v3875_v18 = vpop.eup %2433  ;;  %2453 = vpow2.f32 %v1041_v2  ;;  %v1453_v57 = vmin.f32 %v3837_v10, %v1451_v21  ;;  %v3886_v4 = vmul.f32 %v3508_v62, %v3706_v38  ;;  %v1107_v33 = vmul.f32 1.442695, %v1105_v47 }
 0x12b   : > { %5328 = vst [vmem:[#allocation38_spill] sm:$0xff] %v3875_v18  ;;  %v3880_v29 = vpop.eup %2435  ;;  %v3888_v12 = vpop.permute.xlu0 %1894  ;;  %2455 = vrcp.f32 %v656_v15  ;;  %v903_v48 = vmin.f32 %v3844_v52, %v901_v50  ;;  %v3895_v16 = vmul.f32 %v3508_v62, %v5332_v9  ;;  %v1109_v21 = vmul.f32 1.442695, %v1106_v19 }
 0x12c   : > { %5329 = vst [vmem:[#allocation37_spill] sm:$0xff] %v3880_v29  ;;  %5330 = vst [vmem:[#allocation32_spill] sm:$0xff] %v3886_v4  ;;  %v3890_v34 = vpop.eup %2437  ;;  %2457 = vpow2.f32 %v1043_v5  ;;  %v3902_v38 = vmul.f32 %v3496_v13, %v3735_v36  ;;  %v1390_v50 = vmul.f32 1.442695, %v1387_v3  ;;  %v969_v9 = vmin.f32 %v3858_v42, %v967_v11 }
 0x12d   : > { %5331 = vst [vmem:[#allocation43_spill] sm:$0xff] %v3890_v34  ;;  %5333 = vst [vmem:[#allocation48_spill] sm:$0xff] %v3895_v16  ;;  %v3897_v60 = vpop.eup %2439  ;;  %v3912_v45 = vmul.f32 %v3496_v13, %v3725_v59  ;;  %v1456_v19 = vmul.f32 1.442695, %v1453_v57  ;;  %v1384_v2 = vsub.f32 0.0, %v3886_v4  ;;  %v3918_v36 = vmul.f32 %v3496_v13, %v3750_v1 }
 0x12e   : > { %5334 = vst [vmem:[#allocation49_spill] sm:$0xff] %v3897_v60  ;;  %5335 = vst [vmem:[#allocation31_spill] sm:$0xff] %v3902_v38  ;;  %v3904_v55 = vpop.permute.xlu1 %1960  ;;  %v3906_v15 = vpop.eup %2441  ;;  %2459 = vpow2.f32 %v1107_v33  ;;  %v906_v11 = vmul.f32 1.442695, %v903_v48  ;;  %v1450_v59 = vsub.f32 0.0, %v3895_v16  ;;  %v1729_v5 = vsub.f32 0.0, %v3902_v38 }
 0x12f   : > { %5336 = vst [vmem:[#allocation44_spill] sm:$0xff] %v3906_v15  ;;  %5337 = vst [vmem:[#allocation47_spill] sm:$0xff] %v3912_v45  ;;  %v3920_v39 = vpop.permute.xlu0 %1892  ;;  %v3922_v51 = vpop.eup %2443  ;;  %2461 = vpow2.f32 %v1109_v21  ;;  %v3932_v1 = vmul.f32 %v3508_v62, %v3745_v22  ;;  %v971_v33 = vmul.f32 1.442695, %v969_v9  ;;  %v1795_v48 = vsub.f32 0.0, %v3912_v45 }
 0x130   : > { %5338 = vst [vmem:[#allocation53_spill] sm:$0xff] %v3918_v36  ;;  %5339 = vst [vmem:[#allocation54_spill] sm:$0xff] %v3922_v51  ;;  %v3926_v47 = vpop.eup %2445  ;;  %2463 = vpow2.f32 %v1390_v50  ;;  %v3939_v3 = vmul.f32 %v3496_v13, %v3780_v40  ;;  %v1386_v57 = vmin.f32 %v3886_v4, %v1384_v2  ;;  %v968_v35 = vsub.f32 0.0, %v3918_v36  ;;  %v5346_v50 = vld [vmem:[#allocation30_spill] sm:$0xff] }
 0x131   : > { %5340 = vst [vmem:[#allocation55_spill] sm:$0xff] %v3926_v47  ;;  %5341 = vst [vmem:[#allocation56_spill] sm:$0xff] %v3932_v1  ;;  %v3934_v30 = vpop.eup %2447  ;;  %2465 = vpow2.f32 %v1456_v19  ;;  %v1452_v9 = vmin.f32 %v3895_v16, %v1450_v59  ;;  %v3954_v40 = vmul.f32 %v3496_v13, %v3767_v24  ;;  %v1731_v15 = vmin.f32 %v3902_v38, %v1729_v5 }
 0x132   : > { %v699_v49 = vpop.permute.xlu1 %698  ;;  %5342 = vst [vmem:[#allocation57_spill] sm:$0xff] %v3939_v3  ;;  %v3941_v21 = vpop.eup %2449  ;;  %2467 = vpow2.f32 %v906_v11  ;;  %v1223_v54 = vsub.f32 0.0, %v3932_v1  ;;  %v1797_v11 = vmin.f32 %v3912_v45, %v1795_v48  ;;  %v1224_v59 = vsub.f32 0.0, %v3939_v3 }
 0x133   : > { %v3945_v22 = vpop.permute.xlu0 %1958  ;;  %v740_v27 = vmul.f32 %v699_v49, %v5343_v58  ;;  %v3948_v37 = vpop.eup %2451  ;;  %5344 = vst [vmem:[#allocation29_spill] sm:$0xff] %v3954_v40  ;;  %2469 = vpow2.f32 %v971_v33  ;;  %v1388_v20 = vmul.f32 1.442695, %v1386_v57  ;;  %v970_v2 = vmin.f32 %v3918_v36, %v968_v35 }
 0x134   : > { %v3956_v19 = vpop.eup %2453  ;;  %v3971_v5 = vmul.f32 %v3508_v62, %v3809_v14  ;;  %v1571_v33 = vsub.f32 0.0, %v3954_v40  ;;  %v3978_v48 = vmul.f32 %v3508_v62, %v3796_v8  ;;  %v1734_v57 = vmul.f32 1.442695, %v1731_v15 }
 0x135   : > { %v742_v49 = vmul.f32 1.442695, %v740_v27  ;;  %v3961_v18 = vpop.eup %2455  ;;  %v1225_v35 = vmin.f32 %v3932_v1, %v1223_v54  ;;  %v3984_v14 = vmul.f32 %v3508_v62, %v3839_v17  ;;  %v1226_v51 = vmin.f32 %v3939_v3, %v1224_v59 }
 0x136   : > { %v701_v60 = vpop.permute.xlu1 %700  ;;  %5345 = vst [vmem:[#allocation58_spill] sm:$0xff] %v3961_v18  ;;  %v3966_v23 = vpop.eup %2457  ;;  %5347 = vst [vmem:[#allocation59_spill] sm:$0xff] %v3971_v5  ;;  %v1454_v18 = vmul.f32 1.442695, %v1452_v9  ;;  %v1800_v9 = vmul.f32 1.442695, %v1797_v11  ;;  %v3993_v8 = vmul.f32 %v3496_v13, %v3825_v56  ;;  %v4000_v17 = vmul.f32 %v3508_v62, %v3864_v46 }
 0x137   : > { %v741_v24 = vmul.f32 %v701_v60, %v5346_v50  ;;  %2471 = vpow2.f32 %v742_v49  ;;  %v3973_v27 = vpop.permute.xlu0 %764  ;;  %5348 = vst [vmem:[#allocation60_spill] sm:$0xff] %v3978_v48  ;;  %5349 = vst [vmem:[#allocation61_spill] sm:$0xff] %v3984_v14  ;;  %v973_v54 = vmul.f32 1.442695, %v970_v2  ;;  %v1728_v15 = vsub.f32 0.0, %v3971_v5 }
 0x138   : > { %v3988_v47 = vpop.eup %2459  ;;  %5350 = vst [vmem:[#allocation62_spill] sm:$0xff] %v3993_v8  ;;  %5351 = vst [vmem:[#allocation63_spill] sm:$0xff] %v4000_v17  ;;  %v1573_v59 = vmin.f32 %v3954_v40, %v1571_v33  ;;  %v1794_v56 = vsub.f32 0.0, %v3978_v48  ;;  %v1227_v2 = vmul.f32 1.442695, %v1225_v35  ;;  %v1289_v46 = vsub.f32 0.0, %v3984_v14 }
 0x139   : > { %v744_v60 = vmul.f32 1.442695, %v741_v24  ;;  %v3995_v24 = vpop.eup %2461  ;;  %v4017_v26 = vmul.f32 %v3496_v13, %v3888_v12  ;;  %v1229_v29 = vmul.f32 1.442695, %v1226_v51  ;;  %v1570_v35 = vsub.f32 0.0, %v4000_v17 }
 0x13a   : > { %v3986_v49 = vpop.permute.xlu1 %886  ;;  %v4004_v11 = vpop.eup %2463  ;;  %v4029_v42 = vmul.f32 %v3508_v62, %v3873_v44  ;;  %v1576_v38 = vmul.f32 1.442695, %v1573_v59  ;;  %v1796_v33 = vmin.f32 %v3978_v48, %v1794_v56  ;;  %v4045_v45 = vmul.f32 %v3496_v13, %v3904_v55 }
 0x13b   : > { %2473 = vpow2.f32 %v744_v60  ;;  %v4002_v63 = vpop.permute.xlu0 %766  ;;  %v4010_v60 = vmul.f32 %v3496_v13, %v3851_v0  ;;  %5353 = vst [vmem:[#allocation65_spill] sm:$0xff] %v4017_v26  ;;  %v1290_v0 = vsub.f32 0.0, %v3993_v8  ;;  %v1915_v44 = vsub.f32 0.0, %v4017_v26 }
 0x13c   : > { %2475 = vpow2.f32 %v1388_v20  ;;  %v4012_v20 = vpop.eup %2465  ;;  %5354 = vst [vmem:[#allocation66_spill] sm:$0xff] %v4029_v42  ;;  %5357 = vst [vmem:[#allocation69_spill] sm:$0xff] %v4045_v45  ;;  %v4058_v4 = vmul.f32 %v3508_v62, %v3945_v22 }
 0x13d   : > { %2477 = vpow2.f32 %v1454_v18  ;;  %5352 = vst [vmem:[#allocation64_spill] sm:$0xff] %v4010_v60  ;;  %v4021_v18 = vpop.eup %2467  ;;  %v1637_v51 = vsub.f32 0.0, %v4010_v60  ;;  %v1292_v59 = vmin.f32 %v3993_v8, %v1290_v0  ;;  %v1981_v8 = vsub.f32 0.0, %v4045_v45 }
 0x13e   : > { %2479 = vpow2.f32 %v1734_v57  ;;  %v4019_v34 = vpop.permute.xlu1 %1025  ;;  %v1730_v57 = vmin.f32 %v3971_v5, %v1728_v15  ;;  %v4033_v16 = vpop.eup %2469  ;;  %v1291_v15 = vmin.f32 %v3984_v14, %v1289_v46  ;;  %v1636_v46 = vsub.f32 0.0, %v4029_v42  ;;  %5358 = vst [vmem:[#allocation70_spill] sm:$0xff] %v4058_v4 }
 0x13f   : > { %2481 = vpow2.f32 %v1800_v9  ;;  %v4031_v12 = vpop.permute.xlu0 %1023  ;;  %5355 = vst [vmem:[#allocation67_spill] sm:$0xff] %v4033_v16  ;;  %v4039_v9 = vmul.f32 %v3508_v62, %v3920_v39  ;;  %v795_v39 = vadd.f32 1.0, %v3941_v21  ;;  %v1639_v0 = vmin.f32 %v4010_v60, %v1637_v51 }
 0x140   : > { %2483 = vpow2.f32 %v973_v54  ;;  %v1732_v16 = vmul.f32 1.442695, %v1730_v57  ;;  %v1293_v57 = vmul.f32 1.442695, %v1291_v15  ;;  %v1295_v51 = vmul.f32 1.442695, %v1292_v59 }
 0x141   : > { %5356 = vst [vmem:[#allocation68_spill] sm:$0xff] %v4039_v9  ;;  %v2472_v54 = vpop.eup %2471  ;;  %2485 = vpow2.f32 %v1227_v2  ;;  %v1572_v2 = vmin.f32 %v4000_v17, %v1570_v35  ;;  %v1917_v35 = vmin.f32 %v4017_v26, %v1915_v44  ;;  %v1638_v44 = vmin.f32 %v4029_v42, %v1636_v46 }
 0x142   : > { %v4047_v28 = vpop.permute.xlu1 %1091  ;;  %2487 = vpow2.f32 %v1229_v29  ;;  %v4051_v56 = vadd.f32 %v2472_v54, %v3759_v61  ;;  %v1798_v29 = vmul.f32 1.442695, %v1796_v33  ;;  %v1914_v61 = vsub.f32 0.0, %v4039_v9 }
 0x143   : > { %v4060_v13 = vpop.permute.xlu0 %1089  ;;  %2489 = vpow2.f32 %v1576_v38  ;;  %v1574_v15 = vmul.f32 1.442695, %v1572_v2  ;;  %v1980_v25 = vsub.f32 0.0, %v4058_v4  ;;  %v1642_v38 = vmul.f32 1.442695, %v1639_v0 }
 0x144   : > { %2491 = vlog2.f32 %v795_v39  ;;  %v1916_v33 = vmin.f32 %v4039_v9, %v1914_v61  ;;  %v1983_v2 = vmin.f32 %v4045_v45, %v1981_v8  ;;  %v792_v60 = vand.u32 2147483647, %v3934_v30 }
 0x145   : > { %v2474_v55 = vpop.eup %2473  ;;  %2493 = vpow2.f32 %v1732_v16  ;;  %v1920_v16 = vmul.f32 1.442695, %v1917_v35 }
 0x146   : > { %v4064_v54 = vpop.eup %2475  ;;  %v4069_v10 = vadd.f32 %v2474_v55, %v3770_v6  ;;  %v4071_v62 = vpop.permute.xlu1 %1438  ;;  %2495 = vpow2.f32 %v1798_v29  ;;  %v786_v29 = vadd.f32 1.0, %v3934_v30  ;;  %v1918_v39 = vmul.f32 1.442695, %v1916_v33 }
 0x147   : > { %v4073_v22 = vpop.eup %2477  ;;  %v4081_v6 = vpop.permute.xlu0 %1372  ;;  %2497 = vpow2.f32 %v1293_v57  ;;  %v1982_v57 = vmin.f32 %v4058_v4, %v1980_v25  ;;  %v1986_v3 = vmul.f32 1.442695, %v1983_v2  ;;  %v1066_v33 = vmul.f32 %v4019_v34, %v5346_v50 }
 0x148   : > { %5359 = vst [vmem:[#allocation71_spill] sm:$0xff] %v4073_v22  ;;  %v4077_v43 = vpop.eup %2479  ;;  %2499 = vpow2.f32 %v1295_v51  ;;  %v1640_v22 = vmul.f32 1.442695, %v1638_v44  ;;  %v798_v51 = vmul.f32 -0.5, %v3941_v21  ;;  %v911_v34 = vmul.f32 -0.5, %v3948_v37 }
 0x149   : > { %5360 = vst [vmem:[#allocation72_spill] sm:$0xff] %v4077_v43  ;;  %v4083_v55 = vpop.eup %2481  ;;  %2501 = vpow2.f32 %v1574_v15  ;;  %v928_v15 = vmul.f32 %v3986_v49, %v5343_v58  ;;  %v1984_v1 = vmul.f32 1.442695, %v1982_v57  ;;  %v801_v57 = vand.u32 2147483647, %v3941_v21 }
 0x14a   : > { %5361 = vst [vmem:[#allocation73_spill] sm:$0xff] %v4083_v55  ;;  %v4087_v59 = vpop.eup %2483  ;;  %v4091_v46 = vpop.permute.xlu1 %953  ;;  %2503 = vpow2.f32 %v1642_v38  ;;  %v806_v55 = vmul.f32 %v3973_v27, %v5343_v58  ;;  %v789_v38 = vmul.f32 -0.5, %v3934_v30  ;;  %v920_v27 = vmul.f32 -0.5, %v4021_v18 }
 0x14b   : > { %5362 = vst [vmem:[#allocation74_spill] sm:$0xff] %v4087_v59  ;;  %v4096_v0 = vpop.eup %2485  ;;  %v4100_v35 = vpop.permute.xlu0 %888  ;;  %2505 = vpow2.f32 %v1920_v16  ;;  %v807_v16 = vmul.f32 %v4002_v63, %v5346_v50  ;;  %v799_v61 = vadd.f32 1.0, %v798_v51  ;;  %v930_v45 = vmul.f32 1.442695, %v928_v15 }
 0x14c   : > { %5363 = vst [vmem:[#allocation75_spill] sm:$0xff] %v4096_v0  ;;  %v4102_v8 = vpop.eup %2487  ;;  %2507 = vlog2.f32 %v786_v29  ;;  %v808_v4 = vmul.f32 1.442695, %v806_v55  ;;  %v790_v26 = vadd.f32 1.0, %v789_v38  ;;  %v921_v55 = vadd.f32 1.0, %v920_v27 }
 0x14d   : > { %5364 = vst [vmem:[#allocation76_spill] sm:$0xff] %v4102_v8  ;;  %v4112_v25 = vpop.eup %2489  ;;  %2509 = vpow2.f32 %v1640_v22  ;;  %v1065_v38 = vmul.f32 %v4031_v12, %v5343_v58  ;;  %v4146_v40 = vmul.f32 %v3941_v21, %v799_v61  ;;  %v908_v27 = vadd.f32 1.0, %v3948_v37 }
 0x14e   : > { %v4110_v44 = vpop.permute.xlu1 %1436  ;;  %5365 = vst [vmem:[#allocation77_spill] sm:$0xff] %v4112_v25  ;;  %v2492_v49 = vpop.eup %2491  ;;  %2511 = vpow2.f32 %v1918_v39  ;;  %v917_v39 = vadd.f32 1.0, %v4021_v18  ;;  %vm4151_vm7 = vcmp.lt.f32.partialorder %v801_v57, 0.0004427343  ;;  %v791_v12 = vmul.f32 %v3934_v30, %v790_v26 }
 0x14f   : > { %v4120_v2 = vpop.permute.xlu0 %1370  ;;  %v4123_v29 = vpop.eup %2493  ;;  %2513 = vpow2.f32 %v1986_v3  ;;  %v810_v3 = vmul.f32 1.442695, %v807_v16  ;;  %v4138_v14 = vmul.f32 0.6931472, %v2492_v49  ;;  %vm4161_vm8 = vcmp.lt.f32.partialorder %v792_v60, 0.0004427343 }
 0x150   : > { %5366 = vst [vmem:[#allocation78_spill] sm:$0xff] %v4123_v29  ;;  %v4130_v63 = vpop.eup %2495  ;;  %2515 = vpow2.f32 %v1984_v1  ;;  %v1069_v1 = vmul.f32 1.442695, %v1066_v33  ;;  %v1045_v61 = vadd.f32 1.0, %v3956_v19  ;;  %v1132_v57 = vmul.f32 %v4047_v28, %v5346_v50 }
 0x151   : > { %5367 = vst [vmem:[#allocation79_spill] sm:$0xff] %v4130_v63  ;;  %v4134_v51 = vpop.eup %2497  ;;  %2517 = vpow2.f32 %v808_v4  ;;  %v923_v4 = vand.u32 2147483647, %v4021_v18  ;;  %v803_v26 = vsel %vm4151_vm7, %v4146_v40, %v4138_v14  ;;  %v912_v60 = vadd.f32 1.0, %v911_v34  ;;  %v5380_v34 = vld [vmem:[#allocation26_spill] sm:$0xff] }
 0x152   : > { %v4127_v22 = vpop.permute.xlu1 %1782  ;;  %5368 = vst [vmem:[#allocation80_spill] sm:$0xff] %v4134_v51  ;;  %v4141_v42 = vpop.eup %2499  ;;  %2519 = vpow2.f32 %v930_v45  ;;  %v4166_v45 = vmul.f32 %v4021_v18, %v921_v55  ;;  %v914_v28 = vand.u32 2147483647, %v3948_v37  ;;  %v1048_v16 = vmul.f32 -0.5, %v3956_v19 }
 0x153   : > { %v4136_v15 = vpop.permute.xlu0 %1716  ;;  %5369 = vst [vmem:[#allocation81_spill] sm:$0xff] %v4141_v42  ;;  %v4149_v51 = vpop.eup %2501  ;;  %2521 = vlog2.f32 %v917_v39  ;;  %v1067_v39 = vmul.f32 1.442695, %v1065_v38  ;;  %v748_v14 = vadd.f32 1e-06, %v4051_v56  ;;  %v4197_v48 = vmul.f32 %v3948_v37, %v912_v60 }
 0x154   : > { %5370 = vst [vmem:[#allocation82_spill] sm:$0xff] %v4149_v51  ;;  %v4158_v42 = vpop.eup %2503  ;;  %2523 = vpow2.f32 %v810_v3  ;;  %v1131_v3 = vmul.f32 %v4060_v13, %v5343_v58  ;;  %v1479_v13 = vmul.f32 %v4071_v62, %v5346_v50  ;;  %v749_v60 = vadd.f32 1e-06, %v4069_v10 }
 0x155   : > { %5373 = vst [vmem:[#allocation83_spill] sm:$0xff] %v4158_v42  ;;  %v4169_v33 = vpop.eup %2505  ;;  %2525 = vlog2.f32 %v908_v27  ;;  %vm4214_vm9 = vcmp.lt.f32.partialorder %v923_v4, 0.0004427343  ;;  %vm4226_vm10 = vcmp.lt.f32.partialorder %v914_v28, 0.0004427343  ;;  %v1111_v28 = vadd.f32 1.0, %v3988_v47 }
 0x156   : > { %v4155_v49 = vpop.permute.xlu1 %955  ;;  %5376 = vst [vmem:[#allocation84_spill] sm:$0xff] %v4169_v33  ;;  %v2508_v42 = vpop.eup %2507  ;;  %2527 = vpow2.f32 %v1069_v1  ;;  %v1135_v1 = vmul.f32 1.442695, %v1132_v57  ;;  %v1413_v57 = vmul.f32 %v4081_v6, %v5346_v50 }
 0x157   : > { %v2233_v30 = vpop.permute.xlu0 %2232  ;;  %v4177_v55 = vpop.eup %2509  ;;  %2529 = vlog2.f32 %v1045_v61  ;;  %v788_v0 = vmul.f32 0.6931472, %v2508_v42  ;;  %v1049_v42 = vadd.f32 1.0, %v1048_v16  ;;  %v1482_v16 = vmul.f32 1.442695, %v1479_v13 }
 0x158   : > { %v2235_v17 = vunpack.i.h.bf16 %v2233_v30  ;;  %v2234_v18 = vunpack.i.l.bf16 %v2233_v30  ;;  %5377 = vst [vmem:[#allocation85_spill] sm:$0xff] %v4177_v55  ;;  %v4185_v40 = vpop.eup %2511  ;;  %v5381_v30 = vld [vmem:[#allocation25_spill] sm:$0xff]  ;;  %2531 = vpow2.f32 %v1067_v39  ;;  %v5384_v39 = vmax.f32 %v3763_v53, 0.0 }
 0x159   : > { %5379 = vst [vmem:[#allocation87_spill] sm:$0xff] %v4185_v40  ;;  %v4190_v55 = vpop.eup %2513  ;;  %v1051_v40 = vand.u32 2147483647, %v3956_v19  ;;  %2533 = vrcp.f32 %v748_v14  ;;  %v794_v10 = vsel %vm4161_vm8, %v791_v12, %v788_v0  ;;  %v1416_v13 = vmul.f32 1.442695, %v1413_v57 }
 0x15a   : > { %v4181_v33 = vpop.permute.xlu1 %1211  ;;  %v771_v38 = vmul.f32 %v2235_v17, %v5380_v34  ;;  %v770_v27 = vmul.f32 %v2234_v18, %v5381_v30  ;;  %5382 = vst [vmem:[#allocation26_spill] sm:$0xff] %v4190_v55  ;;  %v1054_v18 = vadd.f32 1.0, %v3966_v23  ;;  %v4202_v61 = vpop.eup %2515  ;;  %v1133_v55 = vmul.f32 1.442695, %v1131_v3 }
 0x15b   : > { %5378 = vst [vmem:[#allocation86_spill] sm:$0xff] %v4181_v33  ;;  %v4194_v8 = vpop.permute.xlu0 %1209  ;;  %5383 = vst [vmem:[#allocation88_spill] sm:$0xff] %v4202_v61  ;;  %v2518_v37 = vpop.eup %2517  ;;  %2535 = vpow2.f32 %v1135_v1  ;;  %v995_v61 = vmul.f32 %v4091_v46, %v5343_v58  ;;  %v929_v46 = vmul.f32 %v4100_v35, %v5346_v50  ;;  %v4236_v0 = vmul.f32 %v3956_v19, %v1049_v42 }
 0x15c   : > { %v775_v56 = vmul.f32 %v771_v38, %v3763_v53  ;;  %v774_v17 = vmul.f32 %v770_v27, %v3756_v41  ;;  %v5385_v27 = vmax.f32 %v3756_v41, 0.0  ;;  %v4218_v6 = vpop.eup %2519  ;;  %2537 = vlog2.f32 %v1054_v18 }
 0x15d   : > { %v2522_v53 = vpop.eup %2521  ;;  %2539 = vpow2.f32 %v1133_v55  ;;  %v1114_v18 = vmul.f32 -0.5, %v3988_v47  ;;  %v997_v55 = vmul.f32 1.442695, %v995_v61  ;;  %v1060_v19 = vand.u32 2147483647, %v3966_v23 }
 0x15e   : > { %v4206_v62 = vpop.permute.xlu1 %1714  ;;  %v777_v38 = vsub.f32 %v5384_v39, %v775_v56  ;;  %v776_v25 = vsub.f32 %v5385_v27, %v774_v17  ;;  %v1057_v17 = vmul.f32 -0.5, %v3966_v23  ;;  %v2524_v1 = vpop.eup %2523  ;;  %2541 = vrcp.f32 %v749_v60 }
 0x15f   : > { %v4224_v14 = vpop.permute.xlu0 %1558  ;;  %v2526_v12 = vpop.eup %2525  ;;  %v4248_v35 = vmul.f32 0.6931472, %v2522_v53  ;;  %2543 = vpow2.f32 %v1482_v16  ;;  %v1401_v27 = vadd.f32 1.0, %v4004_v11  ;;  %v1412_v60 = vmul.f32 %v4120_v2, %v5343_v58 }
 0x160   : > { %v805_v56 = vadd.f32 %v803_v26, %v777_v38  ;;  %v804_v41 = vadd.f32 %v794_v10, %v776_v25  ;;  %v4244_v39 = vpop.eup %2527  ;;  %v1058_v38 = vadd.f32 1.0, %v1057_v17  ;;  %2545 = vpow2.f32 %v1416_v13 }
 0x161   : > { %v2530_v42 = vpop.eup %2529  ;;  %v932_v10 = vmul.f32 1.442695, %v929_v46  ;;  %2547 = vlog2.f32 %v1111_v28  ;;  %v1120_v16 = vadd.f32 1.0, %v3995_v24  ;;  %vm4272_vm11 = vcmp.lt.f32.partialorder %v1051_v40, 0.0004427343 }
 0x162   : > { %v4233_v21 = vpop.permute.xlu1 %1275  ;;  %v4238_v25 = vadd.f32 %v2524_v1, %v805_v56  ;;  %v4240_v26 = vadd.f32 %v2518_v37, %v804_v41  ;;  %v1478_v37 = vmul.f32 %v4110_v44, %v5343_v58  ;;  %v4258_v56 = vmul.f32 0.6931472, %v2526_v12  ;;  %v4260_v53 = vpop.eup %2531 }
 0x163   : > { %v4246_v57 = vpop.permute.xlu0 %1780  ;;  %v1115_v41 = vadd.f32 1.0, %v1114_v18  ;;  %v1123_v44 = vmul.f32 -0.5, %v3995_v24  ;;  %2549 = vpow2.f32 %v997_v55  ;;  %v4270_v1 = vmul.f32 0.6931472, %v2530_v42  ;;  %v4276_v46 = vpop.eup %2533 }
 0x164   : > { %5394 = vst [vmem:[#allocation91_spill] sm:$0xff] %v4276_v46  ;;  %v1480_v12 = vmul.f32 1.442695, %v1478_v37  ;;  %v1823_v28 = vmul.f32 %v4127_v22, %v5346_v50  ;;  %v4281_v18 = vmul.f32 %v3966_v23, %v1058_v38  ;;  %vm4283_vm12 = vcmp.lt.f32.partialorder %v1060_v19, 0.0004427343 }
 0x165   : > { %2551 = vlog2.f32 %v1401_v27  ;;  %v4287_v42 = vpop.eup %2535  ;;  %v1414_v40 = vmul.f32 1.442695, %v1412_v60  ;;  %v1757_v2 = vmul.f32 %v4136_v15, %v5346_v50  ;;  %v4298_v19 = vmul.f32 %v3988_v47, %v1115_v41 }
 0x166   : > { %v4256_v61 = vpop.permute.xlu1 %1556  ;;  %2553 = vpow2.f32 %v932_v10  ;;  %v2538_v22 = vpop.eup %2537  ;;  %v1124_v38 = vadd.f32 1.0, %v1123_v44  ;;  %v1392_v60 = vadd.f32 1.0, %v4064_v54  ;;  %v1395_v23 = vmul.f32 -0.5, %v4064_v54 }
 0x167   : > { %5390 = vst [vmem:[#allocation89_spill] sm:$0xff] %v4256_v61  ;;  %v4264_v17 = vpop.permute.xlu0 %1277  ;;  %2555 = vlog2.f32 %v1120_v16  ;;  %v4301_v27 = vpop.eup %2539  ;;  %v1404_v41 = vmul.f32 -0.5, %v4004_v11  ;;  %v1126_v16 = vand.u32 2147483647, %v3995_v24  ;;  %v1760_v9 = vmul.f32 1.442695, %v1757_v2 }
 0x168   : > { %5391 = vst [vmem:[#allocation90_spill] sm:$0xff] %v4264_v17  ;;  %5398 = vst [vmem:[#allocation93_spill] sm:$0xff] %v4301_v27  ;;  %2557 = vpow2.f32 %v1480_v12  ;;  %v1826_v17 = vmul.f32 1.442695, %v1823_v28  ;;  %v4314_v37 = vpop.eup %2541  ;;  %v996_v51 = vmul.f32 %v4155_v49, %v5346_v50  ;;  %v1056_v15 = vmul.f32 0.6931472, %v2538_v22 }
 0x169   : > { %5400 = vst [vmem:[#allocation95_spill] sm:$0xff] %v4314_v37  ;;  %2559 = vpow2.f32 %v1414_v40  ;;  %v4318_v5 = vpop.eup %2543  ;;  %v4321_v12 = vmul.f32 %v3995_v24, %v1124_v38  ;;  %v1407_v28 = vand.u32 2147483647, %v4004_v11  ;;  %v4326_v40 = vadd.f32 1.0, %v1395_v23 }
 0x16a   : > { %v4291_v46 = vpop.permute.xlu1 %1902  ;;  %5401 = vst [vmem:[#allocation96_spill] sm:$0xff] %v4318_v5  ;;  %v4324_v36 = vpop.eup %2545  ;;  %2561 = vlog2.f32 %v1392_v60  ;;  %v1405_v2 = vadd.f32 1.0, %v1404_v41  ;;  %v1467_v49 = vadd.f32 1.0, %v4012_v20  ;;  %v999_v24 = vmul.f32 1.442695, %v996_v51 }
 0x16b   : > { %5397 = vst [vmem:[#allocation92_spill] sm:$0xff] %v4291_v46  ;;  %v4303_v10 = vpop.permute.xlu0 %1624  ;;  %v2548_v22 = vpop.eup %2547  ;;  %2563 = vpow2.f32 %v1826_v17  ;;  %v1062_v38 = vsel %vm4283_vm12, %v4281_v18, %v1056_v15  ;;  %vm4341_vm13 = vcmp.lt.f32.partialorder %v1126_v16, 0.0004427343  ;;  %vm4345_vm14 = vcmp.lt.f32.partialorder %v1407_v28, 0.0004427343 }
 0x16c   : > { %5399 = vst [vmem:[#allocation94_spill] sm:$0xff] %v4303_v10  ;;  %2565 = vpow2.f32 %v1760_v9  ;;  %v5407_v28 = vmax.f32 %v3792_v7, 0.0  ;;  %v5408_v5 = vmax.f32 %v3778_v31, 0.0  ;;  %v1756_v3 = vmul.f32 %v4206_v62, %v5343_v58 }
 0x16d   : > { %v4330_v10 = vpop.eup %2549  ;;  %2567 = vlog2.f32 %v1467_v49  ;;  %v5410_v49 = vmax.f32 %v3844_v52, 0.0 }
 0x16e   : > { %v2243_v33 = vpop.permute.xlu1 %2242  ;;  %5402 = vst [vmem:[#allocation97_spill] sm:$0xff] %v4330_v10 }
 0x16f   : > { %v2245_v63 = vunpack.i.h.bf16 %v2243_v33  ;;  %v2244_v27 = vunpack.i.l.bf16 %v2243_v33  ;;  %v2238_v44 = vpop.permute.xlu0 %2237  ;;  %v2552_v41 = vpop.eup %2551 }
 0x170   : > { %v2240_v37 = vunpack.i.h.bf16 %v2238_v44  ;;  %v2239_v29 = vunpack.i.l.bf16 %v2238_v44  ;;  %v2554_v51 = vpop.eup %2553  ;;  %v1403_v46 = vmul.f32 0.6931472, %v2552_v41  ;;  %v1251_v41 = vmul.f32 %v4194_v8, %v5343_v58 }
 0x171   : > { %v1030_v33 = vmul.f32 %v2245_v63, %v5380_v34  ;;  %v1029_v23 = vmul.f32 %v2244_v27, %v5381_v30  ;;  %v1406_v27 = vmul.f32 %v4004_v11, %v1405_v2  ;;  %v5409_v11 = vld [vmem:[#allocation71_spill] sm:$0xff]  ;;  %v5418_v8 = vsel %vm4226_vm10, %v4197_v48, %v4258_v56 }
 0x172   : > { %v4336_v60 = vpop.permute.xlu1 %2252  ;;  %v893_v43 = vmul.f32 %v2240_v37, %v5380_v34  ;;  %v892_v17 = vmul.f32 %v2239_v29, %v5381_v30  ;;  %v2556_v29 = vpop.eup %2555  ;;  %v1458_v2 = vadd.f32 1.0, %v5409_v11 }
 0x173   : > { %v1034_v44 = vmul.f32 %v1030_v33, %v3792_v7  ;;  %v1033_v18 = vmul.f32 %v1029_v23, %v3778_v31  ;;  %v4350_v55 = vpop.permute.xlu0 %2247  ;;  %v2254_v37 = vunpack.i.l.bf16 %v4336_v60  ;;  %v4363_v30 = vpop.eup %2557 }
 0x174   : > { %v897_v15 = vmul.f32 %v893_v43, %v3844_v52  ;;  %v896_v16 = vmul.f32 %v892_v17, %v3774_v32  ;;  %v2250_v10 = vunpack.i.h.bf16 %v4350_v55  ;;  %v5411_v17 = vmax.f32 %v3774_v32, 0.0 }
 0x175   : > { %v1036_v33 = vsub.f32 %v5407_v28, %v1034_v44  ;;  %v1035_v23 = vsub.f32 %v5408_v5, %v1033_v18  ;;  %v1377_v59 = vmul.f32 %v2254_v37, %v5380_v34  ;;  %v5412_v44 = vand.u32 2147483647, %v3988_v47  ;;  %v4376_v5 = vpop.eup %2559  ;;  %v5416_v18 = vld [vmem:[#allocation35_spill] sm:$0xff] }
 0x176   : > { %v899_v43 = vsub.f32 %v5410_v49, %v897_v15  ;;  %v898_v61 = vsub.f32 %v5411_v17, %v896_v16  ;;  %v1096_v31 = vmul.f32 %v2250_v10, %v5380_v34  ;;  %v5415_v32 = vsel %vm4272_vm11, %v4236_v0, %v4270_v1  ;;  %v5419_v0 = vld [vmem:[#allocation33_spill] sm:$0xff]  ;;  %v4438_v63 = vpop.permute.xlu1 %1622 }
 0x177   : > { %v1064_v7 = vadd.f32 %v1062_v38, %v1036_v33  ;;  %vm4371_vm15 = vcmp.lt.f32.partialorder %v5412_v44, 0.0004427343  ;;  %v1063_v52 = vadd.f32 %v5415_v32, %v1035_v23  ;;  %v1122_v38 = vmul.f32 0.6931472, %v2556_v29  ;;  %v2562_v29 = vpop.eup %2561 }
 0x178   : > { %v1381_v47 = vmul.f32 %v1377_v59, %v5416_v18  ;;  %v5417_v37 = vsel %vm4214_vm9, %v4166_v45, %v4248_v35  ;;  %v926_v15 = vadd.f32 %v5418_v8, %v898_v61  ;;  %v1100_v1 = vmul.f32 %v1096_v31, %v5419_v0  ;;  %v4409_v48 = vpop.eup %2563 }
 0x179   : > { %v927_v10 = vadd.f32 %v5417_v37, %v899_v43  ;;  %v4397_v13 = vadd.f32 %v4244_v39, %v1064_v7  ;;  %v1599_v59 = vmul.f32 %v4224_v14, %v5346_v50  ;;  %v4405_v45 = vadd.f32 %v4260_v53, %v1063_v52  ;;  %v4420_v62 = vpop.eup %2565 }
 0x17a   : > { %v5420_v4 = vmax.f32 %v5416_v18, 0.0  ;;  %v4414_v39 = vadd.f32 %v4218_v6, %v926_v15  ;;  %v5421_v56 = vmax.f32 %v5419_v0, 0.0  ;;  %v1409_v14 = vsel %vm4345_vm14, %v1406_v27, %v1403_v46  ;;  %v2568_v46 = vpop.eup %2567 }
 0x17b   : > { %v4411_v61 = vadd.f32 %v2554_v51, %v927_v10  ;;  %v4422_v53 = vmul.f32 0.6931472, %v2548_v22  ;;  %v1128_v33 = vsel %vm4341_vm13, %v4321_v12, %v1122_v38  ;;  %v4427_v51 = vpop.permute.xlu0 %2257  ;;  %v1470_v6 = vmul.f32 -0.5, %v4012_v20 }
 0x17c   : > { %v1383_v35 = vsub.f32 %v5420_v4, %v1381_v47  ;;  %v1102_v16 = vsub.f32 %v5421_v56, %v1100_v1  ;;  %v1253_v49 = vmul.f32 1.442695, %v1251_v41  ;;  %v4432_v17 = vmul.f32 %v4064_v54, %v4326_v40  ;;  %v5426_v47 = vld [vmem:[#allocation34_spill] sm:$0xff] }
 0x17d   : > { %2569 = vlog2.f32 %v1458_v2  ;;  %v1758_v22 = vmul.f32 1.442695, %v1756_v3  ;;  %v1461_v12 = vmul.f32 -0.5, %v5409_v11  ;;  %v1602_v27 = vmul.f32 1.442695, %v1599_v59  ;;  %v4469_v59 = vpop.permute.xlu1 %1968 }
 0x17e   : > { %v1411_v23 = vadd.f32 %v1409_v14, %v1383_v35  ;;  %v1130_v43 = vadd.f32 %v1128_v33, %v1102_v16  ;;  %2571 = vpow2.f32 %v999_v24  ;;  %v1822_v7 = vmul.f32 %v4246_v57, %v5343_v58  ;;  %v5429_v14 = vld [vmem:[#allocation74_spill] sm:$0xff] }
 0x17f   : > { %v2259_v40 = vunpack.i.l.bf16 %v4427_v51  ;;  %v1317_v24 = vmul.f32 %v4233_v21, %v5343_v58  ;;  %v2255_v2 = vunpack.i.h.bf16 %v4336_v60  ;;  %v1471_v31 = vadd.f32 1.0, %v1470_v6  ;;  %v5422_v21 = vld [vmem:[#allocation89_spill] sm:$0xff]  ;;  %v4474_v16 = vpop.permute.xlu0 %1900 }
 0x180   : > { %v4435_v9 = vadd.f32 %v4324_v36, %v1411_v23  ;;  %v4443_v44 = vadd.f32 %v4287_v42, %v1130_v43  ;;  %v1119_v36 = vsel %vm4371_vm15, %v4298_v19, %v4422_v53  ;;  %v815_v41 = vadd.f32 1e-06, %v4238_v25 }
 0x181   : > { %2573 = vpow2.f32 %v1253_v49  ;;  %v1443_v57 = vmul.f32 %v2259_v40, %v5380_v34  ;;  %v1473_v42 = vand.u32 2147483647, %v4012_v20  ;;  %v814_v32 = vadd.f32 1e-06, %v4240_v26  ;;  %v5427_v26 = vld [vmem:[#allocation25_spill] sm:$0xff]  ;;  %v5432_v40 = vld [vmem:[#allocation96_spill] sm:$0xff] }
 0x182   : > { %2575 = vpow2.f32 %v1758_v22  ;;  %v1598_v52 = vmul.f32 %v5422_v21, %v5343_v58  ;;  %v5423_v38 = vand.u32 2147483647, %v4064_v54  ;;  %v1469_v60 = vmul.f32 0.6931472, %v2568_v46  ;;  %v5430_v46 = vld [vmem:[#allocation32_spill] sm:$0xff] }
 0x183   : > { %2577 = vpow2.f32 %v1602_v27  ;;  %v1824_v25 = vmul.f32 1.442695, %v1822_v7  ;;  %v1447_v37 = vmul.f32 %v1443_v57, %v5426_v47  ;;  %v1462_v10 = vadd.f32 1.0, %v1461_v12  ;;  %v5431_v27 = vld [vmem:[#allocation92_spill] sm:$0xff] }
 0x184   : > { %vm4461_vm0 = vcmp.lt.f32.partialorder %v5423_v38, 0.0004427343  ;;  %v1319_v8 = vmul.f32 1.442695, %v1317_v24  ;;  %v2249_v15 = vunpack.i.l.bf16 %v4350_v55  ;;  %v1376_v0 = vmul.f32 %v2255_v2, %v5427_v26 }
 0x185   : > { %v1472_v1 = vmul.f32 %v4012_v20, %v1471_v31  ;;  %2579 = vrcp.f32 %v815_v41  ;;  %v5428_v54 = vmax.f32 %v5426_v47, 0.0  ;;  %v1464_v4 = vand.u32 2147483647, %v5409_v11  ;;  %v5438_v47 = vld [vmem:[#allocation94_spill] sm:$0xff] }
 0x186   : > { %vm1474_vm1 = vcmp.lt.f32.partialorder %v1473_v42, 0.0004427343  ;;  %2581 = vrcp.f32 %v814_v32  ;;  %v1600_v35 = vmul.f32 1.442695, %v1598_v52  ;;  %v987_v55 = vmul.f32 -0.5, %v5429_v14  ;;  %v4498_v32 = vpop.permute.xlu1 %2267 }
 0x187   : > { %v1449_v3 = vsub.f32 %v5428_v54, %v1447_v37  ;;  %v1475_v56 = vsel %vm1474_vm1, %v1472_v1, %v1469_v60  ;;  %v2570_v33 = vpop.eup %2569  ;;  %2583 = vpow2.f32 %v1824_v25  ;;  %v1394_v23 = vmul.f32 0.6931472, %v2562_v29  ;;  %v5433_v29 = vld [vmem:[#allocation67_spill] sm:$0xff]  ;;  %v2263_v1 = vpop.permute.xlu0 %2262 }
 0x188   : > { %v4478_v20 = vmul.f32 %v5409_v11, %v1462_v10  ;;  %v4480_v49 = vpop.eup %2571  ;;  %2585 = vpow2.f32 %v1319_v8  ;;  %v1095_v43 = vmul.f32 %v2249_v15, %v5427_v26  ;;  %v1380_v22 = vmul.f32 %v1376_v0, %v5430_v46  ;;  %v5434_v11 = vld [vmem:[#allocation72_spill] sm:$0xff]  ;;  %v5439_v10 = vld [vmem:[#allocation45_spill] sm:$0xff] }
 0x189   : > { %v1477_v6 = vadd.f32 %v1475_v56, %v1449_v3  ;;  %v984_v12 = vadd.f32 1.0, %v5429_v14  ;;  %v1943_v7 = vmul.f32 %v5431_v27, %v5346_v50  ;;  %v975_v2 = vadd.f32 1.0, %v5433_v29 }
 0x18a   : > { %v1745_v31 = vadd.f32 1.0, %v5434_v11  ;;  %2587 = vpow2.f32 %v1600_v35  ;;  %v4492_v41 = vmul.f32 0.6931472, %v2570_v33  ;;  %vm4494_vm2 = vcmp.lt.f32.partialorder %v1464_v4, 0.0004427343  ;;  %v5441_v35 = vld [vmem:[#allocation78_spill] sm:$0xff] }
 0x18b   : > { %v4488_v24 = vadd.f32 %v5432_v40, %v1477_v6  ;;  %v988_v42 = vadd.f32 1.0, %v987_v55  ;;  %v4500_v21 = vpop.eup %2573  ;;  %v1400_v52 = vsel %vm4461_vm0, %v4432_v17, %v1394_v23  ;;  %v2260_v38 = vunpack.i.h.bf16 %v4427_v51 }
 0x18c   : > { %5437 = vst [vmem:[#allocation71_spill] sm:$0xff] %v4500_v21  ;;  %v990_v60 = vand.u32 2147483647, %v5429_v14  ;;  %2589 = vlog2.f32 %v1745_v31  ;;  %v4507_v25 = vpop.eup %2575  ;;  %v1665_v37 = vmul.f32 %v5438_v47, %v5346_v50  ;;  %v1099_v8 = vmul.f32 %v1095_v43, %v5439_v10 }
 0x18d   : > { %v5440_v15 = vmax.f32 %v5430_v46, 0.0  ;;  %2591 = vlog2.f32 %v984_v12  ;;  %v4514_v54 = vpop.eup %2577  ;;  %v1946_v17 = vmul.f32 1.442695, %v1943_v7  ;;  %v978_v51 = vmul.f32 -0.5, %v5433_v29 }
 0x18e   : > { %2593 = vlog2.f32 %v975_v2  ;;  %v2269_v18 = vunpack.i.l.bf16 %v4498_v32  ;;  %v4523_v4 = vmul.f32 %v5429_v14, %v988_v42  ;;  %v1736_v56 = vadd.f32 1.0, %v5441_v35 }
 0x18f   : > { %v1382_v0 = vsub.f32 %v5440_v15, %v1380_v22  ;;  %v1748_v55 = vmul.f32 -0.5, %v5434_v11  ;;  %v4527_v33 = vpop.eup %2579  ;;  %v1442_v23 = vmul.f32 %v2260_v38, %v5427_v26  ;;  %v2265_v6 = vunpack.i.h.bf16 %v2263_v1  ;;  %v5443_v38 = vld [vmem:[#allocation31_spill] sm:$0xff] }
 0x190   : > { %v981_v43 = vand.u32 2147483647, %v5433_v29  ;;  %v1721_v46 = vmul.f32 %v2269_v18, %v5380_v34  ;;  %v4532_v22 = vpop.eup %2581  ;;  %v1668_v12 = vmul.f32 1.442695, %v1665_v37  ;;  %v5442_v27 = vmax.f32 %v5439_v10, 0.0 }
 0x191   : > { %v1410_v7 = vadd.f32 %v1400_v52, %v1382_v0  ;;  %v2264_v40 = vunpack.i.l.bf16 %v2263_v1  ;;  %v4536_v2 = vpop.eup %2583  ;;  %2595 = vpow2.f32 %v1946_v17  ;;  %v1074_v31 = vadd.f32 1e-06, %v4397_v13  ;;  %v5445_v52 = vld [vmem:[#allocation48_spill] sm:$0xff] }
 0x192   : > { %v1101_v14 = vsub.f32 %v5442_v27, %v1099_v8  ;;  %v979_v42 = vadd.f32 1.0, %v978_v51  ;;  %v1725_v47 = vmul.f32 %v1721_v46, %v5443_v38  ;;  %v4540_v15 = vpop.eup %2585  ;;  %v1073_v18 = vadd.f32 1e-06, %v4405_v45 }
 0x193   : > { %5444 = vst [vmem:[#allocation35_spill] sm:$0xff] %v4540_v15  ;;  %2597 = vlog2.f32 %v1736_v56  ;;  %v1739_v37 = vmul.f32 -0.5, %v5441_v35  ;;  %v1749_v3 = vadd.f32 1.0, %v1748_v55  ;;  %v937_v10 = vadd.f32 1e-06, %v4411_v61 }
 0x194   : > { %v1446_v8 = vmul.f32 %v1442_v23, %v5445_v52  ;;  %v960_v0 = vmul.f32 %v2265_v6, %v5380_v34  ;;  %v1751_v1 = vand.u32 2147483647, %v5434_v11  ;;  %v4548_v13 = vpop.eup %2587  ;;  %2599 = vpow2.f32 %v1668_v12 }
 0x195   : > { %v1129_v45 = vadd.f32 %v1119_v36, %v1101_v14  ;;  %v1418_v17 = vadd.f32 %v4376_v5, %v1410_v7  ;;  %v959_v51 = vmul.f32 %v2264_v40, %v5427_v26  ;;  %v936_v56 = vadd.f32 1e-06, %v4414_v39  ;;  %v5453_v14 = vld [vmem:[#allocation93_spill] sm:$0xff] }
 0x196   : > { %v2590_v61 = vpop.eup %2589  ;;  %2601 = vrcp.f32 %v1074_v31  ;;  %vm4558_vm3 = vcmp.lt.f32.partialorder %v990_v60, 0.0004427343  ;;  %v980_v23 = vmul.f32 %v5433_v29, %v979_v42  ;;  %v5448_v28 = vmax.f32 %v5443_v38, 0.0  ;;  %v5452_v29 = vld [vmem:[#allocation53_spill] sm:$0xff] }
 0x197   : > { %v2592_v46 = vpop.eup %2591  ;;  %2603 = vrcp.f32 %v1073_v18  ;;  %vm4565_vm4 = vcmp.lt.f32.partialorder %v981_v43, 0.0004427343  ;;  %v1747_v5 = vmul.f32 0.6931472, %v2590_v61  ;;  %v1750_v53 = vmul.f32 %v5434_v11, %v1749_v3  ;;  %v5454_v43 = vld [vmem:[#allocation50_spill] sm:$0xff] }
 0x198   : > { %v1727_v6 = vsub.f32 %v5448_v28, %v1725_v47  ;;  %v2270_v39 = vunpack.i.h.bf16 %v4498_v32  ;;  %v2594_v36 = vpop.eup %2593  ;;  %2605 = vrcp.f32 %v937_v10  ;;  %v5451_v60 = vmax.f32 %v5445_v52, 0.0 }
 0x199   : > { %v964_v27 = vmul.f32 %v960_v0, %v5452_v29  ;;  %vm1752_vm5 = vcmp.lt.f32.partialorder %v1751_v1, 0.0004427343  ;;  %v1137_v7 = vadd.f32 %v5453_v14, %v1129_v45  ;;  %v1420_v40 = vadd.f32 1e-06, %v1418_v17  ;;  %v5457_v45 = vld [vmem:[#allocation79_spill] sm:$0xff] }
 0x19a   : > { %v1448_v12 = vsub.f32 %v5451_v60, %v1446_v8  ;;  %v963_v31 = vmul.f32 %v959_v51, %v5454_v43  ;;  %v1753_v42 = vsel %vm1752_vm5, %v1750_v53, %v1747_v5  ;;  %2607 = vrcp.f32 %v936_v56 }
 0x19b   : > { %v1140_v38 = vadd.f32 1e-06, %v4443_v44  ;;  %v1664_v11 = vmul.f32 %v4438_v63, %v5343_v58  ;;  %v1755_v32 = vadd.f32 %v1753_v42, %v1727_v6  ;;  %v1942_v3 = vmul.f32 %v4474_v16, %v5343_v58  ;;  %v4582_v52 = vpop.eup %2595  ;;  %v2273_v6 = vpop.permute.xlu0 %2272 }
 0x19c   : > { %v986_v47 = vmul.f32 0.6931472, %v2592_v46  ;;  %v977_v18 = vmul.f32 0.6931472, %v2594_v36  ;;  %v1720_v10 = vmul.f32 %v2270_v39, %v5427_v26  ;;  %v5455_v8 = vsel %vm4494_vm2, %v4478_v20, %v4492_v41  ;;  %v5459_v39 = vld [vmem:[#allocation59_spill] sm:$0xff] }
 0x19d   : > { %v1476_v0 = vadd.f32 %v5455_v8, %v1448_v12  ;;  %v5456_v44 = vmax.f32 %v5452_v29, 0.0  ;;  %v4592_v63 = vadd.f32 %v4420_v62, %v1755_v32  ;;  %v1802_v16 = vadd.f32 1.0, %v5457_v45  ;;  %v2598_v17 = vpop.eup %2597 }
 0x19e   : > { %v1139_v51 = vadd.f32 1e-06, %v1137_v7  ;;  %2609 = vrcp.f32 %v1420_v40  ;;  %v5458_v61 = vmax.f32 %v5454_v43, 0.0  ;;  %v1740_v28 = vadd.f32 1.0, %v1739_v37  ;;  %v4601_v62 = vpop.eup %2599  ;;  %v5461_v43 = vld [vmem:[#allocation73_spill] sm:$0xff] }
 0x19f   : > { %v966_v1 = vsub.f32 %v5456_v44, %v964_v27  ;;  %2611 = vrcp.f32 %v1140_v38  ;;  %v1421_v57 = vadd.f32 1e-06, %v4435_v9  ;;  %v2009_v20 = vmul.f32 %v4469_v59, %v5346_v50  ;;  %v1967_v38 = vpop.permute.xlu1 %1966 }
 0x1a0   : > { %v965_v56 = vsub.f32 %v5458_v61, %v963_v31  ;;  %v1742_v41 = vand.u32 2147483647, %v5441_v35  ;;  %v1666_v46 = vmul.f32 1.442695, %v1664_v11  ;;  %v1944_v5 = vmul.f32 1.442695, %v1942_v3  ;;  %v4607_v37 = vpop.eup %2601 }
 0x1a1   : > { %v992_v53 = vsel %vm4558_vm3, %v4523_v4, %v986_v47  ;;  %v1724_v36 = vmul.f32 %v1720_v10, %v5459_v39  ;;  %v1484_v9 = vadd.f32 %v4363_v30, %v1476_v0  ;;  %v983_v59 = vsel %vm4565_vm4, %v980_v23, %v977_v18  ;;  %v4612_v12 = vpop.eup %2603  ;;  %v5460_v4 = vld [vmem:[#allocation86_spill] sm:$0xff]  ;;  %v5463_v18 = vld [vmem:[#allocation97_spill] sm:$0xff] }
 0x1a2   : > { %v994_v60 = vadd.f32 %v992_v53, %v966_v1  ;;  %2613 = vlog2.f32 %v1802_v16  ;;  %v993_v29 = vadd.f32 %v983_v59, %v965_v56  ;;  %v1738_v27 = vmul.f32 0.6931472, %v2598_v17  ;;  %v4614_v7 = vpop.eup %2605  ;;  %v5464_v1 = vld [vmem:[#allocation82_spill] sm:$0xff]  ;;  %v5466_v56 = vld [vmem:[#allocation77_spill] sm:$0xff]  ;;  %v5470_v53 = vld [vmem:[#allocation60_spill] sm:$0xff] }
 0x1a3   : > { %2615 = vrcp.f32 %v1139_v51  ;;  %v2275_v14 = vunpack.i.h.bf16 %v2273_v6  ;;  %v1252_v55 = vmul.f32 %v5460_v4, %v5346_v50  ;;  %v2274_v40 = vunpack.i.l.bf16 %v2273_v6  ;;  %v5465_v51 = vld [vmem:[#allocation68_spill] sm:$0xff]  ;;  %v5468_v6 = vld [vmem:[#allocation90_spill] sm:$0xff] }
 0x1a4   : > { %2617 = vrcp.f32 %v1421_v57  ;;  %v1811_v30 = vadd.f32 1.0, %v5461_v43  ;;  %v2012_v31 = vmul.f32 1.442695, %v2009_v20  ;;  %v1741_v23 = vmul.f32 %v5441_v35, %v1740_v28  ;;  %v4622_v11 = vpop.eup %2607 }
 0x1a5   : > { %2619 = vpow2.f32 %v1666_v46  ;;  %v5462_v19 = vmax.f32 %v5459_v39, 0.0  ;;  %v1486_v32 = vadd.f32 1e-06, %v1484_v9  ;;  %v1002_v3 = vadd.f32 %v4480_v49, %v994_v60  ;;  %v5471_v60 = vld [vmem:[#allocation47_spill] sm:$0xff] }
 0x1a6   : > { %2621 = vpow2.f32 %v1944_v5  ;;  %vm1743_vm6 = vcmp.lt.f32.partialorder %v1742_v41, 0.0004427343  ;;  %v1487_v47 = vadd.f32 1e-06, %v4488_v24  ;;  %v1001_v10 = vadd.f32 %v5463_v18, %v993_v29 }
 0x1a7   : > { %v1726_v42 = vsub.f32 %v5462_v19, %v1724_v36  ;;  %v1744_v8 = vsel %vm1743_vm6, %v1741_v23, %v1738_v27  ;;  %v1786_v0 = vmul.f32 %v2275_v14, %v5427_v26  ;;  %v1787_v35 = vmul.f32 %v2274_v40, %v5380_v34  ;;  %v2283_v36 = vpop.permute.xlu1 %2282  ;;  %v5474_v19 = vld [vmem:[#allocation76_spill] sm:$0xff] }
 0x1a8   : > { %v1805_v44 = vmul.f32 -0.5, %v5457_v45  ;;  %2623 = vlog2.f32 %v1811_v30  ;;  %v1578_v16 = vadd.f32 1.0, %v5464_v1  ;;  %v4631_v17 = vpop.eup %2609  ;;  %v1587_v24 = vadd.f32 1.0, %v5466_v56  ;;  %v4652_v30 = vpop.permute.xlu0 %2277 }
 0x1a9   : > { %2625 = vpow2.f32 %v2012_v31  ;;  %v1754_v49 = vadd.f32 %v1744_v8, %v1726_v42  ;;  %v4635_v28 = vpop.eup %2611  ;;  %v4637_v57 = vmul.f32 1.442695, %v1252_v55  ;;  %v1004_v20 = vadd.f32 1e-06, %v1002_v3  ;;  %5472 = vst [vmem:[#allocation34_spill] sm:$0xff] %v4652_v30 }
 0x1aa   : > { %2627 = vrcp.f32 %v1486_v32  ;;  %v1814_v41 = vmul.f32 -0.5, %v5461_v43  ;;  %v4642_v46 = vmul.f32 %v5468_v6, %v5346_v50  ;;  %v1003_v5 = vadd.f32 1e-06, %v1001_v10  ;;  %v5476_v10 = vld [vmem:[#allocation75_spill] sm:$0xff] }
 0x1ab   : > { %5467 = vst [vmem:[#allocation33_spill] sm:$0xff] %v4637_v57  ;;  %2629 = vrcp.f32 %v1487_v47  ;;  %v1790_v39 = vmul.f32 %v1786_v0, %v5470_v53  ;;  %v1791_v59 = vmul.f32 %v1787_v35, %v5471_v60  ;;  %v1806_v29 = vadd.f32 1.0, %v1805_v44 }
 0x1ac   : > { %5469 = vst [vmem:[#allocation89_spill] sm:$0xff] %v4642_v46  ;;  %v2614_v9 = vpop.eup %2613  ;;  %v1808_v27 = vand.u32 2147483647, %v5457_v45  ;;  %2631 = vlog2.f32 %v1578_v16  ;;  %v1762_v4 = vadd.f32 %v4507_v25, %v1754_v49  ;;  %v1817_v55 = vand.u32 2147483647, %v5461_v43  ;;  %v4707_v57 = vpop.permute.xlu0 %2287 }
 0x1ad   : > { %v4647_v14 = vpop.eup %2615  ;;  %v2008_v40 = vmul.f32 %v1967_v38, %v5343_v58  ;;  %2633 = vlog2.f32 %v1587_v24  ;;  %v1815_v23 = vadd.f32 1.0, %v1814_v41  ;;  %v1240_v42 = vadd.f32 1.0, %v5474_v19  ;;  %5488 = vst [vmem:[#allocation96_spill] sm:$0xff] %v4707_v57 }
 0x1ae   : > { %v4654_v31 = vpop.eup %2617  ;;  %2635 = vrcp.f32 %v1004_v20  ;;  %v2285_v32 = vunpack.i.h.bf16 %v2283_v36  ;;  %v5475_v47 = vmax.f32 %v5470_v53, 0.0  ;;  %v1804_v25 = vmul.f32 0.6931472, %v2614_v9 }
 0x1af   : > { %5473 = vst [vmem:[#allocation74_spill] sm:$0xff] %v4654_v31  ;;  %v4657_v3 = vpop.eup %2619  ;;  %v1231_v8 = vadd.f32 1.0, %v5476_v10  ;;  %v2284_v0 = vunpack.i.l.bf16 %v2283_v36  ;;  %2637 = vrcp.f32 %v1003_v5  ;;  %v1807_v35 = vmul.f32 %v5457_v45, %v1806_v29  ;;  %v5528_v31 = vld [vmem:[#allocation54_spill] sm:$0xff] }
 0x1b0   : > { %v1792_v18 = vsub.f32 %v5475_v47, %v1790_v39  ;;  %v4662_v38 = vpop.eup %2621  ;;  %vm4665_vm7 = vcmp.lt.f32.partialorder %v1808_v27, 0.0004427343  ;;  %v2279_v16 = vunpack.i.l.bf16 %v4652_v30  ;;  %v1764_v49 = vadd.f32 1e-06, %v1762_v4 }
 0x1b1   : > { %v5479_v24 = vmax.f32 %v5471_v60, 0.0  ;;  %vm4672_vm8 = vcmp.lt.f32.partialorder %v1817_v55, 0.0004427343  ;;  %v2010_v6 = vmul.f32 1.442695, %v2008_v40  ;;  %v1816_v5 = vmul.f32 %v5461_v43, %v1815_v23 }
 0x1b2   : > { %v2624_v53 = vpop.eup %2623  ;;  %2639 = vlog2.f32 %v1240_v42  ;;  %v4678_v45 = vmul.f32 -0.5, %v5474_v19  ;;  %v1562_v39 = vmul.f32 %v2285_v32, %v5427_v26  ;;  %v1810_v9 = vsel %vm4665_vm7, %v1807_v35, %v1804_v25  ;;  %v5484_v32 = vld [vmem:[#allocation85_spill] sm:$0xff] }
 0x1b3   : > { %v1793_v20 = vsub.f32 %v5479_v24, %v1791_v59  ;;  %v4681_v36 = vpop.eup %2625  ;;  %2641 = vlog2.f32 %v1231_v8  ;;  %v1581_v60 = vmul.f32 -0.5, %v5464_v1  ;;  %v1563_v59 = vmul.f32 %v2284_v0, %v5380_v34  ;;  %v5485_v0 = vld [vmem:[#allocation63_spill] sm:$0xff] }
 0x1b4   : > { %5482 = vst [vmem:[#allocation32_spill] sm:$0xff] %v4678_v45  ;;  %v4687_v29 = vpop.eup %2627  ;;  %v1820_v27 = vadd.f32 %v1810_v9, %v1792_v18  ;;  %v1215_v43 = vmul.f32 %v2279_v16, %v5427_v26  ;;  %v1234_v4 = vmul.f32 -0.5, %v5476_v10  ;;  %v1590_v55 = vmul.f32 -0.5, %v5466_v56  ;;  %v5486_v9 = vld [vmem:[#allocation29_spill] sm:$0xff] }
 0x1b5   : > { %v4692_v40 = vpop.eup %2629  ;;  %2643 = vrcp.f32 %v1764_v49  ;;  %v1765_v23 = vadd.f32 1e-06, %v4592_v63  ;;  %v1813_v42 = vmul.f32 0.6931472, %v2624_v53  ;;  %v1644_v47 = vadd.f32 1.0, %v5484_v32  ;;  %v4701_v49 = vpop.permute.xlu1 %2292 }
 0x1b6   : > { %5483 = vst [vmem:[#allocation92_spill] sm:$0xff] %v4692_v40  ;;  %v2632_v25 = vpop.eup %2631  ;;  %2645 = vpow2.f32 %v2010_v6  ;;  %v1237_v18 = vand.u32 2147483647, %v5476_v10  ;;  %v1566_v35 = vmul.f32 %v1562_v39, %v5485_v0  ;;  %v1582_v16 = vadd.f32 1.0, %v1581_v60  ;;  %v5487_v6 = vld [vmem:[#allocation56_spill] sm:$0xff] }
 0x1b7   : > { %v2634_v44 = vpop.eup %2633  ;;  %v1584_v24 = vand.u32 2147483647, %v5464_v1  ;;  %v1567_v61 = vmul.f32 %v1563_v59, %v5486_v9  ;;  %2647 = vlog2.f32 %v1644_v47  ;;  %v1828_v53 = vadd.f32 %v4536_v2, %v1820_v27 }
 0x1b8   : > { %v4703_v63 = vpop.eup %2635  ;;  %v1219_v19 = vmul.f32 %v1215_v43, %v5487_v6  ;;  %v1235_v8 = vadd.f32 1.0, %v1234_v4  ;;  %v1591_v50 = vadd.f32 1.0, %v1590_v55  ;;  %2649 = vrcp.f32 %v1765_v23  ;;  %v5493_v55 = vld [vmem:[#allocation87_spill] sm:$0xff] }
 0x1b9   : > { %v1819_v39 = vsel %vm4672_vm8, %v1816_v5, %v1813_v42  ;;  %v1580_v60 = vmul.f32 0.6931472, %v2632_v25  ;;  %v1593_v59 = vand.u32 2147483647, %v5466_v56  ;;  %v4712_v47 = vpop.eup %2637  ;;  %v1589_v45 = vmul.f32 0.6931472, %v2634_v44 }
 0x1ba   : > { %v1821_v15 = vadd.f32 %v1819_v39, %v1793_v20  ;;  %v5489_v30 = vmax.f32 %v5485_v0, 0.0  ;;  %v2295_v27 = vunpack.i.h.bf16 %v4701_v49  ;;  %v1583_v43 = vmul.f32 %v5464_v1, %v1582_v16 }
 0x1bb   : > { %vm4718_vm9 = vcmp.lt.f32.partialorder %v1584_v24, 0.0004427343  ;;  %v5492_v41 = vmax.f32 %v5486_v9, 0.0  ;;  %v1922_v23 = vadd.f32 1.0, %v5493_v55  ;;  %v1830_v20 = vadd.f32 1e-06, %v1828_v53 }
 0x1bc   : > { %v1568_v2 = vsub.f32 %v5489_v30, %v1566_v35  ;;  %v4725_v42 = vpop.eup %2639  ;;  %vm4727_vm10 = vcmp.lt.f32.partialorder %v1237_v18, 0.0004427343  ;;  %v1592_v30 = vmul.f32 %v5466_v56, %v1591_v50  ;;  %v1647_v1 = vmul.f32 -0.5, %v5484_v32  ;;  %v5498_v24 = vld [vmem:[#allocation80_spill] sm:$0xff]  ;;  %v4740_v50 = vpop.permute.xlu0 %2297 }
 0x1bd   : > { %v1569_v5 = vsub.f32 %v5492_v41, %v1567_v61  ;;  %5494 = vst [vmem:[#allocation67_spill] sm:$0xff] %v4725_v42  ;;  %v1628_v0 = vmul.f32 %v2295_v27, %v5427_v26  ;;  %v2642_v35 = vpop.eup %2641  ;;  %v5497_v44 = vmax.f32 %v5487_v6, 0.0  ;;  %v1586_v61 = vsel %vm4718_vm9, %v1583_v43, %v1580_v60  ;;  %v5499_v6 = vld [vmem:[#allocation66_spill] sm:$0xff] }
 0x1be   : > { %vm1594_vm11 = vcmp.lt.f32.partialorder %v1593_v59, 0.0004427343  ;;  %v1297_v9 = vadd.f32 1.0, %v5498_v24  ;;  %v1829_v18 = vadd.f32 %v4409_v48, %v1821_v15  ;;  %v1596_v39 = vadd.f32 %v1586_v61, %v1568_v2  ;;  %v5500_v48 = vld [vmem:[#allocation83_spill] sm:$0xff]  ;;  %v5510_v42 = vld [vmem:[#allocation26_spill] sm:$0xff] }
 0x1bf   : > { %v1221_v16 = vsub.f32 %v5497_v44, %v1219_v19  ;;  %v1595_v53 = vsel %vm1594_vm11, %v1592_v30, %v1589_v45  ;;  %2651 = vlog2.f32 %v1922_v23  ;;  %v4742_v56 = vpop.eup %2643  ;;  %v1236_v27 = vmul.f32 %v5476_v10, %v1235_v8 }
 0x1c0   : > { %v1597_v41 = vadd.f32 %v1595_v53, %v1569_v5  ;;  %v1300_v19 = vmul.f32 -0.5, %v5498_v24  ;;  %v1632_v4 = vmul.f32 %v1628_v0, %v5499_v6  ;;  %v4747_v60 = vpop.eup %2645  ;;  %2653 = vrcp.f32 %v1830_v20 }
 0x1c1   : > { %v1233_v59 = vmul.f32 0.6931472, %v2642_v35  ;;  %v1648_v43 = vadd.f32 1.0, %v1647_v1  ;;  %v1653_v15 = vadd.f32 1.0, %v5500_v48  ;;  %v2648_v45 = vpop.eup %2647  ;;  %2655 = vlog2.f32 %v1297_v9 }
 0x1c2   : > { %v1650_v23 = vand.u32 2147483647, %v5484_v32  ;;  %v2300_v10 = vunpack.i.h.bf16 %v4740_v50  ;;  %v1831_v8 = vadd.f32 1e-06, %v1829_v18  ;;  %v1604_v5 = vadd.f32 %v4548_v13, %v1596_v39  ;;  %v4755_v44 = vpop.eup %2649  ;;  %v5503_v39 = vld [vmem:[#allocation81_spill] sm:$0xff] }
 0x1c3   : > { %v1646_v30 = vmul.f32 0.6931472, %v2648_v45  ;;  %v2294_v0 = vunpack.i.l.bf16 %v4701_v49  ;;  %5501 = vst [vmem:[#allocation72_spill] sm:$0xff] %v4755_v44  ;;  %v1605_v20 = vadd.f32 %v4514_v54, %v1597_v41  ;;  %v1301_v1 = vadd.f32 1.0, %v1300_v19  ;;  %v5525_v44 = vld [vmem:[#allocation19_spill] sm:$0xff] }
 0x1c4   : > { %v2289_v35 = vunpack.i.l.bf16 %v4707_v57  ;;  %v5502_v61 = vmax.f32 %v5499_v6, 0.0  ;;  %v1649_v53 = vmul.f32 %v5484_v32, %v1648_v43  ;;  %2657 = vlog2.f32 %v1653_v15 }
 0x1c5   : > { %v1656_v18 = vmul.f32 -0.5, %v5500_v48  ;;  %v1906_v13 = vmul.f32 %v2300_v10, %v5427_v26  ;;  %v1239_v49 = vsel %vm4727_vm10, %v1236_v27, %v1233_v59  ;;  %v1306_v45 = vadd.f32 1.0, %v5503_v39  ;;  %v5506_v59 = vld [vmem:[#allocation84_spill] sm:$0xff] }
 0x1c6   : > { %v1634_v9 = vsub.f32 %v5502_v61, %v1632_v4  ;;  %vm1651_vm12 = vcmp.lt.f32.partialorder %v1650_v23, 0.0004427343  ;;  %v1925_v54 = vmul.f32 -0.5, %v5493_v55  ;;  %2659 = vrcp.f32 %v1831_v8 }
 0x1c7   : > { %v1606_v41 = vadd.f32 1e-06, %v1604_v5  ;;  %v1652_v19 = vsel %vm1651_vm12, %v1649_v53, %v1646_v30  ;;  %v1629_v6 = vmul.f32 %v2294_v0, %v5380_v34  ;;  %v4769_v4 = vadd.f32 %v1239_v49, %v1221_v16  ;;  %v5507_v16 = vld [vmem:[#allocation88_spill] sm:$0xff] }
 0x1c8   : > { %v1607_v32 = vadd.f32 1e-06, %v1605_v20  ;;  %v4772_v43 = vmul.f32 %v5498_v24, %v1301_v1  ;;  %v1662_v15 = vadd.f32 %v1652_v19, %v1634_v9  ;;  %v4775_v25 = vmul.f32 %v2289_v35, %v5427_v26  ;;  %v5508_v1 = vld [vmem:[#allocation64_spill] sm:$0xff] }
 0x1c9   : > { %5504 = vst [vmem:[#allocation94_spill] sm:$0xff] %v4769_v4  ;;  %v2652_v10 = vpop.eup %2651  ;;  %v1657_v27 = vadd.f32 1.0, %v1656_v18  ;;  %v1934_v23 = vmul.f32 -0.5, %v5506_v59  ;;  %v1910_v8 = vmul.f32 %v1906_v13, %v5465_v51  ;;  %2661 = vlog2.f32 %v1306_v45 }
 0x1ca   : > { %5505 = vst [vmem:[#allocation45_spill] sm:$0xff] %v4772_v43  ;;  %v1926_v5 = vadd.f32 1.0, %v1925_v54  ;;  %v2299_v30 = vunpack.i.l.bf16 %v4740_v50  ;;  %v1988_v0 = vadd.f32 1.0, %v5507_v16  ;;  %v4781_v20 = vpop.eup %2653  ;;  %2663 = vrcp.f32 %v1606_v41  ;;  %v1963_v50 = vpop.permute.xlu0 %1962 }
 0x1cb   : > { %v1633_v61 = vmul.f32 %v1629_v6, %v5508_v1  ;;  %v1928_v9 = vand.u32 2147483647, %v5493_v55  ;;  %v1931_v35 = vadd.f32 1.0, %v5506_v59  ;;  %v4786_v53 = vpop.eup %2655  ;;  %2665 = vrcp.f32 %v1607_v32 }
 0x1cc   : > { %v1659_v18 = vand.u32 2147483647, %v5500_v48  ;;  %v1670_v13 = vadd.f32 %v4657_v3, %v1662_v15  ;;  %v1924_v49 = vmul.f32 0.6931472, %v2652_v10  ;;  %v4791_v45 = vmul.f32 %v5500_v48, %v1657_v27 }
 0x1cd   : > { %v1935_v54 = vadd.f32 1.0, %v1934_v23  ;;  %v5509_v41 = vmax.f32 %v5465_v51, 0.0  ;;  %2667 = vlog2.f32 %v1988_v0  ;;  %v1927_v6 = vmul.f32 %v5493_v55, %v1926_v5  ;;  %v5512_v55 = vld [vmem:[#allocation69_spill] sm:$0xff] }
 0x1ce   : > { %v1907_v2 = vmul.f32 %v2299_v30, %v5380_v34  ;;  %v1997_v32 = vadd.f32 1.0, %v5510_v42  ;;  %v1991_v39 = vmul.f32 -0.5, %v5507_v16  ;;  %v2658_v57 = vpop.eup %2657  ;;  %v5511_v3 = vmax.f32 %v5508_v1, 0.0  ;;  %v5514_v0 = vld [vmem:[#allocation17_spill] sm:$0xff] }
 0x1cf   : > { %v1912_v19 = vsub.f32 %v5509_v41, %v1910_v8  ;;  %vm1929_vm13 = vcmp.lt.f32.partialorder %v1928_v9, 0.0004427343  ;;  %2669 = vlog2.f32 %v1931_v35  ;;  %v1972_v48 = vmul.f32 %v5427_v26, %v1963_v50 }
 0x1d0   : > { %v4801_v15 = vsub.f32 %v5511_v3, %v1633_v61  ;;  %v1672_v51 = vadd.f32 1e-06, %v1670_v13  ;;  %v1930_v10 = vsel %vm1929_vm13, %v1927_v6, %v1924_v49  ;;  %v1937_v27 = vand.u32 2147483647, %v5506_v59  ;;  %v4806_v8 = vpop.eup %2659  ;;  %v5515_v61 = vld [vmem:[#allocation21_spill] sm:$0xff] }
 0x1d1   : > { %5513 = vst [vmem:[#allocation78_spill] sm:$0xff] %v4806_v8  ;;  %v4809_v5 = vmul.f32 %v5506_v59, %v1935_v54  ;;  %v1940_v30 = vadd.f32 %v1930_v10, %v1912_v19  ;;  %v4812_v1 = vmul.f32 0.02, %v5514_v0  ;;  %v4815_v9 = vmul.f32 0.02, %v5515_v61  ;;  %v5518_v49 = vld [vmem:[#allocation65_spill] sm:$0xff] }
 0x1d2   : > { %v1655_v35 = vmul.f32 0.6931472, %v2658_v57  ;;  %vm4817_vm14 = vcmp.lt.f32.partialorder %v1659_v18, 0.0004427343  ;;  %v1911_v50 = vmul.f32 %v1907_v2, %v5518_v49  ;;  %2671 = vlog2.f32 %v1997_v32  ;;  %v5519_v59 = vld [vmem:[#allocation70_spill] sm:$0xff]  ;;  %v5520_v19 = vld [vmem:[#allocation37_spill] sm:$0xff] }
 0x1d3   : > { %v1992_v41 = vadd.f32 1.0, %v1991_v39  ;;  %v2000_v6 = vmul.f32 -0.5, %v5510_v42  ;;  %v1976_v54 = vmul.f32 %v1972_v48, %v5519_v59  ;;  %v404_v3 = vmul.f32 %v5520_v19, %v4812_v1  ;;  %v5521_v10 = vld [vmem:[#allocation43_spill] sm:$0xff]  ;;  %v4828_v23 = vpop.eup %2661  ;;  %v5523_v18 = vld [vmem:[#allocation16_spill] sm:$0xff]  ;;  %v5524_v2 = vld [vmem:[#allocation18_spill] sm:$0xff] }
 0x1d4   : > { %v471_v0 = vmul.f32 %v5521_v10, %v4815_v9  ;;  %5522 = vst [vmem:[#allocation31_spill] sm:$0xff] %v4828_v23  ;;  %2673 = vrcp.f32 %v1672_v51  ;;  %v1974_v57 = vmax.f32 %v5519_v59, 0.0  ;;  %v4832_v46 = vmul.f32 0.02, %v5523_v18  ;;  %v4837_v32 = vpop.eup %2663  ;;  %v5527_v59 = vld [vmem:[#allocation39_spill] sm:$0xff] }
 0x1d5   : > { %v4835_v39 = vmul.f32 0.02, %v5524_v2  ;;  %v1948_v48 = vadd.f32 %v4662_v38, %v1940_v30  ;;  %v1994_v19 = vand.u32 2147483647, %v5507_v16  ;;  %v4842_v10 = vmul.f32 0.02, %v5525_v44  ;;  %v4844_v23 = vpop.eup %2665 }
 0x1d6   : > { %v473_v8 = vadd.f32 %v471_v0, %v404_v3  ;;  %5526 = vst [vmem:[#allocation48_spill] sm:$0xff] %v4844_v23  ;;  %v1993_v51 = vmul.f32 %v5507_v16, %v1992_v41  ;;  %v526_v40 = vmul.f32 %v5527_v59, %v4832_v46  ;;  %v4852_v43 = vmul.f32 0.13111112, %v5515_v61  ;;  %v5529_v3 = vld [vmem:[#allocation91_spill] sm:$0xff]  ;;  %v1965_v41 = vpop.permute.xlu1 %1964 }
 0x1d7   : > { %v593_v26 = vmul.f32 %v5528_v31, %v4835_v39  ;;  %v2668_v38 = vpop.eup %2667  ;;  %v1978_v30 = vsub.f32 %v1974_v57, %v1976_v54  ;;  %v752_v0 = vmul.f32 %v5529_v3, %v4812_v1  ;;  %v4857_v44 = vmul.f32 0.13111112, %v5523_v18  ;;  %v5532_v61 = vld [vmem:[#allocation55_spill] sm:$0xff]  ;;  %v5533_v3 = vld [vmem:[#allocation36_spill] sm:$0xff] }
 0x1d8   : > { %v4860_v23 = vmul.f32 0.13111112, %v5524_v2  ;;  %vm4862_vm15 = vcmp.lt.f32.partialorder %v1937_v27, 0.0004427343  ;;  %v1990_v31 = vmul.f32 0.6931472, %v2668_v38  ;;  %v528_v59 = vadd.f32 %v526_v40, %v473_v8 }
 0x1d9   : > { %v660_v21 = vmul.f32 %v5532_v61, %v4842_v10  ;;  %v819_v54 = vmul.f32 %v4532_v22, %v4852_v43  ;;  %v2670_v57 = vpop.eup %2669  ;;  %vm1995_vm0 = vcmp.lt.f32.partialorder %v1994_v19, 0.0004427343  ;;  %v874_v18 = vmul.f32 %v5533_v3, %v4857_v44  ;;  %v4882_v3 = vld [vmem:[#allocation2 + $0x8] sm:$0xff] }
 0x1da   : > { %v941_v27 = vmul.f32 %v4622_v11, %v4860_v23  ;;  %v1077_v2 = vmul.f32 %v4612_v12, %v4812_v1  ;;  %v1996_v4 = vsel %vm1995_vm0, %v1993_v51, %v1990_v31  ;;  %v595_v38 = vadd.f32 %v593_v26, %v528_v59 }
 0x1db   : > { %v821_v40 = vadd.f32 %v819_v54, %v752_v0  ;;  %v1143_v8 = vmul.f32 %v4647_v14, %v4852_v43  ;;  %v1661_v22 = vsel %vm4817_vm14, %v4791_v45, %v1655_v35  ;;  %v1973_v19 = vmul.f32 %v5380_v34, %v1965_v41 }
 0x1dc   : > { %v2006_v61 = vadd.f32 %v1996_v4, %v1978_v30  ;;  %v4886_v11 = vmul.f32 %v4882_v3, %v4882_v3  ;;  %v2672_v12 = vpop.eup %2671  ;;  %v662_v51 = vadd.f32 %v660_v21, %v595_v38  ;;  %v1007_v0 = vmul.f32 %v4712_v47, %v4842_v10 }
 0x1dd   : > { %v876_v26 = vadd.f32 %v874_v18, %v821_v40  ;;  %v4890_v14 = vadd.f32 %v1143_v8, %v1077_v2  ;;  %v1933_v31 = vmul.f32 0.6931472, %v2670_v57  ;;  %v1950_v13 = vadd.f32 1e-06, %v1948_v48  ;;  %v5537_v8 = vld [vmem:[#allocation22_spill] sm:$0xff] }
 0x1de   : > { %v2014_v45 = vadd.f32 %v4747_v60, %v2006_v61  ;;  %v1157_v4 = vsub.f32 0.0, %v4886_v11  ;;  %v2674_v35 = vpop.eup %2673  ;;  %v1663_v30 = vadd.f32 %v1661_v22, %v4801_v15  ;;  %v5534_v41 = vmax.f32 %v5518_v49, 0.0  ;;  %v5535_v15 = vld [vmem:[#allocation52_spill] sm:$0xff] }
 0x1df   : > { %v2003_v21 = vand.u32 2147483647, %v5510_v42  ;;  %v943_v18 = vadd.f32 %v941_v27, %v876_v26  ;;  %v2001_v54 = vadd.f32 1.0, %v2000_v6  ;;  %v1977_v47 = vmul.f32 %v1973_v19, %v5512_v55  ;;  %v5536_v27 = vld [vmem:[#allocation20_spill] sm:$0xff] }
 0x1e0   : > { %v1913_v59 = vsub.f32 %v5534_v41, %v1911_v50  ;;  %v2016_v2 = vadd.f32 1e-06, %v2014_v45  ;;  %v1159_v57 = vmin.f32 %v4886_v11, %v1157_v4  ;;  %v1424_v60 = vmul.f32 %v4631_v17, %v4812_v1 }
 0x1e1   : > { %v1009_v48 = vadd.f32 %v1007_v0, %v943_v18  ;;  %v1490_v38 = vmul.f32 %v4687_v29, %v4852_v43  ;;  %v1544_v49 = vmul.f32 %v5535_v15, %v4857_v44  ;;  %v1939_v50 = vsel %vm4862_vm15, %v4809_v5, %v1933_v31  ;;  %v5543_v18 = vld [vmem:[#allocation49_spill] sm:$0xff] }
 0x1e2   : > { %2675 = vrcp.f32 %v1950_v13  ;;  %v280_v6 = vsub.f32 0.0, %v4882_v3  ;;  %v664_v40 = vmul.f32 %v5536_v27, %v662_v51  ;;  %v1161_v19 = vmul.f32 1.442695, %v1159_v57 }
 0x1e3   : > { %v1011_v22 = vmul.f32 %v5537_v8, %v1009_v48  ;;  %v1492_v61 = vadd.f32 %v1490_v38, %v1424_v60  ;;  %v1610_v17 = vmul.f32 %v4837_v32, %v4860_v23  ;;  %v1671_v29 = vadd.f32 %v4601_v62, %v1663_v30  ;;  %v5540_v62 = vld [vmem:[#allocation40_spill] sm:$0xff]  ;;  %v5546_v38 = vld [vmem:[#allocation95_spill] sm:$0xff] }
 0x1e4   : > { %v1941_v26 = vadd.f32 %v1939_v50, %v1913_v59  ;;  %v1999_v0 = vmul.f32 0.6931472, %v2672_v12  ;;  %2677 = vrcp.f32 %v2016_v2  ;;  %v1676_v16 = vmul.f32 %v2674_v35, %v4842_v10  ;;  %v5542_v59 = vld [vmem:[#allocation38_spill] sm:$0xff]  ;;  %v5544_v2 = vld [vmem:[#allocation41_spill] sm:$0xff] }
 0x1e5   : > { %v4915_v45 = vadd.f32 %v1011_v22, %v664_v40  ;;  %2679 = vpow2.f32 %v1161_v19  ;;  %v1546_v5 = vadd.f32 %v1544_v49, %v1492_v61  ;;  %vm4918_vm1 = vcmp.lt.f32.partialorder %v2003_v21, 0.0004427343  ;;  %v5550_v40 = vld [vmem:[#allocation58_spill] sm:$0xff] }
 0x1e6   : > { %v1768_v31 = vmul.f32 %v4742_v56, %v4812_v1  ;;  %v1834_v32 = vmul.f32 %v4781_v20, %v4815_v9  ;;  %2681 = vrcp.f32 %v5540_v62  ;;  %v2002_v12 = vmul.f32 %v5510_v42, %v2001_v54  ;;  %v5551_v22 = vld [vmem:[#allocation46_spill] sm:$0xff] }
 0x1e7   : > { %v5541_v13 = vmax.f32 %v5512_v55, 0.0  ;;  %v282_v30 = vmin.f32 %v4882_v3, %v280_v6  ;;  %v1612_v35 = vadd.f32 %v1610_v17, %v1546_v5  ;;  %v405_v21 = vmul.f32 %v5542_v59, %v4812_v1  ;;  %v5561_v6 = vld [vmem:[#allocation51_spill] sm:$0xff] }
 0x1e8   : > { %v1836_v41 = vadd.f32 %v1834_v32, %v1768_v31  ;;  %v472_v56 = vmul.f32 %v5543_v18, %v4815_v9  ;;  %v527_v20 = vmul.f32 %v5544_v2, %v4832_v46  ;;  %v1673_v57 = vadd.f32 1e-06, %v1671_v29  ;;  %v5553_v32 = vld [vmem:[#allocation61_spill] sm:$0xff] }
 0x1e9   : > { %v1979_v4 = vsub.f32 %v5541_v13, %v1977_v47  ;;  %v1949_v48 = vadd.f32 %v4582_v52, %v1941_v26  ;;  %v2005_v42 = vsel %vm4918_vm1, %v2002_v12, %v1999_v0  ;;  %v4940_v55 = vadd.f32 %v1676_v16, %v1612_v35  ;;  %v5545_v47 = vld [vmem:[#allocation44_spill] sm:$0xff]  ;;  %v5552_v26 = vld [vmem:[#allocation27_spill] sm:$0xff]  ;;  %v4966_v16 = vld [vmem:[#allocation2 + $0x10] sm:$0xff] }
 0x1ea   : > { %v474_v54 = vadd.f32 %v472_v56, %v405_v21  ;;  %v594_v60 = vmul.f32 %v5545_v47, %v4835_v39  ;;  %v753_v15 = vmul.f32 %v5546_v38, %v4812_v1  ;;  %v820_v49 = vmul.f32 %v4527_v33, %v4852_v43 }
 0x1eb   : > { %v5547_v50 = vand.u32 2147483647, %v5498_v24  ;;  %v2007_v52 = vadd.f32 %v2005_v42, %v1979_v4  ;;  %v284_v27 = vmul.f32 1.442695, %v282_v30  ;;  %v661_v8 = vmul.f32 %v5550_v40, %v4842_v10 }
 0x1ec   : > { %v875_v19 = vmul.f32 %v5551_v22, %v4857_v44  ;;  %v2676_v61 = vpop.eup %2675  ;;  %v529_v17 = vadd.f32 %v527_v20, %v474_v54  ;;  %v822_v29 = vadd.f32 %v820_v49, %v753_v15  ;;  %v1078_v33 = vmul.f32 %v4607_v37, %v4812_v1  ;;  %v5557_v15 = vld [vmem:[#allocation45_spill] sm:$0xff] }
 0x1ed   : > { %vm4950_vm2 = vcmp.lt.f32.partialorder %v5547_v50, 0.0004427343  ;;  %v1144_v24 = vmul.f32 %v4635_v28, %v4852_v43  ;;  %2683 = vrcp.f32 %v1673_v57  ;;  %v1185_v0 = vmul.f32 %v5552_v26, %v5343_v58  ;;  %v5554_v57 = vld [vmem:[#allocation94_spill] sm:$0xff] }
 0x1ee   : > { %v942_v5 = vmul.f32 %v4614_v7, %v4860_v23  ;;  %v4970_v51 = vmul.f32 %v4966_v16, %v4966_v16  ;;  %v2678_v31 = vpop.eup %2677  ;;  %v1285_v37 = vmul.f32 %v4775_v25, %v5553_v32  ;;  %v596_v62 = vadd.f32 %v594_v60, %v529_v17  ;;  %v5560_v17 = vld [vmem:[#allocation92_spill] sm:$0xff] }
 0x1ef   : > { %v877_v12 = vadd.f32 %v875_v19, %v822_v29  ;;  %v4974_v28 = vadd.f32 %v1144_v24, %v1078_v33  ;;  %v2680_v13 = vpop.eup %2679  ;;  %v1299_v58 = vmul.f32 0.6931472, %v4786_v53  ;;  %v1951_v4 = vadd.f32 1e-06, %v1949_v48  ;;  %v5555_v53 = vld [vmem:[#allocation71_spill] sm:$0xff] }
 0x1f0   : > { %v1008_v7 = vmul.f32 %v4703_v63, %v4842_v10  ;;  %v1158_v30 = vsub.f32 0.0, %v4970_v51  ;;  %v2682_v35 = vpop.eup %2681  ;;  %v2015_v59 = vadd.f32 %v4681_v36, %v2007_v52  ;;  %2685 = vpow2.f32 %v284_v27  ;;  %v5558_v52 = vld [vmem:[#allocation25_spill] sm:$0xff] }
 0x1f1   : > { %v1165_v21 = vadd.f32 1.0, %v2680_v13  ;;  %v663_v18 = vadd.f32 %v661_v8, %v596_v62  ;;  %v1187_v25 = vmul.f32 1.442695, %v1185_v0  ;;  %v1888_v56 = vmul.f32 %v2682_v35, %v4832_v46  ;;  %v5562_v62 = vld [vmem:[#allocation48_spill] sm:$0xff]  ;;  %v5565_v35 = vld [vmem:[#allocation42_spill] sm:$0xff] }
 0x1f2   : > { %v1954_v2 = vmul.f32 %v2676_v61, %v4835_v39  ;;  %v944_v20 = vadd.f32 %v942_v5, %v877_v12  ;;  %v1257_v48 = vadd.f32 %v5555_v53, %v5554_v57  ;;  %v5556_v42 = vmax.f32 %v5553_v32, 0.0  ;;  %v5569_v57 = vld [vmem:[#allocation96_spill] sm:$0xff] }
 0x1f3   : > { %2687 = vlog2.f32 %v1165_v21  ;;  %v2020_v54 = vmul.f32 %v2678_v31, %v4842_v10  ;;  %v1168_v47 = vmul.f32 -0.5, %v2680_v13  ;;  %v1890_v36 = vadd.f32 %v1888_v56, %v1836_v41  ;;  %v5559_v41 = vld [vmem:[#allocation74_spill] sm:$0xff]  ;;  %v5566_v21 = vld [vmem:[#allocation89_spill] sm:$0xff] }
 0x1f4   : > { %v1287_v63 = vsub.f32 %v5556_v42, %v1285_v37  ;;  %v1010_v60 = vadd.f32 %v1008_v7, %v944_v20  ;;  %v1160_v38 = vmin.f32 %v4970_v51, %v1158_v30  ;;  %v1305_v49 = vsel %vm4950_vm2, %v5557_v15, %v1299_v58  ;;  %v5564_v7 = vld [vmem:[#allocation78_spill] sm:$0xff] }
 0x1f5   : > { %2689 = vrcp.f32 %v1951_v4  ;;  %v2017_v50 = vadd.f32 1e-06, %v2015_v59  ;;  %v1149_v27 = vmul.f32 %v5558_v52, %v5558_v52  ;;  %v1956_v40 = vadd.f32 %v1954_v2, %v1890_v36 }
 0x1f6   : > { %2691 = vpow2.f32 %v1187_v25  ;;  %v4994_v8 = vadd.f32 %v1010_v60, %v663_v18  ;;  %v1163_v22 = vmul.f32 1.442695, %v1160_v38  ;;  %v1151_v19 = vmax.f32 %v4886_v11, 0.0  ;;  %v5572_v60 = vld [vmem:[#allocation32_spill] sm:$0xff] }
 0x1f7   : > { %v1425_v61 = vmul.f32 %v5559_v41, %v4812_v1  ;;  %v1491_v29 = vmul.f32 %v5560_v17, %v4852_v43  ;;  %v1545_v33 = vmul.f32 %v5561_v6, %v4857_v44  ;;  %v2684_v24 = vpop.eup %2683  ;;  %v1169_v26 = vadd.f32 1.0, %v1168_v47  ;;  %v5563_v43 = vld [vmem:[#allocation72_spill] sm:$0xff]  ;;  %v5574_v41 = vld [vmem:[#allocation33_spill] sm:$0xff] }
 0x1f8   : > { %v5003_v0 = vadd.f32 %v2020_v54, %v1956_v40  ;;  %v281_v5 = vsub.f32 0.0, %v4966_v16  ;;  %2693 = vpow2.f32 %v1163_v22  ;;  %v1153_v31 = vmul.f32 %v1149_v27, %v4886_v11  ;;  %v5567_v11 = vld [vmem:[#allocation34_spill] sm:$0xff] }
 0x1f9   : > { %v1171_v32 = vand.u32 2147483647, %v2680_v13  ;;  %v1493_v37 = vadd.f32 %v1491_v29, %v1425_v61  ;;  %v1611_v12 = vmul.f32 %v5562_v62, %v4860_v23  ;;  %v1315_v58 = vadd.f32 %v1305_v49, %v1287_v63  ;;  %v5573_v49 = vld [vmem:[#allocation35_spill] sm:$0xff] }
 0x1fa   : > { %v1769_v4 = vmul.f32 %v5563_v43, %v4812_v1  ;;  %v1835_v30 = vmul.f32 %v5564_v7, %v4815_v9  ;;  %2695 = vrcp.f32 %v5565_v35  ;;  %v5014_v59 = vpop.eup %2685  ;;  %v1321_v18 = vmul.f32 1.442695, %v5566_v21 }
 0x1fb   : > { %v5568_v25 = vunpack.i.h.bf16 %v5567_v11  ;;  %v1547_v2 = vadd.f32 %v1545_v33, %v1493_v37  ;;  %v1677_v20 = vmul.f32 %v2684_v24, %v4842_v10  ;;  %v2290_v53 = vunpack.i.h.bf16 %v5569_v57  ;;  %v5577_v24 = vld [vmem:[#allocation28_spill] sm:$0xff] }
 0x1fc   : > { %v1170_v42 = vmul.f32 %v2680_v13, %v1169_v26  ;;  %v283_v1 = vmin.f32 %v4966_v16, %v281_v5  ;;  %v1837_v63 = vadd.f32 %v1835_v30, %v1769_v4  ;;  %2697 = vrcp.f32 %v2017_v50  ;;  %v5575_v13 = vld [vmem:[#allocation57_spill] sm:$0xff]  ;;  %v5578_v5 = vld [vmem:[#allocation62_spill] sm:$0xff] }
 0x1fd   : > { %v1216_v56 = vmul.f32 %v5568_v25, %v5380_v34  ;;  %v2688_v9 = vpop.eup %2687  ;;  %v1155_v54 = vsub.f32 %v1151_v19, %v1153_v31  ;;  %vm5023_vm3 = vcmp.lt.f32.partialorder %v1171_v32, 0.0004427343  ;;  %v1613_v36 = vadd.f32 %v1611_v12, %v1547_v2  ;;  %v5579_v32 = vld [vmem:[#allocation81_spill] sm:$0xff] }
 0x1fe   : > { %v1244_v38 = vadd.f32 1.0, %v5572_v60  ;;  %v1259_v15 = vadd.f32 1e-06, %v1257_v48  ;;  %v1323_v27 = vadd.f32 %v5573_v49, %v1315_v58  ;;  %v1167_v40 = vmul.f32 0.6931472, %v2688_v9  ;;  %v5576_v48 = vld [vmem:[#allocation30_spill] sm:$0xff] }
 0x1ff   : > { %v2690_v22 = vpop.eup %2689  ;;  %2699 = vpow2.f32 %v5574_v41  ;;  %v1220_v61 = vmul.f32 %v1216_v56, %v5575_v13  ;;  %v288_v17 = vadd.f32 1.0, %v5014_v59  ;;  %v5032_v50 = vadd.f32 %v1677_v20, %v1613_v36  ;;  %v5580_v58 = vld [vmem:[#allocation76_spill] sm:$0xff]  ;;  %v5582_v56 = vld [vmem:[#allocation67_spill] sm:$0xff] }
 0x200   : > { %v2692_v19 = vpop.eup %2691  ;;  %v1282_v29 = vmul.f32 %v2290_v53, %v5380_v34  ;;  %v1173_v6 = vsel %vm5023_vm3, %v1170_v42, %v1167_v40  ;;  %v286_v33 = vmul.f32 1.442695, %v283_v1  ;;  %v1186_v26 = vmul.f32 %v5577_v24, %v5576_v48  ;;  %v5583_v36 = vld [vmem:[#allocation31_spill] sm:$0xff] }
 0x201   : > { %v1284_v31 = vmax.f32 %v5578_v5, 0.0  ;;  %2701 = vpow2.f32 %v1321_v18  ;;  %v1309_v37 = vmul.f32 -0.5, %v5579_v32  ;;  %v1183_v62 = vadd.f32 %v1173_v6, %v1155_v54 }
 0x202   : > { %v2694_v12 = vpop.eup %2693  ;;  %v1245_v43 = vmul.f32 %v5580_v58, %v1244_v38  ;;  %v1246_v4 = vand.u32 2147483647, %v5580_v58  ;;  %2703 = vrcp.f32 %v1259_v15  ;;  %v1325_v7 = vadd.f32 1e-06, %v1323_v27 }
 0x203   : > { %v5581_v30 = vmax.f32 %v5575_v13, 0.0  ;;  %2705 = vlog2.f32 %v288_v17  ;;  %v1191_v21 = vadd.f32 %v2692_v19, %v1183_v62  ;;  %v1174_v11 = vadd.f32 1.0, %v2694_v12 }
 0x204   : > { %v2696_v25 = vpop.eup %2695  ;;  %v1242_v2 = vmul.f32 0.6931472, %v5582_v56  ;;  %v1286_v18 = vmul.f32 %v1282_v29, %v5578_v5  ;;  %2707 = vpow2.f32 %v286_v33  ;;  %v1189_v20 = vmul.f32 1.442695, %v1186_v26 }
 0x205   : > { %v1222_v35 = vsub.f32 %v5581_v30, %v1220_v61  ;;  %v1310_v57 = vadd.f32 1.0, %v1309_v37  ;;  %v1312_v53 = vand.u32 2147483647, %v5579_v32  ;;  %v1193_v42 = vadd.f32 1e-06, %v1191_v21 }
 0x206   : > { %2709 = vlog2.f32 %v1174_v11  ;;  %v1177_v1 = vmul.f32 -0.5, %v2694_v12  ;;  %v1889_v9 = vmul.f32 %v2696_v25, %v4832_v46  ;;  %v1955_v54 = vmul.f32 %v2690_v22, %v4835_v39  ;;  %v2698_v47 = vpop.eup %2697 }
 0x207   : > { %2711 = vrcp.f32 %v1325_v7  ;;  %vm1247_vm4 = vcmp.lt.f32.partialorder %v1246_v4, 0.0004427343  ;;  %v1308_v60 = vmul.f32 0.6931472, %v5583_v36  ;;  %v1150_v38 = vmul.f32 %v5380_v34, %v5380_v34 }
 0x208   : > { %2713 = vrcp.f32 %v1193_v42  ;;  %v1248_v15 = vsel %vm1247_vm4, %v1245_v43, %v1242_v2  ;;  %v1288_v49 = vsub.f32 %v1284_v31, %v1286_v18  ;;  %v1891_v27 = vadd.f32 %v1889_v9, %v1837_v63 }
 0x209   : > { %2715 = vpow2.f32 %v1189_v20  ;;  %v2700_v40 = vpop.eup %2699  ;;  %v1250_v41 = vadd.f32 %v1248_v15, %v1222_v35  ;;  %v1311_v13 = vmul.f32 %v5579_v32, %v1310_v57  ;;  %v291_v46 = vmul.f32 -0.5, %v5014_v59 }
 0x20a   : > { %vm1313_vm5 = vcmp.lt.f32.partialorder %v1312_v53, 0.0004427343  ;;  %v1178_v39 = vadd.f32 1.0, %v1177_v1  ;;  %v1957_v22 = vadd.f32 %v1955_v54, %v1891_v27  ;;  %v2021_v61 = vmul.f32 %v2698_v47, %v4842_v10 }
 0x20b   : > { %v2702_v17 = vpop.eup %2701  ;;  %v1314_v19 = vsel %vm1313_vm5, %v1311_v13, %v1308_v60  ;;  %v1152_v29 = vmax.f32 %v4970_v51, 0.0  ;;  %v1154_v6 = vmul.f32 %v1150_v38, %v4970_v51  ;;  %v1180_v33 = vand.u32 2147483647, %v2694_v12 }
 0x20c   : > { %v2704_v48 = vpop.eup %2703  ;;  %v1316_v63 = vadd.f32 %v1314_v19, %v1288_v49  ;;  %v5058_v24 = vadd.f32 %v2021_v61, %v1957_v22  ;;  %v292_v5 = vadd.f32 1.0, %v291_v46  ;;  %v294_v32 = vand.u32 2147483647, %v5014_v59 }
 0x20d   : > { %v2706_v26 = vpop.eup %2705  ;;  %v1179_v37 = vmul.f32 %v2694_v12, %v1178_v39  ;;  %v1258_v58 = vadd.f32 %v2700_v40, %v1250_v41  ;;  %v1156_v43 = vsub.f32 %v1152_v29, %v1154_v6  ;;  %vm5061_vm6 = vcmp.lt.f32.partialorder %v1180_v33, 0.0004427343  ;;  %v5588_v40 = vld [vmem:[#allocation16_spill] sm:$0xff] }
 0x20e   : > { %v2708_v31 = vpop.eup %2707  ;;  %v1324_v51 = vadd.f32 %v2702_v17, %v1316_v63  ;;  %v274_v30 = vmax.f32 %v4882_v3, 0.0  ;;  %v276_v35 = vmul.f32 %v4882_v3, %v5558_v52  ;;  %v290_v25 = vmul.f32 0.6931472, %v2706_v26 }
 0x20f   : > { %v293_v56 = vmul.f32 %v5014_v59, %v292_v5  ;;  %v1263_v12 = vmul.f32 %v2704_v48, %v4860_v23  ;;  %vm5070_vm7 = vcmp.lt.f32.partialorder %v294_v32, 0.0004427343  ;;  %v297_v57 = vadd.f32 1.0, %v2708_v31 }
 0x210   : > { %v2710_v62 = vpop.eup %2709  ;;  %v1260_v42 = vadd.f32 1e-06, %v1258_v58  ;;  %v1326_v52 = vadd.f32 1e-06, %v1324_v51  ;;  %v278_v1 = vsub.f32 %v274_v30, %v276_v35  ;;  %v300_v27 = vmul.f32 -0.5, %v2708_v31 }
 0x211   : > { %v2712_v7 = vpop.eup %2711  ;;  %v1176_v21 = vmul.f32 0.6931472, %v2710_v62  ;;  %v296_v54 = vsel %vm5070_vm7, %v293_v56, %v290_v25  ;;  %2717 = vlog2.f32 %v297_v57  ;;  %v303_v61 = vand.u32 2147483647, %v2708_v31 }
 0x212   : > { %v2714_v11 = vpop.eup %2713  ;;  %v1329_v59 = vmul.f32 %v2712_v7, %v4842_v10  ;;  %2719 = vrcp.f32 %v1260_v42  ;;  %v306_v38 = vadd.f32 %v296_v54, %v278_v1  ;;  %v301_v46 = vadd.f32 1.0, %v300_v27 }
 0x213   : > { %v2716_v2 = vpop.eup %2715  ;;  %v1197_v20 = vmul.f32 %v2714_v11, %v4857_v44  ;;  %v1182_v53 = vsel %vm5061_vm6, %v1179_v37, %v1176_v21  ;;  %2721 = vrcp.f32 %v1326_v52  ;;  %v275_v29 = vmax.f32 %v4966_v16, 0.0 }
 0x214   : > { %v1184_v3 = vadd.f32 %v1182_v53, %v1156_v43  ;;  %v308_v41 = vmul.f32 %v5588_v40, %v306_v38  ;;  %v277_v6 = vmul.f32 %v4966_v16, %v5380_v34  ;;  %v302_v48 = vmul.f32 %v2708_v31, %v301_v46  ;;  %v5589_v34 = vld [vmem:[#allocation23_spill] sm:$0xff] }
 0x215   : > { %v1199_v9 = vadd.f32 %v1197_v20, %v4890_v14  ;;  %vm304_vm8 = vcmp.lt.f32.partialorder %v303_v61, 0.0004427343  ;;  %v1681_v16 = vmul.f32 %v5589_v34, %v5032_v50  ;;  %vm2034_vm9 = vcmask 7168  }
 0x216   : > { %v1192_v47 = vadd.f32 %v2716_v2, %v1184_v3  ;;  %v279_v63 = vsub.f32 %v275_v29, %v277_v6 }
 0x217   : > { %v1265_v36 = vadd.f32 %v1263_v12, %v1199_v9 }
 0x218   : > { %v1194_v60 = vadd.f32 1e-06, %v1192_v47 }
 0x219   : > { %v1331_v15 = vadd.f32 %v1329_v59, %v1265_v36 }
 0x21a   : > { %2723 = vrcp.f32 %v1194_v60 }
 0x21b   : > { %v1335_v49 = vadd.f32 %v1331_v15, %v4915_v45  ;;  %v2718_v39 = vpop.eup %2717 }
 0x21c   : > { %v2720_v17 = vpop.eup %2719  ;;  %v299_v33 = vmul.f32 0.6931472, %v2718_v39 }
 0x21d   : > { %v1682_v14 = vadd.f32 %v4940_v55, %v1335_v49  ;;  %v2722_v19 = vpop.eup %2721 }
 0x21e   : > { %v1330_v5 = vmul.f32 %v2722_v19, %v4842_v10  ;;  %v305_v32 = vsel %vm304_vm8, %v302_v48, %v299_v33 }
 0x21f   : > { %v2026_v13 = vadd.f32 %v5003_v0, %v1682_v14  ;;  %v1264_v0 = vmul.f32 %v2720_v17, %v4860_v23  ;;  %v307_v62 = vadd.f32 %v305_v32, %v279_v63 }
 0x221   : > { %v2028_v22 = vmul.f32 %v2026_v13, %v308_v41  ;;  %v309_v23 = vmul.f32 %v5588_v40, %v307_v62 }
 0x223   : > { %2030 = vadd.xlane.f32.xlu1 %v2028_v22 }
 0x224   : > { %v2724_v45 = vpop.eup %2723 }
 0x225   : > { %v1198_v55 = vmul.f32 %v2724_v45, %v4857_v44  ;;  %v5590_v44 = vld [vmem:[#allocation24_spill] sm:$0xff] }
 0x226   : > { %v2025_v43 = vmul.f32 %v5590_v44, %v5058_v24 }
 0x227   : > { %v1200_v26 = vadd.f32 %v1198_v55, %v4974_v28 }
 0x229   : > { %v1266_v37 = vadd.f32 %v1264_v0, %v1200_v26 }
 0x22b   : > { %v1332_v58 = vadd.f32 %v1330_v5, %v1266_v37 }
 0x22d   : > { %v1336_v31 = vadd.f32 %v1332_v58, %v4994_v8 }
 0x22f   : > { %v1683_v4 = vadd.f32 %v1681_v16, %v1336_v31 }
 0x231   : > { %v2027_v28 = vadd.f32 %v2025_v43, %v1683_v4 }
 0x233   : > { %v2029_v7 = vmul.f32 %v2027_v28, %v309_v23 }
 0x235   : > { %2032 = vadd.xlane.f32.xlu0 %v2029_v7 }
 0x2b0   : > { %v2031_v10 = vpop.xlane.xlu1 %2030 }
 0x2b1   : > { %2035 = vst.msk [vmem:[%s2900_s14] sm:$0xff] %vm2034_vm9, %v2031_v10 }
 0x2c2   : > { %v2033_v51 = vpop.xlane.xlu0 %2032 }
 0x2c3   : > { %2036 = vst.msk [vmem:[%s2900_s14 + $0x8] sm:$0xff] %vm2034_vm9, %v2033_v51 }
 0x2c4 PF: > { %s17_s24 = sadd.s32 1, %s2815_s24   ;;  %s5591_s22 = smov %s5594_s0 }
 0x2c5   : > { %p14_p4 = scmp.ge.s32.totalorder %s17_s24, 5   ;;  %s5592_s23 = smov %s5598_s25 }
 0x2c7   :  { %16 = sbr.rel (!%p14_p4) target bundleno = 14 (0xe), region = 51 }
 0x2ce   :  { %2075 = vsyncmov [#allocation4] }
 0x2d1   :  { %s2076_s17 = vpop.sfrf %2075 }
 0x2d2   :  { %p2171_p5 = scmp.ne.s32.totalorder %s2076_s17, 0 }
 0x2d4   :  { %2080 = shalt.err (%p2171_p5)  }
 0x2d5   :  { %2082 = vsyncmov [#allocation4 + $0x1] }
 0x2d8   :  { %s2083_s18 = vpop.sfrf %2082 }
 0x2d9   :  { %p2172_p6 = scmp.ne.s32.totalorder %s2083_s18, 0 }
 0x2db   :  { %2087 = shalt.err (%p2172_p6)  }

</bundles_post_ra>
